<compile_context>
chip_gen: v7x
topology: tpu7x:2x2x1
jax: 0.10.0
libtpu: 0.0.40
codegen_flags: <defaults>
</compile_context>

<pallas_src>
import jax
import jax.numpy as jnp
from jax.experimental import pallas as pl
from jax.experimental.pallas import tpu as pltpu

IN_FEATURES = 49152           # 3 * 128 * 128
HIDDEN = (64, 64)
NUM_CLASSES = 35
K_TILE = 12288                # 49152 / 12288 = 4 grid steps (was 12)
MAX_BATCH_TILE = 128          # keeps the (BN, K_TILE) f32 X tile at <= 6 MiB


def _fcnn_kernel(x_ref, w1_ref, b1_ref, w2_ref, b2_ref, w3_ref, b3_ref,
                 w4_ref, b4_ref, logits_ref, probs_ref, acc_ref):
    k = pl.program_id(1)

    @pl.when(k == 0)
    def _():
        acc_ref[...] = jnp.zeros_like(acc_ref)

    # hot path: tiled (BN, K_TILE) @ (K_TILE, 64) accumulation on the MXU
    acc_ref[...] += jnp.dot(x_ref[...], w1_ref[...],
                            preferred_element_type=jnp.float32)

    @pl.when(k == pl.num_programs(1) - 1)
    def _():
        # layer "input": bias + ReLU
        h = jnp.maximum(acc_ref[...] + b1_ref[...], 0.0)
        # layer "hidden"
        h = jnp.maximum(
            jnp.dot(h, w2_ref[...], preferred_element_type=jnp.float32)
            + b2_ref[...], 0.0)
        # layer "hidden_0"
        h = jnp.maximum(
            jnp.dot(h, w3_ref[...], preferred_element_type=jnp.float32)
            + b3_ref[...], 0.0)
        # layer "output" -> logits
        logits = jnp.dot(h, w4_ref[...], preferred_element_type=jnp.float32) \
                 + b4_ref[...]
        logits_ref[...] = logits.astype(logits_ref.dtype)
        # softmax over classes (dim=1); reciprocal goes to the EUP slot
        m = jnp.max(logits, axis=-1, keepdims=True)
        e = jnp.exp(logits - m)
        inv = pl.reciprocal(jnp.sum(e, axis=-1, keepdims=True), approx=True)
        probs_ref[...] = (e * inv).astype(probs_ref.dtype)


def _batch_tile(n):
    """Largest batch tile <= MAX_BATCH_TILE that evenly divides n."""
    if n <= MAX_BATCH_TILE:
        return n
    for bt in (128, 64, 32, 16, 8):
        if n % bt == 0:
            return bt
    return n  # large odd batch: single tile (pad N to a multiple of 8 upstream)


@jax.jit
def fcnn_forward(x, params):
    """x: (N, 3, 128, 128) float32 NCHW. Returns (logits, probs), each (N, 35)."""
    w1, b1, w2, b2, w3, b3, w4, b4 = params
    n = x.shape[0]
    x2d = x.reshape(n, IN_FEATURES)          # same as torch .view(-1, 49152)
    b1r = b1.reshape(1, -1)
    b2r = b2.reshape(1, -1)
    b3r = b3.reshape(1, -1)
    b4r = b4.reshape(1, -1)

    bn = _batch_tile(n)
    grid = (n // bn, IN_FEATURES // K_TILE)

    full = lambda shape: pl.BlockSpec(shape, lambda b, k: (0, 0))

    # advisory cost hint for XLA's scheduler (kernel is W1-HBM-bound)
    flops = 2 * n * (IN_FEATURES * HIDDEN[0] + HIDDEN[0] * HIDDEN[1]
                     + HIDDEN[0] * HIDDEN[1] + HIDDEN[1] * NUM_CLASSES)
    bytes_accessed = (4 * IN_FEATURES * HIDDEN[0] * (n // bn)   # W1 stream per batch tile
                      + 4 * n * IN_FEATURES                     # X
                      + 4 * (2 * HIDDEN[0] * HIDDEN[1] + HIDDEN[1] * NUM_CLASSES)
                      + 4 * 2 * n * NUM_CLASSES)                # logits + probs
    cost = pl.CostEstimate(flops=flops, transcendentals=n * NUM_CLASSES,
                           bytes_accessed=bytes_accessed)

    logits, probs = pl.pallas_call(
        _fcnn_kernel,
        out_shape=(
            jax.ShapeDtypeStruct((n, NUM_CLASSES), jnp.float32),
            jax.ShapeDtypeStruct((n, NUM_CLASSES), jnp.float32),
        ),
        grid_spec=pltpu.PrefetchScalarGridSpec(
            num_scalar_prefetch=0,
            grid=grid,
            in_specs=[
                pl.BlockSpec((bn, K_TILE), lambda b, k: (b, k)),          # x tile
                pl.BlockSpec((K_TILE, HIDDEN[0]), lambda b, k: (k, 0)),   # w1 tile
                full((1, HIDDEN[0])),                                     # b1
                full((HIDDEN[0], HIDDEN[1])),                             # w2
                full((1, HIDDEN[1])),                                     # b2
                full((HIDDEN[0], HIDDEN[1])),                             # w3
                full((1, HIDDEN[1])),                                     # b3
                full((HIDDEN[1], NUM_CLASSES)),                           # w4
                full((1, NUM_CLASSES)),                                   # b4
            ],
            out_specs=[
                pl.BlockSpec((bn, NUM_CLASSES), lambda b, k: (b, 0)),
                pl.BlockSpec((bn, NUM_CLASSES), lambda b, k: (b, 0)),
            ],
            scratch_shapes=[pltpu.VMEM((bn, HIDDEN[0]), jnp.float32)],
        ),
        compiler_params=pltpu.CompilerParams(
            # batch tiles are independent (megacore on v7x); K is the reduction
            dimension_semantics=("parallel", "arbitrary"),
            # W1 tile lane-padded 64->128 in VMEM: K_TILE*512 B = 6 MiB/buffer,
            # 12 MiB double-buffered (+ X buffers) -> raise the scoped limit.
            vmem_limit_bytes=48 << 20,
        ),
        cost_estimate=cost,
    )(x2d, w1, b1r, w2, b2r, w3, b3r, w4, b4r)
    return logits, probs


def init_params(key):
    """Deterministic init mimicking nn.Linear default (uniform +-1/sqrt(fan_in))."""
    def linear(k, fan_in, fan_out):
        kw, kb = jax.random.split(k)
        bound = 1.0 / jnp.sqrt(fan_in)
        w = jax.random.uniform(kw, (fan_in, fan_out), jnp.float32, -bound, bound)
        b = jax.random.uniform(kb, (fan_out,), jnp.float32, -bound, bound)
        return w, b

    k1, k2, k3, k4 = jax.random.split(key, 4)
    w1, b1 = linear(k1, IN_FEATURES, HIDDEN[0])
    w2, b2 = linear(k2, HIDDEN[0], HIDDEN[1])
    w3, b3 = linear(k3, HIDDEN[0], HIDDEN[1])
    w4, b4 = linear(k4, HIDDEN[1], NUM_CLASSES)
    return (w1, b1, w2, b2, w3, b3, w4, b4)


def _reference(x, params):
    w1, b1, w2, b2, w3, b3, w4, b4 = params
    h = x.reshape(x.shape[0], -1)
    h = jnp.maximum(h @ w1 + b1, 0.0)
    h = jnp.maximum(h @ w2 + b2, 0.0)
    h = jnp.maximum(h @ w3 + b3, 0.0)
    logits = h @ w4 + b4
    probs = jax.nn.softmax(logits, axis=1)
    return logits, probs


if __name__ == "__main__":
    key = jax.random.PRNGKey(0)
    kx, kp = jax.random.split(key)
    # batch=2 images, NCHW (3, 128, 128) as implied by in_features=49152
    x = jax.random.normal(kx, (2, 3, 128, 128), jnp.float32)
    params = init_params(kp)

    logits, probs = fcnn_forward(x, params)
    jax.block_until_ready((logits, probs))

    ref_logits, ref_probs = _reference(x, params)
    assert jnp.allclose(logits, ref_logits, atol=1e-3, rtol=1e-3)
    # probs use the EUP approximate reciprocal -> slightly looser rtol
    assert jnp.allclose(probs, ref_probs, atol=1e-5, rtol=5e-3)
    assert logits.shape == (2, 35) and probs.shape == (2, 35)

    print("KERNEL_OK")
</pallas_src>

<mosaic_0001>
module attributes {stable_mosaic.version = 11 : i64} {
  func.func @_fcnn_kernel(%arg0: i32, %arg1: i32, %arg2: memref<2x12288xf32, #tpu.memory_space<vmem>>, %arg3: memref<12288x64xf32, #tpu.memory_space<vmem>>, %arg4: memref<1x64xf32, #tpu.memory_space<vmem>>, %arg5: memref<64x64xf32, #tpu.memory_space<vmem>>, %arg6: memref<1x64xf32, #tpu.memory_space<vmem>>, %arg7: memref<64x64xf32, #tpu.memory_space<vmem>>, %arg8: memref<1x64xf32, #tpu.memory_space<vmem>>, %arg9: memref<64x35xf32, #tpu.memory_space<vmem>>, %arg10: memref<1x35xf32, #tpu.memory_space<vmem>>, %arg11: memref<2x35xf32, #tpu.memory_space<vmem>>, %arg12: memref<2x35xf32, #tpu.memory_space<vmem>>, %arg13: memref<2x64xf32, #tpu.memory_space<vmem>>) attributes {dimension_semantics = [#tpu.dimension_semantics<parallel>, #tpu.dimension_semantics<arbitrary>], iteration_bounds = array<i64: 1, 4>, scalar_prefetch = 0 : i64, scratch_operands = 1 : i64, tpu.core_type = #tpu.core_type<tc>, window_params = [{transform_indices = @transform_0, window_bounds = array<i64: 2, 12288>}, {transform_indices = @transform_1, window_bounds = array<i64: 12288, 64>}, {pipeline_mode = #tpu.pipeline_mode<synchronous>, transform_indices = @transform_2, window_bounds = array<i64: 1, 64>}, {pipeline_mode = #tpu.pipeline_mode<synchronous>, transform_indices = @transform_3, window_bounds = array<i64: 64, 64>}, {pipeline_mode = #tpu.pipeline_mode<synchronous>, transform_indices = @transform_4, window_bounds = array<i64: 1, 64>}, {pipeline_mode = #tpu.pipeline_mode<synchronous>, transform_indices = @transform_5, window_bounds = array<i64: 64, 64>}, {pipeline_mode = #tpu.pipeline_mode<synchronous>, transform_indices = @transform_6, window_bounds = array<i64: 1, 64>}, {pipeline_mode = #tpu.pipeline_mode<synchronous>, transform_indices = @transform_7, window_bounds = array<i64: 64, 35>}, {pipeline_mode = #tpu.pipeline_mode<synchronous>, transform_indices = @transform_8, window_bounds = array<i64: 1, 35>}, {transform_indices = @transform_9, window_bounds = array<i64: 2, 35>}, {transform_indices = @transform_10, window_bounds = array<i64: 2, 35>}]} {
    %c0_i32 = arith.constant 0 : i32
    %0 = arith.cmpi eq, %arg1, %c0_i32 : i32
    %1 = arith.extui %0 : i1 to i32
    %c0_i32_0 = arith.constant 0 : i32
    %2 = arith.cmpi ne, %1, %c0_i32_0 : i32
    scf.if %2 {
      %cst_9 = arith.constant 0.000000e+00 : f32
      %12 = vector.broadcast %cst_9 : f32 to vector<2x64xf32>
      %c0_10 = arith.constant 0 : index
      %c0_11 = arith.constant 0 : index
      %13 = vector.load %arg13[%c0_10, %c0_11] : memref<2x64xf32, #tpu.memory_space<vmem>>, vector<2x64xf32>
      tpu.vector_store %arg13[%c0_10, %c0_11], %12 {strides = array<i32>} : memref<2x64xf32, #tpu.memory_space<vmem>>, vector<2x64xf32>,
    } else {
    }
    %c0 = arith.constant 0 : index
    %c0_1 = arith.constant 0 : index
    %3 = vector.load %arg13[%c0, %c0_1] : memref<2x64xf32, #tpu.memory_space<vmem>>, vector<2x64xf32>
    %c0_2 = arith.constant 0 : index
    %c0_3 = arith.constant 0 : index
    %4 = vector.load %arg2[%c0_2, %c0_3] : memref<2x12288xf32, #tpu.memory_space<vmem>>, vector<2x12288xf32>
    %c0_4 = arith.constant 0 : index
    %c0_5 = arith.constant 0 : index
    %5 = vector.load %arg3[%c0_4, %c0_5] : memref<12288x64xf32, #tpu.memory_space<vmem>>, vector<12288x64xf32>
    %cst = arith.constant dense<0.000000e+00> : vector<2x64xf32>
    %6 = tpu.matmul %4, %5, %cst {dimension_numbers = #tpu.dot_dimension_numbers<[1], [0], [0], [1], [0, 0, 1, 1], [], []>} : vector<2x12288xf32>, vector<12288x64xf32>, vector<2x64xf32> -> vector<2x64xf32>
    %7 = arith.addf %3, %6 : vector<2x64xf32>
    %c0_6 = arith.constant 0 : index
    %c0_7 = arith.constant 0 : index
    %8 = vector.load %arg13[%c0_6, %c0_7] : memref<2x64xf32, #tpu.memory_space<vmem>>, vector<2x64xf32>
    tpu.vector_store %arg13[%c0_6, %c0_7], %7 {strides = array<i32>} : memref<2x64xf32, #tpu.memory_space<vmem>>, vector<2x64xf32>,
    %c3_i32 = arith.constant 3 : i32
    %9 = arith.cmpi eq, %arg1, %c3_i32 : i32
    %10 = arith.extui %9 : i1 to i32
    %c0_i32_8 = arith.constant 0 : i32
    %11 = arith.cmpi ne, %10, %c0_i32_8 : i32
    scf.if %11 {
      %c0_9 = arith.constant 0 : index
      %c0_10 = arith.constant 0 : index
      %12 = vector.load %arg13[%c0_9, %c0_10] : memref<2x64xf32, #tpu.memory_space<vmem>>, vector<2x64xf32>
      %c0_11 = arith.constant 0 : index
      %c0_12 = arith.constant 0 : index
      %13 = vector.load %arg4[%c0_11, %c0_12] : memref<1x64xf32, #tpu.memory_space<vmem>>, vector<1x64xf32>
      %14 = vector.broadcast %13 : vector<1x64xf32> to vector<2x64xf32>
      %15 = arith.addf %12, %14 : vector<2x64xf32>
      %cst_13 = arith.constant 0.000000e+00 : f32
      %16 = vector.broadcast %cst_13 : f32 to vector<2x64xf32>
      %17 = arith.maximumf %15, %16 : vector<2x64xf32>
      %c0_14 = arith.constant 0 : index
      %c0_15 = arith.constant 0 : index
      %18 = vector.load %arg5[%c0_14, %c0_15] : memref<64x64xf32, #tpu.memory_space<vmem>>, vector<64x64xf32>
      %cst_16 = arith.constant dense<0.000000e+00> : vector<2x64xf32>
      %19 = tpu.matmul %17, %18, %cst_16 {dimension_numbers = #tpu.dot_dimension_numbers<[1], [0], [0], [1], [0, 0, 1, 1], [], []>} : vector<2x64xf32>, vector<64x64xf32>, vector<2x64xf32> -> vector<2x64xf32>
      %c0_17 = arith.constant 0 : index
      %c0_18 = arith.constant 0 : index
      %20 = vector.load %arg6[%c0_17, %c0_18] : memref<1x64xf32, #tpu.memory_space<vmem>>, vector<1x64xf32>
      %21 = vector.broadcast %20 : vector<1x64xf32> to vector<2x64xf32>
      %22 = arith.addf %19, %21 : vector<2x64xf32>
      %cst_19 = arith.constant 0.000000e+00 : f32
      %23 = vector.broadcast %cst_19 : f32 to vector<2x64xf32>
      %24 = arith.maximumf %22, %23 : vector<2x64xf32>
      %c0_20 = arith.constant 0 : index
      %c0_21 = arith.constant 0 : index
      %25 = vector.load %arg7[%c0_20, %c0_21] : memref<64x64xf32, #tpu.memory_space<vmem>>, vector<64x64xf32>
      %cst_22 = arith.constant dense<0.000000e+00> : vector<2x64xf32>
      %26 = tpu.matmul %24, %25, %cst_22 {dimension_numbers = #tpu.dot_dimension_numbers<[1], [0], [0], [1], [0, 0, 1, 1], [], []>} : vector<2x64xf32>, vector<64x64xf32>, vector<2x64xf32> -> vector<2x64xf32>
      %c0_23 = arith.constant 0 : index
      %c0_24 = arith.constant 0 : index
      %27 = vector.load %arg8[%c0_23, %c0_24] : memref<1x64xf32, #tpu.memory_space<vmem>>, vector<1x64xf32>
      %28 = vector.broadcast %27 : vector<1x64xf32> to vector<2x64xf32>
      %29 = arith.addf %26, %28 : vector<2x64xf32>
      %cst_25 = arith.constant 0.000000e+00 : f32
      %30 = vector.broadcast %cst_25 : f32 to vector<2x64xf32>
      %31 = arith.maximumf %29, %30 : vector<2x64xf32>
      %c0_26 = arith.constant 0 : index
      %c0_27 = arith.constant 0 : index
      %32 = vector.load %arg9[%c0_26, %c0_27] : memref<64x35xf32, #tpu.memory_space<vmem>>, vector<64x35xf32>
      %cst_28 = arith.constant dense<0.000000e+00> : vector<2x35xf32>
      %33 = tpu.matmul %31, %32, %cst_28 {dimension_numbers = #tpu.dot_dimension_numbers<[1], [0], [0], [1], [0, 0, 1, 1], [], []>} : vector<2x64xf32>, vector<64x35xf32>, vector<2x35xf32> -> vector<2x35xf32>
      %c0_29 = arith.constant 0 : index
      %c0_30 = arith.constant 0 : index
      %34 = vector.load %arg10[%c0_29, %c0_30] : memref<1x35xf32, #tpu.memory_space<vmem>>, vector<1x35xf32>
      %35 = vector.broadcast %34 : vector<1x35xf32> to vector<2x35xf32>
      %36 = arith.addf %33, %35 : vector<2x35xf32>
      %c0_31 = arith.constant 0 : index
      %c0_32 = arith.constant 0 : index
      %37 = vector.load %arg11[%c0_31, %c0_32] : memref<2x35xf32, #tpu.memory_space<vmem>>, vector<2x35xf32>
      tpu.vector_store %arg11[%c0_31, %c0_32], %36 {strides = array<i32>} : memref<2x35xf32, #tpu.memory_space<vmem>>, vector<2x35xf32>,
      %cst_33 = arith.constant dense<0xFF800000> : vector<2xf32>
      %38 = vector.multi_reduction <maximumf>, %36, %cst_33 [1] : vector<2x35xf32> to vector<2xf32>
      %39 = vector.shape_cast %38 : vector<2xf32> to vector<2x1xf32>
      %40 = vector.broadcast %39 : vector<2x1xf32> to vector<2x35xf32>
      %41 = arith.subf %36, %40 : vector<2x35xf32>
      %42 = math.exp %41 : vector<2x35xf32>
      %cst_34 = arith.constant dense<0.000000e+00> : vector<2xf32>
      %43 = vector.multi_reduction <add>, %42, %cst_34 [1] : vector<2x35xf32> to vector<2xf32>
      %44 = vector.shape_cast %43 : vector<2xf32> to vector<2x1xf32>
      %45 = tpu.reciprocal %44 {approx = true} : vector<2x1xf32> -> vector<2x1xf32>
      %46 = vector.broadcast %45 : vector<2x1xf32> to vector<2x35xf32>
      %47 = arith.mulf %42, %46 : vector<2x35xf32>
      %c0_35 = arith.constant 0 : index
      %c0_36 = arith.constant 0 : index
      %48 = vector.load %arg12[%c0_35, %c0_36] : memref<2x35xf32, #tpu.memory_space<vmem>>, vector<2x35xf32>
      tpu.vector_store %arg12[%c0_35, %c0_36], %47 {strides = array<i32>} : memref<2x35xf32, #tpu.memory_space<vmem>>, vector<2x35xf32>,
    } else {
    }
    return
  }
  func.func @transform_0(%arg0: i32, %arg1: i32) -> (i32, i32) {
    %c0_i32 = arith.constant 0 : i32
    return %arg0, %arg1 : i32, i32
  }
  func.func @transform_1(%arg0: i32, %arg1: i32) -> (i32, i32) {
    %c0_i32 = arith.constant 0 : i32
    %c0_i32_0 = arith.constant 0 : i32
    return %arg1, %c0_i32 : i32, i32
  }
  func.func @transform_2(%arg0: i32, %arg1: i32) -> (i32, i32) {
    %c0_i32 = arith.constant 0 : i32
    %c0_i32_0 = arith.constant 0 : i32
    %c0_i32_1 = arith.constant 0 : i32
    return %c0_i32, %c0_i32_0 : i32, i32
  }
  func.func @transform_3(%arg0: i32, %arg1: i32) -> (i32, i32) {
    %c0_i32 = arith.constant 0 : i32
    %c0_i32_0 = arith.constant 0 : i32
    %c0_i32_1 = arith.constant 0 : i32
    return %c0_i32, %c0_i32_0 : i32, i32
  }
  func.func @transform_4(%arg0: i32, %arg1: i32) -> (i32, i32) {
    %c0_i32 = arith.constant 0 : i32
    %c0_i32_0 = arith.constant 0 : i32
    %c0_i32_1 = arith.constant 0 : i32
    return %c0_i32, %c0_i32_0 : i32, i32
  }
  func.func @transform_5(%arg0: i32, %arg1: i32) -> (i32, i32) {
    %c0_i32 = arith.constant 0 : i32
    %c0_i32_0 = arith.constant 0 : i32
    %c0_i32_1 = arith.constant 0 : i32
    return %c0_i32, %c0_i32_0 : i32, i32
  }
  func.func @transform_6(%arg0: i32, %arg1: i32) -> (i32, i32) {
    %c0_i32 = arith.constant 0 : i32
    %c0_i32_0 = arith.constant 0 : i32
    %c0_i32_1 = arith.constant 0 : i32
    return %c0_i32, %c0_i32_0 : i32, i32
  }
  func.func @transform_7(%arg0: i32, %arg1: i32) -> (i32, i32) {
    %c0_i32 = arith.constant 0 : i32
    %c0_i32_0 = arith.constant 0 : i32
    %c0_i32_1 = arith.constant 0 : i32
    return %c0_i32, %c0_i32_0 : i32, i32
  }
  func.func @transform_8(%arg0: i32, %arg1: i32) -> (i32, i32) {
    %c0_i32 = arith.constant 0 : i32
    %c0_i32_0 = arith.constant 0 : i32
    %c0_i32_1 = arith.constant 0 : i32
    return %c0_i32, %c0_i32_0 : i32, i32
  }
  func.func @transform_9(%arg0: i32, %arg1: i32) -> (i32, i32) {
    %c0_i32 = arith.constant 0 : i32
    %c0_i32_0 = arith.constant 0 : i32
    return %arg0, %c0_i32 : i32, i32
  }
  func.func @transform_10(%arg0: i32, %arg1: i32) -> (i32, i32) {
    %c0_i32 = arith.constant 0 : i32
    %c0_i32_0 = arith.constant 0 : i32
    return %arg0, %c0_i32 : i32, i32
  }
}

</mosaic_0001>

<bundles_post_ra>
// kernel: fcnn_forward.1
= control target key start
LH: loop header
LB: loop body
LE: loop exit
PB: predicated region body
PF: predicated region fallthrough
CT: control target
= control target key end

     0   :  { %16 = vsyncpa [#allocation4], 0  ;;  %s12138_s0 = inlined_call_operand.vmem [shape: f32[2,49152], index: 0, kind: input, shape index: {}]   ;;  %s12139_s1 = inlined_call_operand.hbm [shape: f32[49152,64], index: 1, kind: input, shape index: {}]   ;;  %s12140_s2 = inlined_call_operand.vmem [shape: f32[1,64], index: 2, kind: input, shape index: {}]   ;;  %s12141_s3 = inlined_call_operand.vmem [shape: f32[64,64], index: 3, kind: input, shape index: {}]   ;;  %s12142_s4 = inlined_call_operand.vmem [shape: f32[1,64], index: 4, kind: input, shape index: {}]   ;;  %s12143_s5 = inlined_call_operand.vmem [shape: f32[64,64], index: 5, kind: input, shape index: {}]   ;;  %s12144_s6 = inlined_call_operand.vmem [shape: f32[1,64], index: 6, kind: input, shape index: {}]   ;;  %s12145_s7 = inlined_call_operand.vmem [shape: f32[64,35], index: 7, kind: input, shape index: {}]   ;;  %s12146_s8 = inlined_call_operand.vmem [shape: f32[1,35], index: 8, kind: input, shape index: {}]   ;;  %s12147_s9 = inlined_call_operand.hbm [shape: f32[2,35], index: 9, kind: output, shape index: {0}]   ;;  %s12148_s10 = inlined_call_operand.hbm [shape: f32[2,35], index: 10, kind: output, shape index: {1}]  }
   0x1   :  { %18 = vsyncpa [#allocation4 + $0x1], 0 }
   0x2   :  { %19 = vsyncpa [#allocation5], 0 }
   0x3   :  { %20 = vsyncpa [#allocation8], 0  ;;  %s9962_s13 = smov 0   ;;  %s9964_s14 = smov 0  }
   0x4   :  { %s9966_s15 = smov 0   ;;  %s9968_s16 = smov 0  }
   0x5   :  { %s9970_s17 = smov 0   ;;  %s9972_s18 = smov 0  }
   0x6 LB: > { %s12149_s19 = sadd.s32 4294967295, %s9895_s18   ;;  %s35_s20 = sadd.s32 1, %s9891_s17  ;;  %s9895_s18 = sphi %s9972_s18, %s26_s18   ;;  %s9891_s17 = sphi %s9970_s17, %s12161_s17   ;;  %s9887_s16 = sphi %s9968_s16, %s12160_s16   ;;  %s9883_s15 = sphi %s9966_s15, %s12159_s15   ;;  %s9879_s14 = sphi %s9964_s14, %s12158_s14   ;;  %s9875_s13 = sphi %s9962_s13, %s12157_s13  }
   0x7   : > { %p36_p0 = scmp.ge.s32.totalorder %s35_s20, 4  ;;  %s73_s21 = sadd.s32 1, %s9883_s15 }
   0x8   : > { %p80_p1 = scmp.ne.s32.totalorder %s9883_s15, %s9879_s14  ;;  %p81_p2 = scmp.eq.s32.totalorder %s9895_s18, 0 }
   0x9   : > { %s12163_s20 = smov (%p36_p0, %s35_s20), 0  ;;  %p86_p4 = scmp.ne.s32.totalorder %s9879_s14, %s9875_s13 }
   0xa   : > { %12151 = sst [smem:[#allocation12_spill]] %s12163_s20  ;;  %p82_p3 = por %p81_p2, %p80_p1 }
   0xb   : > { %s70_s22 = ssub.s32 %s9891_s17, %s12163_s20  ;;  %p87_p5 = scmp.eq.s32.totalorder %s12149_s19, 0 }
   0xc   : > { %p71_p6 = scmp.eq.s32.totalorder %s70_s22, 0  ;;  %p9665_p8 = scmp.lt.s32.totalorder %s9895_s18, 4 }
   0xd   : > { %p10003_p7 = por %p87_p5, %p86_p4  ;;  %s343_s25 = sand.u32 1, %s9883_s15  }
   0xe   : > { %s10009_s24 = scalar_select %p71_p6, %s9883_s15, %s73_s21  }
   0xf   : > { %s6312_s26 = smul.u32 196608, %s9891_s17  ;;  %p10018_p9 = pnand %p9665_p8, %p82_p3 }
  0x10   : > { %s9649_s27 = smul.u32 12288, %s343_s25  ;;  %s10024_s21 = scalar_lea.sflag [#allocation4], %s343_s25 }
  0x11   : > { %s10016_s30 = scalar_lea.hbm %s12139_s1, %s6312_s26  ;;  %p9757_p11 = pneg %p10018_p9 }
  0x12   : > { %s347_s12 = scalar_lea.vmem [#allocation3], %s9649_s27  ;;  %s9755_s22 = scalar_lea.hbm %s10016_s30, 196608 }
  0x13   : > { %s354_s13 = sshll.u32 %s347_s12, 4  ;;  %p9756_p10 = scmp.ne.s32.totalorder %s10016_s30, %s9755_s22  ;;  %s10022_s13 = int_to_ptr.vmem [resolvable:$true] %s354_s13 }
  0x14   : > { %s9760_s29 = scalar_lea.hbm %s12139_s1, 786432  ;;  %p9761_p0 = scmp.lt.u32.totalorder %s10016_s30, %s12139_s1 }
  0x15   : > { %p9758_p12 = pnand %p9757_p11, %p9756_p10  ;;  %p9762_p1 = scmp.lt.u32.totalorder %s9760_s29, %s9755_s22 }
  0x16   : > { %p9764_p3 = scmp.lt.u32.totalorder %s9755_s22, %s10016_s30 }
  0x17   : > { %p9759_p13 = pneg %p9758_p12  ;;  %p9763_p2 = por %p9762_p1, %p9761_p0 }
  0x19   : > { %p9765_p4 = por %p9764_p3, %p9763_p2 }
  0x1b   : > { %p9766_p5 = pnand %p9765_p4, %p9759_p13 }
  0x1d   : > { %9769 = shalt.err (!%p9766_p5)
}
  0x1e   : > { %s9770_s25 = scalar_lea.vmem %s10022_s13, 196608  ;;  %s9897_s27 = smov [#allocation3]  }
  0x1f   : > { %p9771_p6 = scmp.ne.s32.totalorder %s10022_s13, %s9770_s25  ;;  %s9775_s12 = sshll.u32 %s9897_s27, 4  ;;  %s9776_s12 = int_to_ptr.vmem [resolvable:$false] %s9775_s12 }
  0x20   : > { %s9777_s19 = scalar_lea.vmem %s9776_s12, 393216  ;;  %p9778_p12 = scmp.lt.s32.totalorder %s10022_s13, %s9776_s12 }
  0x21   : > { %p9773_p8 = pnand %p9771_p6, %p9757_p11  ;;  %p9779_p0 = scmp.lt.s32.totalorder %s9777_s19, %s9770_s25 }
  0x23   : > { %p9774_p10 = pneg %p9773_p8  ;;  %p9780_p1 = por %p9779_p0, %p9778_p12 }
  0x25   : > { %p9781_p2 = pnand %p9780_p1, %p9774_p10 }
  0x27   : > { %9784 = shalt.err (!%p9781_p2)
}
  0x28   : > { %s9898_s20 = smov 128   ;;  %s9899_s22 = smov 8  }
  0x29   : > { %9664 = dma.hbm_to_vmem [thread:$0]  (!%p10018_p9), %s10016_s30, 196608, %s10022_s13, %s10024_s21, %s9898_s20, %s9898_s20, %s9899_s22  }
  0x2a   : > { %p6295_p11 = scmp.ge.s32.totalorder %s9895_s18, 1  ;;  %p362_p13 = scmp.lt.s32.totalorder %s9895_s18, 5 }
  0x2c   : > { %p363_p3 = pnand %p6295_p11, %p362_p13 }
  0x2d   : > { %s368_s26 = sand.u32 (!%p363_p3), 1, %s9879_s14  }
  0x2e   : > { %366 = sbr.rel (%p363_p3) target bundleno = 2077 (0x81d), region = 56  ;;  %s369_s29 = scalar_lea.sflag (!%p363_p3), [#allocation4], %s368_s26 }
  0x2f   : > { %s9650_s28 = smul.u32 (!%p363_p3), 12288, %s368_s26 }
  0x31   : > { %s10055_s25 = scalar_lea.vmem (!%p363_p3), [#allocation3], %s9650_s28 }
  0x35   : > { %9862 = dma.done.wait (%p10003_p7), %s369_s29, 196608  }
  0x36   : > { %9864 = vsyncadd (%p10003_p7), %s369_s29, 4294770688  ;;  %s413_s27 = smul.u32 96, %s9887_s16  ;;  %p6297_p9 = scmp.ne.s32.totalorder %s9887_s16, 0 }
  0x37   : > { %vm428_vm0 = vcmask (!%p6297_p9), 517120   ;;  %v9900_v0 = vmov (!%p6297_p9), 0.0  }
  0x38   : > { %p416_p4 = scmp.lt.s32.totalorder %s413_s27, 383  ;;  %427 = sbr.rel (%p6297_p9) target bundleno = 63 (0x3f), region = 64  ;;  %429 = vst.msk [vmem:[#allocation2] sm:$0x3] (!%p6297_p9), %vm428_vm0, %v9900_v0 }
  0x3a   : > { %s12165_s27 = smov (!%p416_p4, %s413_s27), 383 }
  0x3b   : > { %s6296_s30 = sshll.u32 %s12165_s27, 1 }
  0x3c   : > { %s10065_s21 = scalar_lea.vmem %s12138_s0, %s6296_s30 }
  0x3f PF: > { %v471_v1 = vld [vmem:[%s10055_s25 + $0x80] sm:$0xff]  ;;  %v472_v2 = vld [vmem:[%s10055_s25 + $0x88] sm:$0xff]  ;;  %v473_v12 = vld [vmem:[%s10055_s25 + $0x90] sm:$0xff]  ;;  %v9901_v48 = vmov 1983009808   ;;  %v2019_v50 = vlaneseq  ;;  %vm5880_vm1 = vcmask 517120  }
  0x40   : > { %v503_v3 = vld [vmem:[%s10055_s25 + $0x180] sm:$0xff]  ;;  %v8077_v4 = vpack.c.bf16 %v472_v2, %v471_v1  ;;  %v504_v5 = vld [vmem:[%s10055_s25 + $0x188] sm:$0xff]  ;;  %v474_v14 = vld [vmem:[%s10055_s25 + $0x98] sm:$0xff]  ;;  %v2017_v49 = vunpack.c.l.s4 %v9901_v48  ;;  %p6298_p7 = scmp.ne.s32.totalorder %s9887_s16, 3 }
  0x41   : > { %v455_v6 = vld [vmem:[%s10055_s25] sm:$0xff]  ;;  %v456_v7 = vld [vmem:[%s10055_s25 + $0x8] sm:$0xff]  ;;  %v8109_v8 = vpack.c.bf16 %v504_v5, %v503_v3  ;;  %v505_v15 = vld [vmem:[%s10055_s25 + $0x190] sm:$0xff]  ;;  %v8081_v17 = vpack.c.bf16 %v474_v14, %v473_v12  ;;  %v2020_v1 = vshrl.u32 %v2019_v50, 7  ;;  %vm9903_vm2 = vmmov (!%p6298_p7), 0  }
  0x42   : > { %v8079_v9 = vpack.c.bf16 %v456_v7, %v455_v6  ;;  %v487_v10 = vld [vmem:[%s10055_s25 + $0x100] sm:$0xff]  ;;  %v488_v11 = vld [vmem:[%s10055_s25 + $0x108] sm:$0xff]  ;;  %8078 = vmatprep.subr.bf16.mxu0 %v8077_v4  ;;  %v506_v16 = vld [vmem:[%s10055_s25 + $0x198] sm:$0xff]  ;;  %v2018_v0 = vunpack.c.0.s8 %v2017_v49  ;;  %vm5911_vm3 = vcmask (!%p6298_p7), 523264   ;;  %vm6163_vm4 = vcmask (!%p6298_p7), 279552  }
  0x43   : > { %v8111_v13 = vpack.c.bf16 %v488_v11, %v487_v10  ;;  %8110 = vmatprep.subr.bf16.mxu1 %v8109_v8  ;;  %v8113_v18 = vpack.c.bf16 %v506_v16, %v505_v15  ;;  %v457_v19 = vld [vmem:[%s10055_s25 + $0x10] sm:$0xff]  ;;  %v458_v20 = vld [vmem:[%s10055_s25 + $0x18] sm:$0xff]  ;;  %v475_v24 = vld [vmem:[%s10055_s25 + $0xa0] sm:$0xff] }
  0x44   : > { %8080 = vmatpush3.bf16.msra.mxu0 %v8079_v9  ;;  %v489_v21 = vld [vmem:[%s10055_s25 + $0x110] sm:$0xff]  ;;  %v8083_v22 = vpack.c.bf16 %v458_v20, %v457_v19  ;;  %v490_v23 = vld [vmem:[%s10055_s25 + $0x118] sm:$0xff]  ;;  %v476_v25 = vld [vmem:[%s10055_s25 + $0xa8] sm:$0xff]  ;;  %v10118_v14 = vsub.s32 %v2018_v0, %v2020_v1 }
  0x45   : > { %8112 = vmatpush3.bf16.msra.mxu1 %v8111_v13  ;;  %8082 = vmatprep.subr.bf16.mxu0 %v8081_v17  ;;  %v8115_v26 = vpack.c.bf16 %v490_v23, %v489_v21  ;;  %v8085_v27 = vpack.c.bf16 %v476_v25, %v475_v24  ;;  %v507_v28 = vld [vmem:[%s10055_s25 + $0x1a0] sm:$0xff]  ;;  %v508_v29 = vld [vmem:[%s10055_s25 + $0x1a8] sm:$0xff]  ;;  %v477_v36 = vld [vmem:[%s10055_s25 + $0xb0] sm:$0xff] }
  0x46   : > { %8114 = vmatprep.subr.bf16.mxu1 %v8113_v18  ;;  %v459_v30 = vld [vmem:[%s10055_s25 + $0x20] sm:$0xff]  ;;  %v8117_v31 = vpack.c.bf16 %v508_v29, %v507_v28  ;;  %v460_v32 = vld [vmem:[%s10055_s25 + $0x28] sm:$0xff]  ;;  %v478_v37 = vld [vmem:[%s10055_s25 + $0xb8] sm:$0xff] }
  0x47   : > { %v491_v33 = vld [vmem:[%s10055_s25 + $0x120] sm:$0xff]  ;;  %v492_v34 = vld [vmem:[%s10055_s25 + $0x128] sm:$0xff]  ;;  %v8087_v35 = vpack.c.bf16 %v460_v32, %v459_v30  ;;  %v509_v38 = vld [vmem:[%s10055_s25 + $0x1b0] sm:$0xff]  ;;  %v8089_v40 = vpack.c.bf16 %v478_v37, %v477_v36 }
  0x48   : > { %8084 = vmatpush3.bf16.msra.mxu0 %v8083_v22  ;;  %v8119_v39 = vpack.c.bf16 %v492_v34, %v491_v33  ;;  %v510_v41 = vld [vmem:[%s10055_s25 + $0x1b8] sm:$0xff]  ;;  %v461_v42 = vld [vmem:[%s10055_s25 + $0x30] sm:$0xff]  ;;  %v479_v47 = vld [vmem:[%s10055_s25 + $0xc0] sm:$0xff] }
  0x49   : > { %8116 = vmatpush3.bf16.msra.mxu1 %v8115_v26  ;;  %8086 = vmatprep.subr.bf16.mxu0 %v8085_v27  ;;  %v462_v43 = vld [vmem:[%s10055_s25 + $0x38] sm:$0xff]  ;;  %v8121_v44 = vpack.c.bf16 %v510_v41, %v509_v38  ;;  %v493_v45 = vld [vmem:[%s10055_s25 + $0x130] sm:$0xff]  ;;  %v480_v51 = vld [vmem:[%s10055_s25 + $0xc8] sm:$0xff] }
  0x4a   : > { %8118 = vmatprep.subr.bf16.mxu1 %v8117_v31  ;;  %v494_v46 = vld [vmem:[%s10055_s25 + $0x138] sm:$0xff]  ;;  %v511_v52 = vld [vmem:[%s10055_s25 + $0x1c0] sm:$0xff]  ;;  %v512_v53 = vld [vmem:[%s10055_s25 + $0x1c8] sm:$0xff]  ;;  %v8091_v54 = vpack.c.bf16 %v462_v43, %v461_v42  ;;  %v8093_v56 = vpack.c.bf16 %v480_v51, %v479_v47 }
  0x4b   : > { %v8123_v55 = vpack.c.bf16 %v494_v46, %v493_v45  ;;  %v463_v57 = vld [vmem:[%s10055_s25 + $0x40] sm:$0xff]  ;;  %v464_v58 = vld [vmem:[%s10055_s25 + $0x48] sm:$0xff]  ;;  %v8125_v60 = vpack.c.bf16 %v512_v53, %v511_v52  ;;  %v481_v62 = vld [vmem:[%s10055_s25 + $0xd0] sm:$0xff] }
  0x4c   : > { %8088 = vmatpush3.bf16.msra.mxu0 %v8087_v35  ;;  %v495_v59 = vld [vmem:[%s10055_s25 + $0x140] sm:$0xff]  ;;  %v496_v61 = vld [vmem:[%s10055_s25 + $0x148] sm:$0xff]  ;;  %v482_v63 = vld [vmem:[%s10055_s25 + $0xd8] sm:$0xff]  ;;  %v8095_v4 = vpack.c.bf16 %v464_v58, %v463_v57 }
  0x4d   : > { %8120 = vmatpush3.bf16.msra.mxu1 %v8119_v39  ;;  %8090 = vmatprep.subr.bf16.mxu0 %v8089_v40  ;;  %v513_v2 = vld [vmem:[%s10055_s25 + $0x1d0] sm:$0xff]  ;;  %v514_v3 = vld [vmem:[%s10055_s25 + $0x1d8] sm:$0xff]  ;;  %v8127_v5 = vpack.c.bf16 %v496_v61, %v495_v59  ;;  %v8097_v6 = vpack.c.bf16 %v482_v63, %v481_v62  ;;  %v483_v12 = vld [vmem:[%s10055_s25 + $0xe0] sm:$0xff] }
  0x4e   : > { %8122 = vmatprep.subr.bf16.mxu1 %v8121_v44  ;;  %v465_v7 = vld [vmem:[%s10055_s25 + $0x50] sm:$0xff]  ;;  %v466_v8 = vld [vmem:[%s10055_s25 + $0x58] sm:$0xff]  ;;  %v8129_v10 = vpack.c.bf16 %v514_v3, %v513_v2  ;;  %v484_v13 = vld [vmem:[%s10055_s25 + $0xe8] sm:$0xff] }
  0x4f   : > { %v497_v9 = vld [vmem:[%s10055_s25 + $0x150] sm:$0xff]  ;;  %v498_v11 = vld [vmem:[%s10055_s25 + $0x158] sm:$0xff]  ;;  %v515_v15 = vld [vmem:[%s10055_s25 + $0x1e0] sm:$0xff]  ;;  %v8099_v17 = vpack.c.bf16 %v466_v8, %v465_v7  ;;  %v8101_v20 = vpack.c.bf16 %v484_v13, %v483_v12 }
  0x50   : > { %8092 = vmatpush3.bf16.msra.mxu0 %v8091_v54  ;;  %v516_v16 = vld [vmem:[%s10055_s25 + $0x1e8] sm:$0xff]  ;;  %v467_v18 = vld [vmem:[%s10055_s25 + $0x60] sm:$0xff]  ;;  %v8131_v19 = vpack.c.bf16 %v498_v11, %v497_v9  ;;  %v485_v26 = vld [vmem:[%s10055_s25 + $0xf0] sm:$0xff] }
  0x51   : > { %8124 = vmatpush3.bf16.msra.mxu1 %v8123_v55  ;;  %8094 = vmatprep.subr.bf16.mxu0 %v8093_v56  ;;  %v468_v21 = vld [vmem:[%s10055_s25 + $0x68] sm:$0xff]  ;;  %v499_v22 = vld [vmem:[%s10055_s25 + $0x160] sm:$0xff]  ;;  %v8133_v24 = vpack.c.bf16 %v516_v16, %v515_v15  ;;  %v486_v27 = vld [vmem:[%s10055_s25 + $0xf8] sm:$0xff] }
  0x52   : > { %8126 = vmatprep.subr.bf16.mxu1 %v8125_v60  ;;  %v431_v23 = vld [vmem:[%s10065_s21] sm:$0xff]  ;;  %v500_v25 = vld [vmem:[%s10055_s25 + $0x168] sm:$0xff]  ;;  %v517_v30 = vld [vmem:[%s10055_s25 + $0x1f0] sm:$0xff]  ;;  %v8103_v32 = vpack.c.bf16 %v468_v21, %v467_v18  ;;  %v8105_v36 = vpack.c.bf16 %v486_v27, %v485_v26 }
  0x53   : > { %v2022_v28 = vrot.slane %v431_v23, %v10118_v14  ;;  %v2015_v29 = vcombine.high %v431_v23, %v431_v23  ;;  %v518_v31 = vld [vmem:[%s10055_s25 + $0x1f8] sm:$0xff]  ;;  %v8135_v35 = vpack.c.bf16 %v500_v25, %v499_v22  ;;  %v469_v37 = vld [vmem:[%s10055_s25 + $0x70] sm:$0xff]  ;;  %v535_v43 = vld [vmem:[%s10055_s25 + $0x280] sm:$0xff] }
  0x54   : > { %8096 = vmatpush3.bf16.msra.mxu0 %v8095_v4  ;;  %v470_v38 = vld [vmem:[%s10055_s25 + $0x78] sm:$0xff]  ;;  %v501_v39 = vld [vmem:[%s10055_s25 + $0x170] sm:$0xff]  ;;  %v8137_v40 = vpack.c.bf16 %v518_v31, %v517_v30  ;;  %v536_v44 = vld [vmem:[%s10055_s25 + $0x288] sm:$0xff] }
  0x55   : > { %8128 = vmatpush3.bf16.msra.mxu1 %v8127_v5  ;;  %8098 = vmatprep.subr.bf16.mxu0 %v8097_v6  ;;  %v2030_v33 = vcombine.high %v2022_v28, %v2022_v28  ;;  %v2029_v34 = vrot.slane %v2015_v29, %v10118_v14  ;;  %v502_v41 = vld [vmem:[%s10055_s25 + $0x178] sm:$0xff]  ;;  %v567_v45 = vld [vmem:[%s10055_s25 + $0x380] sm:$0xff]  ;;  %v568_v46 = vld [vmem:[%s10055_s25 + $0x388] sm:$0xff]  ;;  %v8107_v47 = vpack.c.bf16 %v470_v38, %v469_v37 }
  0x56   : > { %8130 = vmatprep.subr.bf16.mxu1 %v8129_v10  ;;  %v8139_v48 = vpack.c.bf16 %v502_v41, %v501_v39  ;;  %v8141_v49 = vpack.c.bf16 %v536_v44, %v535_v43  ;;  %v519_v50 = vld [vmem:[%s10055_s25 + $0x200] sm:$0xff]  ;;  %v520_v51 = vld [vmem:[%s10055_s25 + $0x208] sm:$0xff]  ;;  %v8173_v53 = vpack.c.bf16 %v568_v46, %v567_v45  ;;  %v537_v55 = vld [vmem:[%s10055_s25 + $0x290] sm:$0xff] }
  0x57   : > { %2583 = vmatprep.mubr.f32.mxu0 %v2030_v33  ;;  %v2031_v42 = vcombine.high %v2029_v34, %v2029_v34  ;;  %v551_v52 = vld [vmem:[%s10055_s25 + $0x300] sm:$0xff]  ;;  %v552_v54 = vld [vmem:[%s10055_s25 + $0x308] sm:$0xff]  ;;  %v538_v56 = vld [vmem:[%s10055_s25 + $0x298] sm:$0xff]  ;;  %v8143_v59 = vpack.c.bf16 %v520_v51, %v519_v50 }
  0x58   : > { %8100 = vmatpush3.bf16.msra.mxu0 %v8099_v17  ;;  %v569_v57 = vld [vmem:[%s10055_s25 + $0x390] sm:$0xff]  ;;  %v570_v58 = vld [vmem:[%s10055_s25 + $0x398] sm:$0xff]  ;;  %v8175_v60 = vpack.c.bf16 %v552_v54, %v551_v52  ;;  %v8145_v61 = vpack.c.bf16 %v538_v56, %v537_v55  ;;  %v539_v3 = vld [vmem:[%s10055_s25 + $0x2a0] sm:$0xff] }
  0x59   : > { %8132 = vmatpush3.bf16.msra.mxu1 %v8131_v19  ;;  %8102 = vmatprep.subr.bf16.mxu0 %v8101_v20  ;;  %v521_v62 = vld [vmem:[%s10055_s25 + $0x210] sm:$0xff]  ;;  %v522_v63 = vld [vmem:[%s10055_s25 + $0x218] sm:$0xff]  ;;  %v8177_v1 = vpack.c.bf16 %v570_v58, %v569_v57  ;;  %v540_v4 = vld [vmem:[%s10055_s25 + $0x2a8] sm:$0xff] }
  0x5a   : > { %8134 = vmatprep.subr.bf16.mxu1 %v8133_v24  ;;  %2653 = vmatprep.mubr.f32.mxu1 %v2031_v42  ;;  %v553_v0 = vld [vmem:[%s10055_s25 + $0x310] sm:$0xff]  ;;  %v554_v2 = vld [vmem:[%s10055_s25 + $0x318] sm:$0xff]  ;;  %v571_v5 = vld [vmem:[%s10055_s25 + $0x3a0] sm:$0xff]  ;;  %v8147_v7 = vpack.c.bf16 %v522_v63, %v521_v62  ;;  %v8149_v9 = vpack.c.bf16 %v540_v4, %v539_v3 }
  0x5b   : > { %v572_v6 = vld [vmem:[%s10055_s25 + $0x3a8] sm:$0xff]  ;;  %v8179_v8 = vpack.c.bf16 %v554_v2, %v553_v0  ;;  %v523_v10 = vld [vmem:[%s10055_s25 + $0x220] sm:$0xff]  ;;  %v541_v16 = vld [vmem:[%s10055_s25 + $0x2b0] sm:$0xff] }
  0x5c   : > { %8104 = vmatpush3.bf16.msra.mxu0 %v8103_v32  ;;  %v524_v11 = vld [vmem:[%s10055_s25 + $0x228] sm:$0xff]  ;;  %v555_v12 = vld [vmem:[%s10055_s25 + $0x320] sm:$0xff]  ;;  %v8181_v13 = vpack.c.bf16 %v572_v6, %v571_v5  ;;  %v542_v17 = vld [vmem:[%s10055_s25 + $0x2b8] sm:$0xff] }
  0x5d   : > { %8136 = vmatpush3.bf16.msra.mxu1 %v8135_v35  ;;  %8106 = vmatprep.subr.bf16.mxu0 %v8105_v36  ;;  %v556_v15 = vld [vmem:[%s10055_s25 + $0x328] sm:$0xff]  ;;  %v573_v18 = vld [vmem:[%s10055_s25 + $0x3b0] sm:$0xff]  ;;  %v574_v19 = vld [vmem:[%s10055_s25 + $0x3b8] sm:$0xff]  ;;  %v8151_v20 = vpack.c.bf16 %v524_v11, %v523_v10  ;;  %v8153_v22 = vpack.c.bf16 %v542_v17, %v541_v16 }
  0x5e   : > { %8138 = vmatprep.subr.bf16.mxu1 %v8137_v40  ;;  %v8183_v21 = vpack.c.bf16 %v556_v15, %v555_v12  ;;  %v525_v23 = vld [vmem:[%s10055_s25 + $0x230] sm:$0xff]  ;;  %v526_v24 = vld [vmem:[%s10055_s25 + $0x238] sm:$0xff]  ;;  %v8185_v26 = vpack.c.bf16 %v574_v19, %v573_v18  ;;  %v544_v29 = vld [vmem:[%s10055_s25 + $0x2c8] sm:$0xff] }
  0x5f   : > { %v557_v25 = vld [vmem:[%s10055_s25 + $0x330] sm:$0xff]  ;;  %v558_v27 = vld [vmem:[%s10055_s25 + $0x338] sm:$0xff]  ;;  %v575_v30 = vld [vmem:[%s10055_s25 + $0x3c0] sm:$0xff]  ;;  %v8155_v33 = vpack.c.bf16 %v526_v24, %v525_v23 }
  0x60   : > { %8108 = vmatpush3.bf16.msra.mxu0 %v8107_v47  ;;  %v576_v31 = vld [vmem:[%s10055_s25 + $0x3c8] sm:$0xff]  ;;  %v8187_v36 = vpack.c.bf16 %v558_v27, %v557_v25  ;;  %v527_v38 = vld [vmem:[%s10055_s25 + $0x240] sm:$0xff]  ;;  %v545_v43 = vld [vmem:[%s10055_s25 + $0x2d0] sm:$0xff] }
  0x61   : > { %8140 = vmatpush3.bf16.msra.mxu1 %v8139_v48  ;;  %8142 = vmatprep.subr.bf16.mxu0 %v8141_v49  ;;  %v432_v32 = vld [vmem:[%s10065_s21 + $0x8] sm:$0xff]  ;;  %v8189_v41 = vpack.c.bf16 %v576_v31, %v575_v30  ;;  %v546_v44 = vld [vmem:[%s10055_s25 + $0x2d8] sm:$0xff]  ;;  %v577_v47 = vld [vmem:[%s10055_s25 + $0x3d0] sm:$0xff] }
  0x62   : > { %8174 = vmatprep.subr.bf16.mxu1 %v8173_v53  ;;  %v2032_v35 = vcombine.high %v432_v32, %v432_v32  ;;  %v528_v39 = vld [vmem:[%s10055_s25 + $0x248] sm:$0xff]  ;;  %v559_v40 = vld [vmem:[%s10055_s25 + $0x340] sm:$0xff]  ;;  %v578_v48 = vld [vmem:[%s10055_s25 + $0x3d8] sm:$0xff]  ;;  %v8161_v52 = vpack.c.bf16 %v546_v44, %v545_v43 }
  0x63   : > { %2584 = vmatmul.mubr.f32.vlgmr.msra.gmra.mrb[0].mxu0 %v2022_v28  ;;  %v543_v28 = vld [vmem:[%s10055_s25 + $0x2c0] sm:$0xff]  ;;  %v560_v42 = vld [vmem:[%s10055_s25 + $0x348] sm:$0xff]  ;;  %v8159_v49 = vpack.c.bf16 %v528_v39, %v527_v38  ;;  %v529_v53 = vld [vmem:[%s10055_s25 + $0x250] sm:$0xff]  ;;  %v8193_v56 = vpack.c.bf16 %v578_v48, %v577_v47 }
  0x64   : > { %2654 = vmatmul.mubr.f32.vlgmr.msra.gmra.mrb[0].mxu1 %v2029_v34  ;;  %8144 = vmatpush3.bf16.msra.mxu0 %v8143_v59  ;;  %v10175_v34 = vrot.slane %v432_v32, %v10118_v14  ;;  %v8157_v37 = vpack.c.bf16 %v544_v29, %v543_v28  ;;  %v10186_v46 = vrot.slane %v2032_v35, %v10118_v14  ;;  %v530_v54 = vld [vmem:[%s10055_s25 + $0x258] sm:$0xff]  ;;  %v561_v55 = vld [vmem:[%s10055_s25 + $0x350] sm:$0xff]  ;;  %v547_v58 = vld [vmem:[%s10055_s25 + $0x2e0] sm:$0xff] }
  0x65   : > { %8176 = vmatpush3.bf16.msra.mxu1 %v8175_v60  ;;  %8146 = vmatprep.subr.bf16.mxu0 %v8145_v61  ;;  %v8191_v51 = vpack.c.bf16 %v560_v42, %v559_v40  ;;  %v562_v57 = vld [vmem:[%s10055_s25 + $0x358] sm:$0xff]  ;;  %v548_v59 = vld [vmem:[%s10055_s25 + $0x2e8] sm:$0xff]  ;;  %v579_v60 = vld [vmem:[%s10055_s25 + $0x3e0] sm:$0xff]  ;;  %v8163_v62 = vpack.c.bf16 %v530_v54, %v529_v53 }
  0x66   : > { %8178 = vmatprep.subr.bf16.mxu1 %v8177_v1  ;;  %v2047_v45 = vcombine.high %v10175_v34, %v10175_v34  ;;  %v2048_v50 = vcombine.high %v10186_v46, %v10186_v46  ;;  %v580_v61 = vld [vmem:[%s10055_s25 + $0x3e8] sm:$0xff]  ;;  %v8195_v63 = vpack.c.bf16 %v562_v57, %v561_v55  ;;  %v8165_v0 = vpack.c.bf16 %v548_v59, %v547_v58  ;;  %v531_v1 = vld [vmem:[%s10055_s25 + $0x260] sm:$0xff]  ;;  %v549_v6 = vld [vmem:[%s10055_s25 + $0x2f0] sm:$0xff] }
  0x67   : > { %v532_v2 = vld [vmem:[%s10055_s25 + $0x268] sm:$0xff]  ;;  %v563_v3 = vld [vmem:[%s10055_s25 + $0x360] sm:$0xff]  ;;  %v8197_v4 = vpack.c.bf16 %v580_v61, %v579_v60  ;;  %v534_v15 = vld [vmem:[%s10055_s25 + $0x278] sm:$0xff] }
  0x68   : > { %8148 = vmatpush3.bf16.msra.mxu0 %v8147_v7  ;;  %2723 = vmatprep.mubr.f32.mxu0 %v2047_v45  ;;  %v564_v5 = vld [vmem:[%s10055_s25 + $0x368] sm:$0xff]  ;;  %v550_v7 = vld [vmem:[%s10055_s25 + $0x2f8] sm:$0xff]  ;;  %v8167_v10 = vpack.c.bf16 %v532_v2, %v531_v1  ;;  %v565_v16 = vld [vmem:[%s10055_s25 + $0x370] sm:$0xff] }
  0x69   : > { %8180 = vmatpush3.bf16.msra.mxu1 %v8179_v8  ;;  %8150 = vmatprep.subr.bf16.mxu0 %v8149_v9  ;;  %v581_v8 = vld [vmem:[%s10055_s25 + $0x3f0] sm:$0xff]  ;;  %v582_v9 = vld [vmem:[%s10055_s25 + $0x3f8] sm:$0xff]  ;;  %v8199_v11 = vpack.c.bf16 %v564_v5, %v563_v3  ;;  %v8169_v12 = vpack.c.bf16 %v550_v7, %v549_v6  ;;  %v599_v19 = vld [vmem:[%s10055_s25 + $0x480] sm:$0xff] }
  0x6a   : > { %8182 = vmatprep.subr.bf16.mxu1 %v8181_v13  ;;  %2793 = vmatprep.mubr.f32.mxu1 %v2048_v50  ;;  %v533_v13 = vld [vmem:[%s10055_s25 + $0x270] sm:$0xff]  ;;  %v8201_v17 = vpack.c.bf16 %v582_v9, %v581_v8  ;;  %v566_v18 = vld [vmem:[%s10055_s25 + $0x378] sm:$0xff]  ;;  %v583_v24 = vld [vmem:[%s10055_s25 + $0x400] sm:$0xff] }
  0x6b   : > { %v8171_v23 = vpack.c.bf16 %v534_v15, %v533_v13  ;;  %v8203_v25 = vpack.c.bf16 %v566_v18, %v565_v16  ;;  %v584_v27 = vld [vmem:[%s10055_s25 + $0x408] sm:$0xff]  ;;  %v615_v28 = vld [vmem:[%s10055_s25 + $0x500] sm:$0xff]  ;;  %v601_v31 = vld [vmem:[%s10055_s25 + $0x490] sm:$0xff] }
  0x6c   : > { %8152 = vmatpush3.bf16.msra.mxu0 %v8151_v20  ;;  %v600_v20 = vld [vmem:[%s10055_s25 + $0x488] sm:$0xff]  ;;  %v602_v32 = vld [vmem:[%s10055_s25 + $0x498] sm:$0xff]  ;;  %v585_v40 = vld [vmem:[%s10055_s25 + $0x410] sm:$0xff] }
  0x6d   : > { %8184 = vmatpush3.bf16.msra.mxu1 %v8183_v21  ;;  %8154 = vmatprep.subr.bf16.mxu0 %v8153_v22  ;;  %v631_v21 = vld [vmem:[%s10055_s25 + $0x580] sm:$0xff]  ;;  %v632_v22 = vld [vmem:[%s10055_s25 + $0x588] sm:$0xff]  ;;  %v634_v35 = vld [vmem:[%s10055_s25 + $0x598] sm:$0xff]  ;;  %v8209_v39 = vpack.c.bf16 %v602_v32, %v601_v31 }
  0x6e   : > { %8186 = vmatprep.subr.bf16.mxu1 %v8185_v26  ;;  %v8205_v26 = vpack.c.bf16 %v600_v20, %v599_v19  ;;  %v616_v29 = vld [vmem:[%s10055_s25 + $0x508] sm:$0xff]  ;;  %v8237_v30 = vpack.c.bf16 %v632_v22, %v631_v21  ;;  %v617_v42 = vld [vmem:[%s10055_s25 + $0x510] sm:$0xff]  ;;  %v618_v47 = vld [vmem:[%s10055_s25 + $0x518] sm:$0xff] }
  0x6f   : > { %v433_v38 = vld [vmem:[%s10065_s21 + $0x10] sm:$0xff]  ;;  %v603_v48 = vld [vmem:[%s10055_s25 + $0x4a0] sm:$0xff]  ;;  %v590_v5 = vld [vmem:[%s10055_s25 + $0x438] sm:$0xff] }
  0x70   : > { %8156 = vmatpush3.bf16.msra.mxu0 %v8155_v33  ;;  %v633_v33 = vld [vmem:[%s10055_s25 + $0x590] sm:$0xff]  ;;  %v10229_v43 = vrot.slane %v433_v38, %v10118_v14  ;;  %v2049_v44 = vcombine.high %v433_v38, %v433_v38  ;;  %v635_v50 = vld [vmem:[%s10055_s25 + $0x5a0] sm:$0xff]  ;;  %v588_v57 = vld [vmem:[%s10055_s25 + $0x428] sm:$0xff] }
  0x71   : > { %8188 = vmatpush3.bf16.msra.mxu1 %v8187_v36  ;;  %8158 = vmatprep.subr.bf16.mxu0 %v8157_v37  ;;  %v8207_v36 = vpack.c.bf16 %v584_v27, %v583_v24  ;;  %v8239_v37 = vpack.c.bf16 %v616_v29, %v615_v28  ;;  %v8241_v45 = vpack.c.bf16 %v634_v35, %v633_v33  ;;  %v619_v58 = vld [vmem:[%s10055_s25 + $0x520] sm:$0xff]  ;;  %v620_v61 = vld [vmem:[%s10055_s25 + $0x528] sm:$0xff]  ;;  %v621_v6 = vld [vmem:[%s10055_s25 + $0x530] sm:$0xff] }
  0x72   : > { %8190 = vmatprep.subr.bf16.mxu1 %v8189_v41  ;;  %v586_v41 = vld [vmem:[%s10055_s25 + $0x418] sm:$0xff]  ;;  %v10240_v53 = vrot.slane %v2049_v44, %v10118_v14  ;;  %v8247_v2 = vpack.c.bf16 %v620_v61, %v619_v58  ;;  %v607_v9 = vld [vmem:[%s10055_s25 + $0x4c0] sm:$0xff]  ;;  %v592_v18 = vld [vmem:[%s10055_s25 + $0x448] sm:$0xff] }
  0x73   : > { %v8211_v54 = vpack.c.bf16 %v586_v41, %v585_v40  ;;  %v622_v8 = vld [vmem:[%s10055_s25 + $0x538] sm:$0xff]  ;;  %v623_v19 = vld [vmem:[%s10055_s25 + $0x540] sm:$0xff]  ;;  %v624_v21 = vld [vmem:[%s10055_s25 + $0x548] sm:$0xff] }
  0x74   : > { %8160 = vmatpush3.bf16.msra.mxu0 %v8159_v49  ;;  %v604_v49 = vld [vmem:[%s10055_s25 + $0x4a8] sm:$0xff]  ;;  %v2065_v59 = vcombine.high %v10240_v53, %v10240_v53  ;;  %v8251_v15 = vpack.c.bf16 %v622_v8, %v621_v6  ;;  %v609_v22 = vld [vmem:[%s10055_s25 + $0x4d0] sm:$0xff]  ;;  %v8255_v27 = vpack.c.bf16 %v624_v21, %v623_v19  ;;  %v626_v33 = vld [vmem:[%s10055_s25 + $0x558] sm:$0xff] }
  0x75   : > { %8192 = vmatpush3.bf16.msra.mxu1 %v8191_v51  ;;  %8162 = vmatprep.subr.bf16.mxu0 %v8161_v52  ;;  %v636_v51 = vld [vmem:[%s10055_s25 + $0x5a8] sm:$0xff]  ;;  %v2064_v52 = vcombine.high %v10229_v43, %v10229_v43  ;;  %v8213_v55 = vpack.c.bf16 %v604_v49, %v603_v48  ;;  %v641_v24 = vld [vmem:[%s10055_s25 + $0x5d0] sm:$0xff]  ;;  %v611_v35 = vld [vmem:[%s10055_s25 + $0x4e0] sm:$0xff] }
  0x76   : > { %8194 = vmatprep.subr.bf16.mxu1 %v8193_v56  ;;  %v587_v56 = vld [vmem:[%s10055_s25 + $0x420] sm:$0xff]  ;;  %v8245_v60 = vpack.c.bf16 %v636_v51, %v635_v50  ;;  %v593_v29 = vld [vmem:[%s10055_s25 + $0x450] sm:$0xff]  ;;  %v644_v38 = vld [vmem:[%s10055_s25 + $0x5e8] sm:$0xff] }
  0x77   : > { %v8215_v1 = vpack.c.bf16 %v588_v57, %v587_v56  ;;  %v625_v31 = vld [vmem:[%s10055_s25 + $0x550] sm:$0xff]  ;;  %v596_v44 = vld [vmem:[%s10055_s25 + $0x468] sm:$0xff]  ;;  %v614_v50 = vld [vmem:[%s10055_s25 + $0x4f8] sm:$0xff] }
  0x78   : > { %8164 = vmatpush3.bf16.msra.mxu0 %v8163_v62  ;;  %v606_v62 = vld [vmem:[%s10055_s25 + $0x4b8] sm:$0xff]  ;;  %v8259_v40 = vpack.c.bf16 %v626_v33, %v625_v31  ;;  %v628_v48 = vld [vmem:[%s10055_s25 + $0x568] sm:$0xff]  ;;  %v613_v49 = vld [vmem:[%s10055_s25 + $0x4f0] sm:$0xff] }
  0x79   : > { %8196 = vmatpush3.bf16.msra.mxu1 %v8195_v63  ;;  %8166 = vmatprep.subr.bf16.mxu0 %v8165_v0  ;;  %v637_v63 = vld [vmem:[%s10055_s25 + $0x5b0] sm:$0xff]  ;;  %v638_v0 = vld [vmem:[%s10055_s25 + $0x5b8] sm:$0xff]  ;;  %v8233_v56 = vpack.c.bf16 %v614_v50, %v613_v49  ;;  %v648_v6 = vld [vmem:[%s10055_s25 + $0x608] sm:$0xff] }
  0x7a   : > { %8198 = vmatprep.subr.bf16.mxu1 %v8197_v4  ;;  %v589_v4 = vld [vmem:[%s10055_s25 + $0x430] sm:$0xff]  ;;  %v8249_v7 = vpack.c.bf16 %v638_v0, %v637_v63  ;;  %v598_v58 = vld [vmem:[%s10055_s25 + $0x478] sm:$0xff]  ;;  %v695_v63 = vld [vmem:[%s10055_s25 + $0x780] sm:$0xff] }
  0x7b   : > { %v8219_v13 = vpack.c.bf16 %v590_v5, %v589_v4  ;;  %v645_v51 = vld [vmem:[%s10055_s25 + $0x5f0] sm:$0xff]  ;;  %v630_v61 = vld [vmem:[%s10055_s25 + $0x578] sm:$0xff]  ;;  %v696_v0 = vld [vmem:[%s10055_s25 + $0x788] sm:$0xff] }
  0x7c   : > { %8168 = vmatpush3.bf16.msra.mxu0 %v8167_v10  ;;  %v608_v10 = vld [vmem:[%s10055_s25 + $0x4c8] sm:$0xff]  ;;  %v597_v57 = vld [vmem:[%s10055_s25 + $0x470] sm:$0xff]  ;;  %v647_v5 = vld [vmem:[%s10055_s25 + $0x600] sm:$0xff]  ;;  %v8301_v8 = vpack.c.bf16 %v696_v0, %v695_v63 }
  0x7d   : > { %8200 = vmatpush3.bf16.msra.mxu1 %v8199_v11  ;;  %8170 = vmatprep.subr.bf16.mxu0 %v8169_v12  ;;  %v639_v11 = vld [vmem:[%s10055_s25 + $0x5c0] sm:$0xff]  ;;  %v640_v12 = vld [vmem:[%s10055_s25 + $0x5c8] sm:$0xff]  ;;  %v8221_v16 = vpack.c.bf16 %v608_v10, %v607_v9  ;;  %v665_v10 = vld [vmem:[%s10055_s25 + $0x690] sm:$0xff] }
  0x7e   : > { %8202 = vmatprep.subr.bf16.mxu1 %v8201_v17  ;;  %v591_v17 = vld [vmem:[%s10055_s25 + $0x440] sm:$0xff]  ;;  %v8253_v20 = vpack.c.bf16 %v640_v12, %v639_v11  ;;  %v680_v9 = vld [vmem:[%s10055_s25 + $0x708] sm:$0xff]  ;;  %v666_v11 = vld [vmem:[%s10055_s25 + $0x698] sm:$0xff] }
  0x7f   : > { %v8273_v19 = vpack.c.bf16 %v666_v11, %v665_v10  ;;  %v650_v21 = vld [vmem:[%s10055_s25 + $0x618] sm:$0xff]  ;;  %v685_v49 = vld [vmem:[%s10055_s25 + $0x730] sm:$0xff]  ;;  %v675_v11 = vld [vmem:[%s10055_s25 + $0x6e0] sm:$0xff] }
  0x80   : > { %8172 = vmatpush3.bf16.msra.mxu0 %v8171_v23  ;;  %v610_v23 = vld [vmem:[%s10055_s25 + $0x4d8] sm:$0xff]  ;;  %v673_v63 = vld [vmem:[%s10055_s25 + $0x6d0] sm:$0xff] }
  0x81   : > { %8204 = vmatpush3.bf16.msra.mxu1 %v8203_v25  ;;  %8206 = vmatprep.subr.bf16.mxu0 %v8205_v26  ;;  %v642_v25 = vld [vmem:[%s10055_s25 + $0x5d8] sm:$0xff]  ;;  %v8223_v26 = vpack.c.bf16 %v592_v18, %v591_v17  ;;  %v8225_v28 = vpack.c.bf16 %v610_v23, %v609_v22  ;;  %v8271_v17 = vpack.c.bf16 %v648_v6, %v647_v5  ;;  %v681_v22 = vld [vmem:[%s10055_s25 + $0x710] sm:$0xff] }
  0x82   : > { %8238 = vmatprep.subr.bf16.mxu1 %v8237_v30  ;;  %v594_v30 = vld [vmem:[%s10055_s25 + $0x458] sm:$0xff]  ;;  %v8257_v32 = vpack.c.bf16 %v642_v25, %v641_v24  ;;  %v667_v25 = vld [vmem:[%s10055_s25 + $0x6a0] sm:$0xff]  ;;  %v657_v6 = vld [vmem:[%s10055_s25 + $0x650] sm:$0xff] }
  0x83   : > { %2724 = vmatmul.mubr.f32.vlgmr.msra.gmra.mrb[2].mxu0 %v10175_v34  ;;  %v8243_v34 = vpack.c.bf16 %v618_v47, %v617_v42  ;;  %v595_v42 = vld [vmem:[%s10055_s25 + $0x460] sm:$0xff]  ;;  %v682_v24 = vld [vmem:[%s10055_s25 + $0x718] sm:$0xff] }
  0x84   : > { %8208 = vmatpush3.bf16.msra.mxu0 %v8207_v36  ;;  %2794 = vmatmul.mubr.f32.vlgmr.msra.gmra.mrb[2].mxu1 %v10186_v46  ;;  %v605_v46 = vld [vmem:[%s10055_s25 + $0x4b0] sm:$0xff]  ;;  %v612_v36 = vld [vmem:[%s10055_s25 + $0x4e8] sm:$0xff]  ;;  %v674_v0 = vld [vmem:[%s10055_s25 + $0x6d8] sm:$0xff] }
  0x85   : > { %8240 = vmatpush3.bf16.msra.mxu1 %v8239_v37  ;;  %8210 = vmatprep.subr.bf16.mxu0 %v8209_v39  ;;  %v8217_v3 = vpack.c.bf16 %v606_v62, %v605_v46  ;;  %v643_v37 = vld [vmem:[%s10055_s25 + $0x5e0] sm:$0xff]  ;;  %v8227_v39 = vpack.c.bf16 %v594_v30, %v593_v29  ;;  %v8229_v41 = vpack.c.bf16 %v612_v36, %v611_v35  ;;  %v664_v62 = vld [vmem:[%s10055_s25 + $0x688] sm:$0xff]  ;;  %v690_v10 = vld [vmem:[%s10055_s25 + $0x758] sm:$0xff] }
  0x86   : > { %8242 = vmatprep.subr.bf16.mxu1 %v8241_v45  ;;  %2863 = vmatprep.mubr.f32.mxu0 %v2064_v52  ;;  %v627_v45 = vld [vmem:[%s10055_s25 + $0x560] sm:$0xff]  ;;  %v8261_v47 = vpack.c.bf16 %v644_v38, %v643_v37  ;;  %v646_v52 = vld [vmem:[%s10055_s25 + $0x5f8] sm:$0xff]  ;;  %v700_v29 = vld [vmem:[%s10055_s25 + $0x7a8] sm:$0xff]  ;;  %v8289_v5 = vpack.c.bf16 %v674_v0, %v673_v63 }
  0x87   : > { %2933 = vmatprep.mubr.f32.mxu1 %v2065_v59  ;;  %v629_v59 = vld [vmem:[%s10055_s25 + $0x570] sm:$0xff]  ;;  %v663_v46 = vld [vmem:[%s10055_s25 + $0x680] sm:$0xff]  ;;  %v684_v38 = vld [vmem:[%s10055_s25 + $0x728] sm:$0xff] }
  0x88   : > { %8212 = vmatpush3.bf16.msra.mxu0 %v8211_v54  ;;  %v8231_v54 = vpack.c.bf16 %v596_v44, %v595_v42  ;;  %v8269_v4 = vpack.c.bf16 %v664_v62, %v663_v46  ;;  %v651_v35 = vld [vmem:[%s10055_s25 + $0x620] sm:$0xff]  ;;  %v688_v62 = vld [vmem:[%s10055_s25 + $0x748] sm:$0xff]  ;;  %v745_v63 = vld [vmem:[%s10055_s25 + $0x910] sm:$0xff] }
  0x89   : > { %8244 = vmatpush3.bf16.msra.mxu1 %v8243_v34  ;;  %8214 = vmatprep.subr.bf16.mxu0 %v8213_v55  ;;  %v434_v34 = vld [vmem:[%s10065_s21 + $0x18] sm:$0xff]  ;;  %v8263_v55 = vpack.c.bf16 %v628_v48, %v627_v45  ;;  %v683_v36 = vld [vmem:[%s10055_s25 + $0x720] sm:$0xff] }
  0x8a   : > { %8246 = vmatprep.subr.bf16.mxu1 %v8245_v60  ;;  %v8265_v60 = vpack.c.bf16 %v646_v52, %v645_v51  ;;  %v10301_v12 = vrot.slane %v434_v34, %v10118_v14  ;;  %v8311_v44 = vpack.c.bf16 %v684_v38, %v683_v36  ;;  %v654_v48 = vld [vmem:[%s10055_s25 + $0x638] sm:$0xff]  ;;  %v671_v52 = vld [vmem:[%s10055_s25 + $0x6c0] sm:$0xff]  ;;  %v693_v36 = vld [vmem:[%s10055_s25 + $0x770] sm:$0xff] }
  0x8b   : > { %v686_v51 = vld [vmem:[%s10055_s25 + $0x738] sm:$0xff] }
  0x8c   : > { %8216 = vmatpush3.bf16.msra.mxu0 %v8215_v1  ;;  %v2066_v1 = vcombine.high %v434_v34, %v434_v34  ;;  %v703_v34 = vld [vmem:[%s10055_s25 + $0x7c0] sm:$0xff]  ;;  %v694_v38 = vld [vmem:[%s10055_s25 + $0x778] sm:$0xff] }
  0x8d   : > { %8248 = vmatpush3.bf16.msra.mxu1 %v8247_v2  ;;  %8218 = vmatprep.subr.bf16.mxu0 %v8217_v3  ;;  %v8235_v2 = vpack.c.bf16 %v598_v58, %v597_v57  ;;  %v8267_v3 = vpack.c.bf16 %v630_v61, %v629_v59  ;;  %v8315_v57 = vpack.c.bf16 %v686_v51, %v685_v49  ;;  %v655_v59 = vld [vmem:[%s10055_s25 + $0x640] sm:$0xff]  ;;  %v712_v49 = vld [vmem:[%s10055_s25 + $0x808] sm:$0xff] }
  0x8e   : > { %8250 = vmatprep.subr.bf16.mxu1 %v8249_v7  ;;  %v679_v7 = vld [vmem:[%s10055_s25 + $0x700] sm:$0xff] }
  0x8f   : > { %v8303_v18 = vpack.c.bf16 %v680_v9, %v679_v7  ;;  %v687_v61 = vld [vmem:[%s10055_s25 + $0x740] sm:$0xff]  ;;  %v658_v7 = vld [vmem:[%s10055_s25 + $0x658] sm:$0xff] }
  0x90   : > { %8220 = vmatpush3.bf16.msra.mxu0 %v8219_v13  ;;  %v697_v13 = vld [vmem:[%s10055_s25 + $0x790] sm:$0xff] }
  0x91   : > { %8252 = vmatpush3.bf16.msra.mxu1 %v8251_v15  ;;  %8222 = vmatprep.subr.bf16.mxu0 %v8221_v16  ;;  %v698_v15 = vld [vmem:[%s10055_s25 + $0x798] sm:$0xff]  ;;  %v10306_v16 = vrot.slane %v2066_v1, %v10118_v14  ;;  %v705_v1 = vld [vmem:[%s10055_s25 + $0x7d0] sm:$0xff] }
  0x92   : > { %8254 = vmatprep.subr.bf16.mxu1 %v8253_v20  ;;  %v649_v20 = vld [vmem:[%s10055_s25 + $0x610] sm:$0xff]  ;;  %v8305_v23 = vpack.c.bf16 %v698_v15, %v697_v13  ;;  %v676_v13 = vld [vmem:[%s10055_s25 + $0x6e8] sm:$0xff]  ;;  %v707_v15 = vld [vmem:[%s10055_s25 + $0x7e0] sm:$0xff] }
  0x93   : > { %v2082_v30 = vcombine.high %v10306_v16, %v10306_v16  ;;  %v8275_v31 = vpack.c.bf16 %v650_v21, %v649_v20  ;;  %v8293_v20 = vpack.c.bf16 %v676_v13, %v675_v11  ;;  %v659_v21 = vld [vmem:[%s10055_s25 + $0x660] sm:$0xff] }
  0x94   : > { %8224 = vmatpush3.bf16.msra.mxu0 %v8223_v26  ;;  %v668_v26 = vld [vmem:[%s10055_s25 + $0x6a8] sm:$0xff]  ;;  %v715_v11 = vld [vmem:[%s10055_s25 + $0x820] sm:$0xff] }
  0x95   : > { %8256 = vmatpush3.bf16.msra.mxu1 %v8255_v27  ;;  %8226 = vmatprep.subr.bf16.mxu0 %v8225_v28  ;;  %v2081_v27 = vcombine.high %v10301_v12, %v10301_v12  ;;  %v699_v28 = vld [vmem:[%s10055_s25 + $0x7a0] sm:$0xff]  ;;  %v8277_v33 = vpack.c.bf16 %v668_v26, %v667_v25  ;;  %v692_v25 = vld [vmem:[%s10055_s25 + $0x768] sm:$0xff]  ;;  %v677_v26 = vld [vmem:[%s10055_s25 + $0x6f0] sm:$0xff] }
  0x96   : > { %8258 = vmatprep.subr.bf16.mxu1 %v8257_v32  ;;  %v8307_v32 = vpack.c.bf16 %v682_v24, %v681_v22  ;;  %v8309_v37 = vpack.c.bf16 %v700_v29, %v699_v28  ;;  %v660_v22 = vld [vmem:[%s10055_s25 + $0x668] sm:$0xff]  ;;  %v709_v28 = vld [vmem:[%s10055_s25 + $0x7f0] sm:$0xff]  ;;  %v710_v29 = vld [vmem:[%s10055_s25 + $0x7f8] sm:$0xff] }
  0x97   : > { %v747_v13 = vld [vmem:[%s10055_s25 + $0x920] sm:$0xff] }
  0x98   : > { %8228 = vmatpush3.bf16.msra.mxu0 %v8227_v39  ;;  %v669_v39 = vld [vmem:[%s10055_s25 + $0x6b0] sm:$0xff] }
  0x99   : > { %8260 = vmatpush3.bf16.msra.mxu1 %v8259_v40  ;;  %8230 = vmatprep.subr.bf16.mxu0 %v8229_v41  ;;  %v670_v40 = vld [vmem:[%s10055_s25 + $0x6b8] sm:$0xff] }
  0x9a   : > { %8262 = vmatprep.subr.bf16.mxu1 %v8261_v47  ;;  %v702_v41 = vld [vmem:[%s10055_s25 + $0x7b8] sm:$0xff]  ;;  %v8281_v45 = vpack.c.bf16 %v670_v40, %v669_v39  ;;  %v653_v47 = vld [vmem:[%s10055_s25 + $0x630] sm:$0xff]  ;;  %v727_v39 = vld [vmem:[%s10055_s25 + $0x880] sm:$0xff] }
  0x9b   : > { %v728_v40 = vld [vmem:[%s10055_s25 + $0x888] sm:$0xff] }
  0x9c   : > { %8232 = vmatpush3.bf16.msra.mxu0 %v8231_v54  ;;  %v672_v54 = vld [vmem:[%s10055_s25 + $0x6c8] sm:$0xff] }
  0x9d   : > { %8264 = vmatpush3.bf16.msra.mxu1 %v8263_v55  ;;  %8234 = vmatprep.subr.bf16.mxu0 %v8233_v56  ;;  %v704_v55 = vld [vmem:[%s10055_s25 + $0x7c8] sm:$0xff]  ;;  %v8283_v56 = vpack.c.bf16 %v654_v48, %v653_v47  ;;  %v8285_v58 = vpack.c.bf16 %v672_v54, %v671_v52  ;;  %v8333_v47 = vpack.c.bf16 %v728_v40, %v727_v39  ;;  %v711_v48 = vld [vmem:[%s10055_s25 + $0x800] sm:$0xff]  ;;  %v729_v54 = vld [vmem:[%s10055_s25 + $0x890] sm:$0xff] }
  0x9e   : > { %8266 = vmatprep.subr.bf16.mxu1 %v8265_v60  ;;  %v656_v60 = vld [vmem:[%s10055_s25 + $0x648] sm:$0xff]  ;;  %v8317_v46 = vpack.c.bf16 %v704_v55, %v703_v34  ;;  %v730_v34 = vld [vmem:[%s10055_s25 + $0x898] sm:$0xff] }
  0x9f   : > { %v744_v52 = vld [vmem:[%s10055_s25 + $0x908] sm:$0xff] }
  0xa0   : > { %8236 = vmatpush3.bf16.msra.mxu0 %v8235_v2  ;;  %v706_v2 = vld [vmem:[%s10055_s25 + $0x7d8] sm:$0xff]  ;;  %v752_v40 = vld [vmem:[%s10055_s25 + $0x948] sm:$0xff] }
  0xa1   : > { %8268 = vmatpush3.bf16.msra.mxu1 %v8267_v3  ;;  %8270 = vmatprep.subr.bf16.mxu0 %v8269_v4  ;;  %v8287_v3 = vpack.c.bf16 %v656_v60, %v655_v59  ;;  %v8319_v4 = vpack.c.bf16 %v688_v62, %v687_v61  ;;  %v8321_v9 = vpack.c.bf16 %v706_v2, %v705_v1  ;;  %v714_v62 = vld [vmem:[%s10055_s25 + $0x818] sm:$0xff]  ;;  %v731_v2 = vld [vmem:[%s10055_s25 + $0x8a0] sm:$0xff] }
  0xa2   : > { %8302 = vmatprep.subr.bf16.mxu1 %v8301_v8  ;;  %v689_v8 = vld [vmem:[%s10055_s25 + $0x750] sm:$0xff]  ;;  %v8335_v59 = vpack.c.bf16 %v712_v49, %v711_v48  ;;  %v8337_v61 = vpack.c.bf16 %v730_v34, %v729_v54  ;;  %v746_v1 = vld [vmem:[%s10055_s25 + $0x918] sm:$0xff]  ;;  %v739_v34 = vld [vmem:[%s10055_s25 + $0x8e0] sm:$0xff] }
  0xa3   : > { %2864 = vmatmul.mubr.f32.vlgmr.msra.gmra.mrb[4].mxu0 %v10229_v43  ;;  %v652_v43 = vld [vmem:[%s10055_s25 + $0x628] sm:$0xff]  ;;  %v721_v49 = vld [vmem:[%s10055_s25 + $0x850] sm:$0xff]  ;;  %v754_v54 = vld [vmem:[%s10055_s25 + $0x958] sm:$0xff] }
  0xa4   : > { %8272 = vmatpush3.bf16.msra.mxu0 %v8271_v17  ;;  %2934 = vmatmul.mubr.f32.vlgmr.msra.gmra.mrb[4].mxu1 %v10240_v53  ;;  %v701_v53 = vld [vmem:[%s10055_s25 + $0x7b0] sm:$0xff]  ;;  %v8279_v42 = vpack.c.bf16 %v652_v43, %v651_v35  ;;  %v708_v17 = vld [vmem:[%s10055_s25 + $0x7e8] sm:$0xff]  ;;  %v662_v43 = vld [vmem:[%s10055_s25 + $0x678] sm:$0xff] }
  0xa5   : > { %8304 = vmatpush3.bf16.msra.mxu1 %v8303_v18  ;;  %8274 = vmatprep.subr.bf16.mxu0 %v8273_v19  ;;  %v8313_v50 = vpack.c.bf16 %v702_v41, %v701_v53  ;;  %v8291_v18 = vpack.c.bf16 %v658_v7, %v657_v6  ;;  %v8323_v19 = vpack.c.bf16 %v690_v10, %v689_v8  ;;  %v661_v35 = vld [vmem:[%s10055_s25 + $0x670] sm:$0xff]  ;;  %v759_v53 = vld [vmem:[%s10055_s25 + $0x980] sm:$0xff]  ;;  %v760_v41 = vld [vmem:[%s10055_s25 + $0x988] sm:$0xff] }
  0xa6   : > { %8306 = vmatprep.subr.bf16.mxu1 %v8305_v23  ;;  %3003 = vmatprep.mubr.f32.mxu0 %v2081_v27  ;;  %v691_v23 = vld [vmem:[%s10055_s25 + $0x760] sm:$0xff]  ;;  %v8325_v24 = vpack.c.bf16 %v708_v17, %v707_v15  ;;  %v678_v27 = vld [vmem:[%s10055_s25 + $0x6f8] sm:$0xff]  ;;  %v8365_v51 = vpack.c.bf16 %v760_v41, %v759_v53  ;;  %v764_v6 = vld [vmem:[%s10055_s25 + $0x9a8] sm:$0xff] }
  0xa7   : > { %3073 = vmatprep.mubr.f32.mxu1 %v2082_v30  ;;  %v8295_v30 = vpack.c.bf16 %v660_v22, %v659_v21  ;;  %v748_v17 = vld [vmem:[%s10055_s25 + $0x928] sm:$0xff]  ;;  %v737_v53 = vld [vmem:[%s10055_s25 + $0x8d0] sm:$0xff]  ;;  %v738_v41 = vld [vmem:[%s10055_s25 + $0x8d8] sm:$0xff] }
  0xa8   : > { %8276 = vmatpush3.bf16.msra.mxu0 %v8275_v31  ;;  %v435_v31 = vld [vmem:[%s10065_s21 + $0x20] sm:$0xff]  ;;  %v8375_v22 = vpack.c.bf16 %v748_v17, %v747_v13  ;;  %v8353_v48 = vpack.c.bf16 %v738_v41, %v737_v53  ;;  %v757_v13 = vld [vmem:[%s10055_s25 + $0x970] sm:$0xff] }
  0xa9   : > { %8308 = vmatpush3.bf16.msra.mxu1 %v8307_v32  ;;  %8278 = vmatprep.subr.bf16.mxu0 %v8277_v33  ;;  %v8327_v32 = vpack.c.bf16 %v692_v25, %v691_v23  ;;  %v8297_v33 = vpack.c.bf16 %v678_v27, %v677_v26  ;;  %v10378_v55 = vrot.slane %v435_v31, %v10118_v14  ;;  %v718_v25 = vld [vmem:[%s10055_s25 + $0x838] sm:$0xff]  ;;  %v749_v26 = vld [vmem:[%s10055_s25 + $0x930] sm:$0xff] }
  0xaa   : > { %8310 = vmatprep.subr.bf16.mxu1 %v8309_v37  ;;  %v8329_v37 = vpack.c.bf16 %v710_v29, %v709_v28  ;;  %v750_v28 = vld [vmem:[%s10055_s25 + $0x938] sm:$0xff]  ;;  %v735_v29 = vld [vmem:[%s10055_s25 + $0x8c0] sm:$0xff]  ;;  %v809_v53 = vld [vmem:[%s10055_s25 + $0xb10] sm:$0xff] }
  0xab   : > { %v758_v17 = vld [vmem:[%s10055_s25 + $0x978] sm:$0xff] }
  0xac   : > { %8280 = vmatpush3.bf16.msra.mxu0 %v8279_v42  ;;  %v2083_v42 = vcombine.high %v435_v31, %v435_v31  ;;  %v767_v31 = vld [vmem:[%s10055_s25 + $0x9c0] sm:$0xff] }
  0xad   : > { %8312 = vmatpush3.bf16.msra.mxu1 %v8311_v44  ;;  %8282 = vmatprep.subr.bf16.mxu0 %v8281_v45  ;;  %v8299_v44 = vpack.c.bf16 %v662_v43, %v661_v35  ;;  %v8331_v45 = vpack.c.bf16 %v694_v38, %v693_v36  ;;  %v8379_v35 = vpack.c.bf16 %v750_v28, %v749_v26  ;;  %v719_v36 = vld [vmem:[%s10055_s25 + $0x840] sm:$0xff]  ;;  %v776_v26 = vld [vmem:[%s10055_s25 + $0xa08] sm:$0xff] }
  0xae   : > { %8314 = vmatprep.subr.bf16.mxu1 %v8313_v50  ;;  %v743_v50 = vld [vmem:[%s10055_s25 + $0x900] sm:$0xff] }
  0xaf   : > { %v8367_v60 = vpack.c.bf16 %v744_v52, %v743_v50  ;;  %v751_v38 = vld [vmem:[%s10055_s25 + $0x940] sm:$0xff]  ;;  %v722_v50 = vld [vmem:[%s10055_s25 + $0x858] sm:$0xff] }
  0xb0   : > { %8284 = vmatpush3.bf16.msra.mxu0 %v8283_v56  ;;  %v761_v56 = vld [vmem:[%s10055_s25 + $0x990] sm:$0xff] }
  0xb1   : > { %8316 = vmatpush3.bf16.msra.mxu1 %v8315_v57  ;;  %8286 = vmatprep.subr.bf16.mxu0 %v8285_v58  ;;  %v762_v57 = vld [vmem:[%s10055_s25 + $0x998] sm:$0xff]  ;;  %v10383_v58 = vrot.slane %v2083_v42, %v10118_v14  ;;  %v769_v42 = vld [vmem:[%s10055_s25 + $0x9d0] sm:$0xff] }
  0xb2   : > { %8318 = vmatprep.subr.bf16.mxu1 %v8317_v46  ;;  %v713_v46 = vld [vmem:[%s10055_s25 + $0x810] sm:$0xff]  ;;  %v8369_v0 = vpack.c.bf16 %v762_v57, %v761_v56  ;;  %v740_v56 = vld [vmem:[%s10055_s25 + $0x8e8] sm:$0xff]  ;;  %v771_v57 = vld [vmem:[%s10055_s25 + $0x9e0] sm:$0xff] }
  0xb3   : > { %v2099_v7 = vcombine.high %v10383_v58, %v10383_v58  ;;  %v8339_v8 = vpack.c.bf16 %v714_v62, %v713_v46  ;;  %v8357_v46 = vpack.c.bf16 %v740_v56, %v739_v34  ;;  %v723_v62 = vld [vmem:[%s10055_s25 + $0x860] sm:$0xff] }
  0xb4   : > { %8288 = vmatpush3.bf16.msra.mxu0 %v8287_v3  ;;  %v732_v3 = vld [vmem:[%s10055_s25 + $0x8a8] sm:$0xff]  ;;  %v779_v34 = vld [vmem:[%s10055_s25 + $0xa20] sm:$0xff] }
  0xb5   : > { %8320 = vmatpush3.bf16.msra.mxu1 %v8319_v4  ;;  %8290 = vmatprep.subr.bf16.mxu0 %v8289_v5  ;;  %v2098_v4 = vcombine.high %v10378_v55, %v10378_v55  ;;  %v763_v5 = vld [vmem:[%s10055_s25 + $0x9a0] sm:$0xff]  ;;  %v8341_v10 = vpack.c.bf16 %v732_v3, %v731_v2  ;;  %v756_v2 = vld [vmem:[%s10055_s25 + $0x968] sm:$0xff]  ;;  %v741_v3 = vld [vmem:[%s10055_s25 + $0x8f0] sm:$0xff] }
  0xb6   : > { %8322 = vmatprep.subr.bf16.mxu1 %v8321_v9  ;;  %v8371_v9 = vpack.c.bf16 %v746_v1, %v745_v63  ;;  %v8373_v15 = vpack.c.bf16 %v764_v6, %v763_v5  ;;  %v724_v63 = vld [vmem:[%s10055_s25 + $0x868] sm:$0xff]  ;;  %v773_v5 = vld [vmem:[%s10055_s25 + $0x9f0] sm:$0xff]  ;;  %v774_v6 = vld [vmem:[%s10055_s25 + $0x9f8] sm:$0xff] }
  0xb7   : > { %v811_v56 = vld [vmem:[%s10055_s25 + $0xb20] sm:$0xff] }
  0xb8   : > { %8292 = vmatpush3.bf16.msra.mxu0 %v8291_v18  ;;  %v733_v18 = vld [vmem:[%s10055_s25 + $0x8b0] sm:$0xff] }
  0xb9   : > { %8324 = vmatpush3.bf16.msra.mxu1 %v8323_v19  ;;  %8294 = vmatprep.subr.bf16.mxu0 %v8293_v20  ;;  %v734_v19 = vld [vmem:[%s10055_s25 + $0x8b8] sm:$0xff] }
  0xba   : > { %8326 = vmatprep.subr.bf16.mxu1 %v8325_v24  ;;  %v766_v20 = vld [vmem:[%s10055_s25 + $0x9b8] sm:$0xff]  ;;  %v8345_v23 = vpack.c.bf16 %v734_v19, %v733_v18  ;;  %v717_v24 = vld [vmem:[%s10055_s25 + $0x830] sm:$0xff]  ;;  %v791_v18 = vld [vmem:[%s10055_s25 + $0xa80] sm:$0xff] }
  0xbb   : > { %v792_v19 = vld [vmem:[%s10055_s25 + $0xa88] sm:$0xff] }
  0xbc   : > { %8296 = vmatpush3.bf16.msra.mxu0 %v8295_v30  ;;  %v736_v30 = vld [vmem:[%s10055_s25 + $0x8c8] sm:$0xff] }
  0xbd   : > { %8328 = vmatpush3.bf16.msra.mxu1 %v8327_v32  ;;  %8298 = vmatprep.subr.bf16.mxu0 %v8297_v33  ;;  %v768_v32 = vld [vmem:[%s10055_s25 + $0x9c8] sm:$0xff]  ;;  %v8347_v33 = vpack.c.bf16 %v718_v25, %v717_v24  ;;  %v8349_v43 = vpack.c.bf16 %v736_v30, %v735_v29  ;;  %v8397_v24 = vpack.c.bf16 %v792_v19, %v791_v18  ;;  %v775_v25 = vld [vmem:[%s10055_s25 + $0xa00] sm:$0xff]  ;;  %v793_v30 = vld [vmem:[%s10055_s25 + $0xa90] sm:$0xff] }
  0xbe   : > { %8330 = vmatprep.subr.bf16.mxu1 %v8329_v37  ;;  %v720_v37 = vld [vmem:[%s10055_s25 + $0x848] sm:$0xff]  ;;  %v8381_v39 = vpack.c.bf16 %v768_v32, %v767_v31  ;;  %v794_v31 = vld [vmem:[%s10055_s25 + $0xa98] sm:$0xff] }
  0xbf   : > { %v808_v29 = vld [vmem:[%s10055_s25 + $0xb08] sm:$0xff] }
  0xc0   : > { %8300 = vmatpush3.bf16.msra.mxu0 %v8299_v44  ;;  %v770_v44 = vld [vmem:[%s10055_s25 + $0x9d8] sm:$0xff]  ;;  %v816_v19 = vld [vmem:[%s10055_s25 + $0xb48] sm:$0xff] }
  0xc1   : > { %8332 = vmatpush3.bf16.msra.mxu1 %v8331_v45  ;;  %8334 = vmatprep.subr.bf16.mxu0 %v8333_v47  ;;  %v8351_v45 = vpack.c.bf16 %v720_v37, %v719_v36  ;;  %v8383_v47 = vpack.c.bf16 %v752_v40, %v751_v38  ;;  %v8385_v52 = vpack.c.bf16 %v770_v44, %v769_v42  ;;  %v778_v40 = vld [vmem:[%s10055_s25 + $0xa18] sm:$0xff]  ;;  %v795_v44 = vld [vmem:[%s10055_s25 + $0xaa0] sm:$0xff] }
  0xc2   : > { %8366 = vmatprep.subr.bf16.mxu1 %v8365_v51  ;;  %v753_v51 = vld [vmem:[%s10055_s25 + $0x950] sm:$0xff]  ;;  %v8399_v36 = vpack.c.bf16 %v776_v26, %v775_v25  ;;  %v8401_v38 = vpack.c.bf16 %v794_v31, %v793_v30  ;;  %v810_v42 = vld [vmem:[%s10055_s25 + $0xb18] sm:$0xff]  ;;  %v803_v31 = vld [vmem:[%s10055_s25 + $0xae0] sm:$0xff] }
  0xc3   : > { %3004 = vmatmul.mubr.f32.vlgmr.msra.gmra.mrb[6].mxu0 %v10301_v12  ;;  %v716_v12 = vld [vmem:[%s10055_s25 + $0x828] sm:$0xff]  ;;  %v785_v26 = vld [vmem:[%s10055_s25 + $0xa50] sm:$0xff]  ;;  %v818_v30 = vld [vmem:[%s10055_s25 + $0xb58] sm:$0xff] }
  0xc4   : > { %8336 = vmatpush3.bf16.msra.mxu0 %v8335_v59  ;;  %3074 = vmatmul.mubr.f32.vlgmr.msra.gmra.mrb[6].mxu1 %v10306_v16  ;;  %v765_v16 = vld [vmem:[%s10055_s25 + $0x9b0] sm:$0xff]  ;;  %v8343_v21 = vpack.c.bf16 %v716_v12, %v715_v11  ;;  %v772_v59 = vld [vmem:[%s10055_s25 + $0x9e8] sm:$0xff]  ;;  %v726_v12 = vld [vmem:[%s10055_s25 + $0x878] sm:$0xff] }
  0xc5   : > { %8368 = vmatpush3.bf16.msra.mxu1 %v8367_v60  ;;  %8338 = vmatprep.subr.bf16.mxu0 %v8337_v61  ;;  %v8377_v27 = vpack.c.bf16 %v766_v20, %v765_v16  ;;  %v8355_v60 = vpack.c.bf16 %v722_v50, %v721_v49  ;;  %v8387_v61 = vpack.c.bf16 %v754_v54, %v753_v51  ;;  %v725_v11 = vld [vmem:[%s10055_s25 + $0x870] sm:$0xff]  ;;  %v823_v16 = vld [vmem:[%s10055_s25 + $0xb80] sm:$0xff]  ;;  %v824_v20 = vld [vmem:[%s10055_s25 + $0xb88] sm:$0xff] }
  0xc6   : > { %8370 = vmatprep.subr.bf16.mxu1 %v8369_v0  ;;  %3143 = vmatprep.mubr.f32.mxu0 %v2098_v4  ;;  %v755_v0 = vld [vmem:[%s10055_s25 + $0x960] sm:$0xff]  ;;  %v8389_v1 = vpack.c.bf16 %v772_v59, %v771_v57  ;;  %v742_v4 = vld [vmem:[%s10055_s25 + $0x8f8] sm:$0xff]  ;;  %v8429_v28 = vpack.c.bf16 %v824_v20, %v823_v16  ;;  %v828_v49 = vld [vmem:[%s10055_s25 + $0xba8] sm:$0xff] }
  0xc7   : > { %3213 = vmatprep.mubr.f32.mxu1 %v2099_v7  ;;  %v8359_v7 = vpack.c.bf16 %v724_v63, %v723_v62  ;;  %v812_v59 = vld [vmem:[%s10055_s25 + $0xb28] sm:$0xff]  ;;  %v801_v16 = vld [vmem:[%s10055_s25 + $0xad0] sm:$0xff]  ;;  %v802_v20 = vld [vmem:[%s10055_s25 + $0xad8] sm:$0xff] }
  0xc8   : > { %8340 = vmatpush3.bf16.msra.mxu0 %v8339_v8  ;;  %v436_v8 = vld [vmem:[%s10065_s21 + $0x28] sm:$0xff]  ;;  %v8439_v63 = vpack.c.bf16 %v812_v59, %v811_v56  ;;  %v8417_v25 = vpack.c.bf16 %v802_v20, %v801_v16  ;;  %v821_v56 = vld [vmem:[%s10055_s25 + $0xb70] sm:$0xff]  ;;  %v822_v59 = vld [vmem:[%s10055_s25 + $0xb78] sm:$0xff] }
  0xc9   : > { %8372 = vmatpush3.bf16.msra.mxu1 %v8371_v9  ;;  %8342 = vmatprep.subr.bf16.mxu0 %v8341_v10  ;;  %v8391_v9 = vpack.c.bf16 %v756_v2, %v755_v0  ;;  %v8361_v10 = vpack.c.bf16 %v742_v4, %v741_v3  ;;  %v10455_v32 = vrot.slane %v436_v8, %v10118_v14  ;;  %v782_v2 = vld [vmem:[%s10055_s25 + $0xa38] sm:$0xff]  ;;  %v813_v3 = vld [vmem:[%s10055_s25 + $0xb30] sm:$0xff] }
  0xca   : > { %8374 = vmatprep.subr.bf16.mxu1 %v8373_v15  ;;  %v8393_v15 = vpack.c.bf16 %v774_v6, %v773_v5  ;;  %v814_v5 = vld [vmem:[%s10055_s25 + $0xb38] sm:$0xff]  ;;  %v799_v6 = vld [vmem:[%s10055_s25 + $0xac0] sm:$0xff]  ;;  %v873_v16 = vld [vmem:[%s10055_s25 + $0xd10] sm:$0xff] }
  0xcc   : > { %8344 = vmatpush3.bf16.msra.mxu0 %v8343_v21  ;;  %v2100_v21 = vcombine.high %v436_v8, %v436_v8  ;;  %v831_v8 = vld [vmem:[%s10055_s25 + $0xbc0] sm:$0xff] }
  0xcd   : > { %8376 = vmatpush3.bf16.msra.mxu1 %v8375_v22  ;;  %8346 = vmatprep.subr.bf16.mxu0 %v8345_v23  ;;  %v8363_v22 = vpack.c.bf16 %v726_v12, %v725_v11  ;;  %v8395_v23 = vpack.c.bf16 %v758_v17, %v757_v13  ;;  %v8443_v11 = vpack.c.bf16 %v814_v5, %v813_v3  ;;  %v783_v13 = vld [vmem:[%s10055_s25 + $0xa40] sm:$0xff]  ;;  %v840_v3 = vld [vmem:[%s10055_s25 + $0xc08] sm:$0xff] }
  0xce   : > { %8378 = vmatprep.subr.bf16.mxu1 %v8377_v27  ;;  %v807_v27 = vld [vmem:[%s10055_s25 + $0xb00] sm:$0xff] }
  0xcf   : > { %v8431_v37 = vpack.c.bf16 %v808_v29, %v807_v27  ;;  %v815_v17 = vld [vmem:[%s10055_s25 + $0xb40] sm:$0xff]  ;;  %v786_v27 = vld [vmem:[%s10055_s25 + $0xa58] sm:$0xff] }
  0xd0   : > { %8348 = vmatpush3.bf16.msra.mxu0 %v8347_v33  ;;  %v825_v33 = vld [vmem:[%s10055_s25 + $0xb90] sm:$0xff] }
  0xd1   : > { %8380 = vmatpush3.bf16.msra.mxu1 %v8379_v35  ;;  %8350 = vmatprep.subr.bf16.mxu0 %v8349_v43  ;;  %v826_v35 = vld [vmem:[%s10055_s25 + $0xb98] sm:$0xff]  ;;  %v10460_v43 = vrot.slane %v2100_v21, %v10118_v14  ;;  %v833_v21 = vld [vmem:[%s10055_s25 + $0xbd0] sm:$0xff] }
  0xd2   : > { %8382 = vmatprep.subr.bf16.mxu1 %v8381_v39  ;;  %v777_v39 = vld [vmem:[%s10055_s25 + $0xa10] sm:$0xff]  ;;  %v8433_v41 = vpack.c.bf16 %v826_v35, %v825_v33  ;;  %v804_v33 = vld [vmem:[%s10055_s25 + $0xae8] sm:$0xff]  ;;  %v835_v35 = vld [vmem:[%s10055_s25 + $0xbe0] sm:$0xff] }
  0xd3   : > { %v2116_v50 = vcombine.high %v10460_v43, %v10460_v43  ;;  %v8403_v51 = vpack.c.bf16 %v778_v40, %v777_v39  ;;  %v8421_v39 = vpack.c.bf16 %v804_v33, %v803_v31  ;;  %v787_v40 = vld [vmem:[%s10055_s25 + $0xa60] sm:$0xff] }
  0xd4   : > { %8352 = vmatpush3.bf16.msra.mxu0 %v8351_v45  ;;  %v796_v45 = vld [vmem:[%s10055_s25 + $0xaa8] sm:$0xff]  ;;  %v843_v31 = vld [vmem:[%s10055_s25 + $0xc20] sm:$0xff] }
  0xd5   : > { %8384 = vmatpush3.bf16.msra.mxu1 %v8383_v47  ;;  %8354 = vmatprep.subr.bf16.mxu0 %v8353_v48  ;;  %v2115_v47 = vcombine.high %v10455_v32, %v10455_v32  ;;  %v827_v48 = vld [vmem:[%s10055_s25 + $0xba0] sm:$0xff]  ;;  %v8405_v54 = vpack.c.bf16 %v796_v45, %v795_v44  ;;  %v820_v44 = vld [vmem:[%s10055_s25 + $0xb68] sm:$0xff]  ;;  %v805_v45 = vld [vmem:[%s10055_s25 + $0xaf0] sm:$0xff] }
  0xd6   : > { %8386 = vmatprep.subr.bf16.mxu1 %v8385_v52  ;;  %v8435_v52 = vpack.c.bf16 %v810_v42, %v809_v53  ;;  %v8437_v57 = vpack.c.bf16 %v828_v49, %v827_v48  ;;  %v788_v53 = vld [vmem:[%s10055_s25 + $0xa68] sm:$0xff]  ;;  %v837_v48 = vld [vmem:[%s10055_s25 + $0xbf0] sm:$0xff]  ;;  %v838_v49 = vld [vmem:[%s10055_s25 + $0xbf8] sm:$0xff] }
  0xd7   : > { %v875_v33 = vld [vmem:[%s10055_s25 + $0xd20] sm:$0xff] }
  0xd8   : > { %8356 = vmatpush3.bf16.msra.mxu0 %v8355_v60  ;;  %v797_v60 = vld [vmem:[%s10055_s25 + $0xab0] sm:$0xff] }
  0xd9   : > { %8388 = vmatpush3.bf16.msra.mxu1 %v8387_v61  ;;  %8358 = vmatprep.subr.bf16.mxu0 %v8357_v46  ;;  %v798_v61 = vld [vmem:[%s10055_s25 + $0xab8] sm:$0xff] }
  0xda   : > { %8390 = vmatprep.subr.bf16.mxu1 %v8389_v1  ;;  %v830_v46 = vld [vmem:[%s10055_s25 + $0xbb8] sm:$0xff]  ;;  %v8409_v0 = vpack.c.bf16 %v798_v61, %v797_v60  ;;  %v781_v1 = vld [vmem:[%s10055_s25 + $0xa30] sm:$0xff]  ;;  %v855_v60 = vld [vmem:[%s10055_s25 + $0xc80] sm:$0xff] }
  0xdb   : > { %v856_v61 = vld [vmem:[%s10055_s25 + $0xc88] sm:$0xff] }
  0xdc   : > { %8360 = vmatpush3.bf16.msra.mxu0 %v8359_v7  ;;  %v800_v7 = vld [vmem:[%s10055_s25 + $0xac8] sm:$0xff] }
  0xdd   : > { %8392 = vmatpush3.bf16.msra.mxu1 %v8391_v9  ;;  %8362 = vmatprep.subr.bf16.mxu0 %v8361_v10  ;;  %v832_v9 = vld [vmem:[%s10055_s25 + $0xbc8] sm:$0xff]  ;;  %v8411_v10 = vpack.c.bf16 %v782_v2, %v781_v1  ;;  %v8413_v12 = vpack.c.bf16 %v800_v7, %v799_v6  ;;  %v8461_v1 = vpack.c.bf16 %v856_v61, %v855_v60  ;;  %v839_v2 = vld [vmem:[%s10055_s25 + $0xc00] sm:$0xff]  ;;  %v857_v7 = vld [vmem:[%s10055_s25 + $0xc90] sm:$0xff] }
  0xde   : > { %8394 = vmatprep.subr.bf16.mxu1 %v8393_v15  ;;  %v784_v15 = vld [vmem:[%s10055_s25 + $0xa48] sm:$0xff]  ;;  %v8445_v18 = vpack.c.bf16 %v832_v9, %v831_v8  ;;  %v858_v8 = vld [vmem:[%s10055_s25 + $0xc98] sm:$0xff] }
  0xdf   : > { %v872_v6 = vld [vmem:[%s10055_s25 + $0xd08] sm:$0xff] }
  0xe0   : > { %8364 = vmatpush3.bf16.msra.mxu0 %v8363_v22  ;;  %v834_v22 = vld [vmem:[%s10055_s25 + $0xbd8] sm:$0xff]  ;;  %v880_v61 = vld [vmem:[%s10055_s25 + $0xd48] sm:$0xff] }
  0xe1   : > { %8396 = vmatpush3.bf16.msra.mxu1 %v8395_v23  ;;  %8398 = vmatprep.subr.bf16.mxu0 %v8397_v24  ;;  %v8415_v23 = vpack.c.bf16 %v784_v15, %v783_v13  ;;  %v8447_v24 = vpack.c.bf16 %v816_v19, %v815_v17  ;;  %v8449_v29 = vpack.c.bf16 %v834_v22, %v833_v21  ;;  %v842_v19 = vld [vmem:[%s10055_s25 + $0xc18] sm:$0xff]  ;;  %v859_v22 = vld [vmem:[%s10055_s25 + $0xca0] sm:$0xff] }
  0xe2   : > { %8430 = vmatprep.subr.bf16.mxu1 %v8429_v28  ;;  %v817_v28 = vld [vmem:[%s10055_s25 + $0xb50] sm:$0xff]  ;;  %v8463_v13 = vpack.c.bf16 %v840_v3, %v839_v2  ;;  %v8465_v17 = vpack.c.bf16 %v858_v8, %v857_v7  ;;  %v874_v21 = vld [vmem:[%s10055_s25 + $0xd18] sm:$0xff]  ;;  %v867_v8 = vld [vmem:[%s10055_s25 + $0xce0] sm:$0xff] }
  0xe3   : > { %3144 = vmatmul.mubr.f32.vlgmr.msra.gmra.mrb[8].mxu0 %v10378_v55  ;;  %v780_v55 = vld [vmem:[%s10055_s25 + $0xa28] sm:$0xff]  ;;  %v849_v3 = vld [vmem:[%s10055_s25 + $0xc50] sm:$0xff]  ;;  %v882_v7 = vld [vmem:[%s10055_s25 + $0xd58] sm:$0xff] }
  0xe4   : > { %8400 = vmatpush3.bf16.msra.mxu0 %v8399_v36  ;;  %3214 = vmatmul.mubr.f32.vlgmr.msra.gmra.mrb[8].mxu1 %v10383_v58  ;;  %v829_v58 = vld [vmem:[%s10055_s25 + $0xbb0] sm:$0xff]  ;;  %v8407_v62 = vpack.c.bf16 %v780_v55, %v779_v34  ;;  %v836_v36 = vld [vmem:[%s10055_s25 + $0xbe8] sm:$0xff]  ;;  %v790_v55 = vld [vmem:[%s10055_s25 + $0xa78] sm:$0xff] }
  0xe5   : > { %8432 = vmatpush3.bf16.msra.mxu1 %v8431_v37  ;;  %8402 = vmatprep.subr.bf16.mxu0 %v8401_v38  ;;  %v8441_v4 = vpack.c.bf16 %v830_v46, %v829_v58  ;;  %v8419_v37 = vpack.c.bf16 %v786_v27, %v785_v26  ;;  %v8451_v38 = vpack.c.bf16 %v818_v30, %v817_v28  ;;  %v789_v34 = vld [vmem:[%s10055_s25 + $0xa70] sm:$0xff]  ;;  %v887_v58 = vld [vmem:[%s10055_s25 + $0xd80] sm:$0xff]  ;;  %v888_v46 = vld [vmem:[%s10055_s25 + $0xd88] sm:$0xff] }
  0xe6   : > { %8434 = vmatprep.subr.bf16.mxu1 %v8433_v41  ;;  %3283 = vmatprep.mubr.f32.mxu0 %v2115_v47  ;;  %v819_v41 = vld [vmem:[%s10055_s25 + $0xb60] sm:$0xff]  ;;  %v8453_v42 = vpack.c.bf16 %v836_v36, %v835_v35  ;;  %v806_v47 = vld [vmem:[%s10055_s25 + $0xaf8] sm:$0xff]  ;;  %v8493_v5 = vpack.c.bf16 %v888_v46, %v887_v58  ;;  %v892_v26 = vld [vmem:[%s10055_s25 + $0xda8] sm:$0xff] }
  0xe7   : > { %3353 = vmatprep.mubr.f32.mxu1 %v2116_v50  ;;  %v8423_v50 = vpack.c.bf16 %v788_v53, %v787_v40  ;;  %v876_v36 = vld [vmem:[%s10055_s25 + $0xd28] sm:$0xff]  ;;  %v865_v58 = vld [vmem:[%s10055_s25 + $0xcd0] sm:$0xff]  ;;  %v866_v46 = vld [vmem:[%s10055_s25 + $0xcd8] sm:$0xff] }
  0xe8   : > { %8404 = vmatpush3.bf16.msra.mxu0 %v8403_v51  ;;  %v437_v51 = vld [vmem:[%s10065_s21 + $0x30] sm:$0xff]  ;;  %v8503_v53 = vpack.c.bf16 %v876_v36, %v875_v33  ;;  %v8481_v2 = vpack.c.bf16 %v866_v46, %v865_v58  ;;  %v886_v36 = vld [vmem:[%s10055_s25 + $0xd78] sm:$0xff] }
  0xe9   : > { %8436 = vmatpush3.bf16.msra.mxu1 %v8435_v52  ;;  %8406 = vmatprep.subr.bf16.mxu0 %v8405_v54  ;;  %v8455_v52 = vpack.c.bf16 %v820_v44, %v819_v41  ;;  %v8425_v54 = vpack.c.bf16 %v806_v47, %v805_v45  ;;  %v10532_v9 = vrot.slane %v437_v51, %v10118_v14  ;;  %v846_v44 = vld [vmem:[%s10055_s25 + $0xc38] sm:$0xff]  ;;  %v877_v45 = vld [vmem:[%s10055_s25 + $0xd30] sm:$0xff] }
  0xea   : > { %8438 = vmatprep.subr.bf16.mxu1 %v8437_v57  ;;  %v8457_v57 = vpack.c.bf16 %v838_v49, %v837_v48  ;;  %v878_v48 = vld [vmem:[%s10055_s25 + $0xd38] sm:$0xff]  ;;  %v863_v49 = vld [vmem:[%s10055_s25 + $0xcc0] sm:$0xff]  ;;  %v885_v33 = vld [vmem:[%s10055_s25 + $0xd70] sm:$0xff] }
  0xeb   : > { %v937_v58 = vld [vmem:[%s10055_s25 + $0xf10] sm:$0xff] }
  0xec   : > { %8408 = vmatpush3.bf16.msra.mxu0 %v8407_v62  ;;  %v2117_v62 = vcombine.high %v437_v51, %v437_v51  ;;  %v895_v51 = vld [vmem:[%s10055_s25 + $0xdc0] sm:$0xff] }
  0xed   : > { %8440 = vmatpush3.bf16.msra.mxu1 %v8439_v63  ;;  %8410 = vmatprep.subr.bf16.mxu0 %v8409_v0  ;;  %v8427_v63 = vpack.c.bf16 %v790_v55, %v789_v34  ;;  %v8459_v0 = vpack.c.bf16 %v822_v59, %v821_v56  ;;  %v8507_v34 = vpack.c.bf16 %v878_v48, %v877_v45  ;;  %v847_v56 = vld [vmem:[%s10055_s25 + $0xc40] sm:$0xff]  ;;  %v904_v45 = vld [vmem:[%s10055_s25 + $0xe08] sm:$0xff] }
  0xee   : > { %8442 = vmatprep.subr.bf16.mxu1 %v8441_v4  ;;  %v871_v4 = vld [vmem:[%s10055_s25 + $0xd00] sm:$0xff] }
  0xef   : > { %v8495_v15 = vpack.c.bf16 %v872_v6, %v871_v4  ;;  %v879_v59 = vld [vmem:[%s10055_s25 + $0xd40] sm:$0xff]  ;;  %v850_v4 = vld [vmem:[%s10055_s25 + $0xc58] sm:$0xff] }
  0xf0   : > { %8412 = vmatpush3.bf16.msra.mxu0 %v8411_v10  ;;  %v889_v10 = vld [vmem:[%s10055_s25 + $0xd90] sm:$0xff] }
  0xf1   : > { %8444 = vmatpush3.bf16.msra.mxu1 %v8443_v11  ;;  %8414 = vmatprep.subr.bf16.mxu0 %v8413_v12  ;;  %v890_v11 = vld [vmem:[%s10055_s25 + $0xd98] sm:$0xff]  ;;  %v10537_v12 = vrot.slane %v2117_v62, %v10118_v14  ;;  %v897_v62 = vld [vmem:[%s10055_s25 + $0xdd0] sm:$0xff] }
  0xf2   : > { %8446 = vmatprep.subr.bf16.mxu1 %v8445_v18  ;;  %v841_v18 = vld [vmem:[%s10055_s25 + $0xc10] sm:$0xff]  ;;  %v8497_v20 = vpack.c.bf16 %v890_v11, %v889_v10  ;;  %v868_v10 = vld [vmem:[%s10055_s25 + $0xce8] sm:$0xff]  ;;  %v899_v11 = vld [vmem:[%s10055_s25 + $0xde0] sm:$0xff] }
  0xf3   : > { %v2133_v27 = vcombine.high %v10537_v12, %v10537_v12  ;;  %v8467_v28 = vpack.c.bf16 %v842_v19, %v841_v18  ;;  %v8485_v18 = vpack.c.bf16 %v868_v10, %v867_v8  ;;  %v851_v19 = vld [vmem:[%s10055_s25 + $0xc60] sm:$0xff] }
  0xf4   : > { %8416 = vmatpush3.bf16.msra.mxu0 %v8415_v23  ;;  %v860_v23 = vld [vmem:[%s10055_s25 + $0xca8] sm:$0xff]  ;;  %v907_v8 = vld [vmem:[%s10055_s25 + $0xe20] sm:$0xff] }
  0xf5   : > { %8448 = vmatpush3.bf16.msra.mxu1 %v8447_v24  ;;  %8418 = vmatprep.subr.bf16.mxu0 %v8417_v25  ;;  %v2132_v24 = vcombine.high %v10532_v9, %v10532_v9  ;;  %v891_v25 = vld [vmem:[%s10055_s25 + $0xda0] sm:$0xff]  ;;  %v8469_v30 = vpack.c.bf16 %v860_v23, %v859_v22  ;;  %v884_v22 = vld [vmem:[%s10055_s25 + $0xd68] sm:$0xff]  ;;  %v869_v23 = vld [vmem:[%s10055_s25 + $0xcf0] sm:$0xff] }
  0xf6   : > { %8450 = vmatprep.subr.bf16.mxu1 %v8449_v29  ;;  %v8499_v29 = vpack.c.bf16 %v874_v21, %v873_v16  ;;  %v8501_v35 = vpack.c.bf16 %v892_v26, %v891_v25  ;;  %v852_v16 = vld [vmem:[%s10055_s25 + $0xc68] sm:$0xff]  ;;  %v901_v25 = vld [vmem:[%s10055_s25 + $0xdf0] sm:$0xff]  ;;  %v902_v26 = vld [vmem:[%s10055_s25 + $0xdf8] sm:$0xff] }
  0xf7   : > { %v939_v10 = vld [vmem:[%s10055_s25 + $0xf20] sm:$0xff] }
  0xf8   : > { %8420 = vmatpush3.bf16.msra.mxu0 %v8419_v37  ;;  %v861_v37 = vld [vmem:[%s10055_s25 + $0xcb0] sm:$0xff] }
  0xf9   : > { %8452 = vmatpush3.bf16.msra.mxu1 %v8451_v38  ;;  %8422 = vmatprep.subr.bf16.mxu0 %v8421_v39  ;;  %v862_v38 = vld [vmem:[%s10055_s25 + $0xcb8] sm:$0xff] }
  0xfa   : > { %8454 = vmatprep.subr.bf16.mxu1 %v8453_v42  ;;  %v894_v39 = vld [vmem:[%s10055_s25 + $0xdb8] sm:$0xff]  ;;  %v8473_v41 = vpack.c.bf16 %v862_v38, %v861_v37  ;;  %v845_v42 = vld [vmem:[%s10055_s25 + $0xc30] sm:$0xff]  ;;  %v919_v37 = vld [vmem:[%s10055_s25 + $0xe80] sm:$0xff] }
  0xfb   : > { %v920_v38 = vld [vmem:[%s10055_s25 + $0xe88] sm:$0xff] }
  0xfc   : > { %8424 = vmatpush3.bf16.msra.mxu0 %v8423_v50  ;;  %v864_v50 = vld [vmem:[%s10055_s25 + $0xcc8] sm:$0xff] }
  0xfd   : > { %8456 = vmatpush3.bf16.msra.mxu1 %v8455_v52  ;;  %8426 = vmatprep.subr.bf16.mxu0 %v8425_v54  ;;  %v896_v52 = vld [vmem:[%s10055_s25 + $0xdc8] sm:$0xff]  ;;  %v8475_v54 = vpack.c.bf16 %v846_v44, %v845_v42  ;;  %v8477_v55 = vpack.c.bf16 %v864_v50, %v863_v49  ;;  %v8525_v42 = vpack.c.bf16 %v920_v38, %v919_v37  ;;  %v903_v44 = vld [vmem:[%s10055_s25 + $0xe00] sm:$0xff]  ;;  %v921_v50 = vld [vmem:[%s10055_s25 + $0xe90] sm:$0xff] }
  0xfe   : > { %8458 = vmatprep.subr.bf16.mxu1 %v8457_v57  ;;  %v848_v57 = vld [vmem:[%s10055_s25 + $0xc48] sm:$0xff]  ;;  %v8509_v60 = vpack.c.bf16 %v896_v52, %v895_v51  ;;  %v922_v51 = vld [vmem:[%s10055_s25 + $0xe98] sm:$0xff] }
  0xff   : > { %v936_v49 = vld [vmem:[%s10055_s25 + $0xf08] sm:$0xff] }
 0x100   : > { %8428 = vmatpush3.bf16.msra.mxu0 %v8427_v63  ;;  %v898_v63 = vld [vmem:[%s10055_s25 + $0xdd8] sm:$0xff]  ;;  %v944_v38 = vld [vmem:[%s10055_s25 + $0xf48] sm:$0xff] }
 0x101   : > { %8460 = vmatpush3.bf16.msra.mxu1 %v8459_v0  ;;  %8462 = vmatprep.subr.bf16.mxu0 %v8461_v1  ;;  %v8479_v0 = vpack.c.bf16 %v848_v57, %v847_v56  ;;  %v8511_v1 = vpack.c.bf16 %v880_v61, %v879_v59  ;;  %v8513_v6 = vpack.c.bf16 %v898_v63, %v897_v62  ;;  %v906_v61 = vld [vmem:[%s10055_s25 + $0xe18] sm:$0xff]  ;;  %v923_v63 = vld [vmem:[%s10055_s25 + $0xea0] sm:$0xff] }
 0x102   : > { %8494 = vmatprep.subr.bf16.mxu1 %v8493_v5  ;;  %v881_v5 = vld [vmem:[%s10055_s25 + $0xd50] sm:$0xff]  ;;  %v8527_v56 = vpack.c.bf16 %v904_v45, %v903_v44  ;;  %v8529_v59 = vpack.c.bf16 %v922_v51, %v921_v50  ;;  %v938_v62 = vld [vmem:[%s10055_s25 + $0xf18] sm:$0xff]  ;;  %v931_v51 = vld [vmem:[%s10055_s25 + $0xee0] sm:$0xff] }
 0x103   : > { %3284 = vmatmul.mubr.f32.vlgmr.msra.gmra.mrb[10].mxu0 %v10455_v32  ;;  %v844_v32 = vld [vmem:[%s10055_s25 + $0xc28] sm:$0xff]  ;;  %v913_v45 = vld [vmem:[%s10055_s25 + $0xe50] sm:$0xff]  ;;  %v946_v50 = vld [vmem:[%s10055_s25 + $0xf58] sm:$0xff] }
 0x104   : > { %8464 = vmatpush3.bf16.msra.mxu0 %v8463_v13  ;;  %3354 = vmatmul.mubr.f32.vlgmr.msra.gmra.mrb[10].mxu1 %v10460_v43  ;;  %v893_v43 = vld [vmem:[%s10055_s25 + $0xdb0] sm:$0xff]  ;;  %v8471_v40 = vpack.c.bf16 %v844_v32, %v843_v31  ;;  %v900_v13 = vld [vmem:[%s10055_s25 + $0xde8] sm:$0xff]  ;;  %v854_v32 = vld [vmem:[%s10055_s25 + $0xc78] sm:$0xff] }
 0x105   : > { %8496 = vmatpush3.bf16.msra.mxu1 %v8495_v15  ;;  %8466 = vmatprep.subr.bf16.mxu0 %v8465_v17  ;;  %v8505_v47 = vpack.c.bf16 %v894_v39, %v893_v43  ;;  %v8483_v15 = vpack.c.bf16 %v850_v4, %v849_v3  ;;  %v8515_v17 = vpack.c.bf16 %v882_v7, %v881_v5  ;;  %v853_v31 = vld [vmem:[%s10055_s25 + $0xc70] sm:$0xff]  ;;  %v951_v43 = vld [vmem:[%s10055_s25 + $0xf80] sm:$0xff]  ;;  %v952_v39 = vld [vmem:[%s10055_s25 + $0xf88] sm:$0xff] }
 0x106   : > { %8498 = vmatprep.subr.bf16.mxu1 %v8497_v20  ;;  %3423 = vmatprep.mubr.f32.mxu0 %v2132_v24  ;;  %v883_v20 = vld [vmem:[%s10055_s25 + $0xd60] sm:$0xff]  ;;  %v8517_v21 = vpack.c.bf16 %v900_v13, %v899_v11  ;;  %v870_v24 = vld [vmem:[%s10055_s25 + $0xcf8] sm:$0xff]  ;;  %v8557_v48 = vpack.c.bf16 %v952_v39, %v951_v43  ;;  %v956_v3 = vld [vmem:[%s10055_s25 + $0xfa8] sm:$0xff] }
 0x107   : > { %3493 = vmatprep.mubr.f32.mxu1 %v2133_v27  ;;  %v8487_v27 = vpack.c.bf16 %v852_v16, %v851_v19  ;;  %v940_v13 = vld [vmem:[%s10055_s25 + $0xf28] sm:$0xff]  ;;  %v929_v43 = vld [vmem:[%s10055_s25 + $0xed0] sm:$0xff]  ;;  %v930_v39 = vld [vmem:[%s10055_s25 + $0xed8] sm:$0xff] }
 0x108   : > { %8468 = vmatpush3.bf16.msra.mxu0 %v8467_v28  ;;  %v438_v28 = vld [vmem:[%s10065_s21 + $0x38] sm:$0xff]  ;;  %v8567_v16 = vpack.c.bf16 %v940_v13, %v939_v10  ;;  %v8545_v44 = vpack.c.bf16 %v930_v39, %v929_v43  ;;  %v439_v10 = vld [vmem:[%s10065_s21 + $0x40] sm:$0xff] }
 0x109   : > { %8500 = vmatpush3.bf16.msra.mxu1 %v8499_v29  ;;  %8470 = vmatprep.subr.bf16.mxu0 %v8469_v30  ;;  %v8519_v29 = vpack.c.bf16 %v884_v22, %v883_v20  ;;  %v8489_v30 = vpack.c.bf16 %v870_v24, %v869_v23  ;;  %v10609_v52 = vrot.slane %v438_v28, %v10118_v14  ;;  %v910_v22 = vld [vmem:[%s10055_s25 + $0xe38] sm:$0xff]  ;;  %v941_v23 = vld [vmem:[%s10055_s25 + $0xf30] sm:$0xff] }
 0x10a   : > { %8502 = vmatprep.subr.bf16.mxu1 %v8501_v35  ;;  %v8521_v35 = vpack.c.bf16 %v902_v26, %v901_v25  ;;  %v942_v25 = vld [vmem:[%s10055_s25 + $0xf38] sm:$0xff]  ;;  %v927_v26 = vld [vmem:[%s10055_s25 + $0xec0] sm:$0xff] }
 0x10b   : > { %v1018_v43 = vld [vmem:[%s10055_s25 + $0x1198] sm:$0xff] }
 0x10c   : > { %8472 = vmatpush3.bf16.msra.mxu0 %v8471_v40  ;;  %v2134_v40 = vcombine.high %v438_v28, %v438_v28  ;;  %v959_v28 = vld [vmem:[%s10055_s25 + $0xfc0] sm:$0xff] }
 0x10d   : > { %8504 = vmatpush3.bf16.msra.mxu1 %v8503_v53  ;;  %8474 = vmatprep.subr.bf16.mxu0 %v8473_v41  ;;  %v8491_v53 = vpack.c.bf16 %v854_v32, %v853_v31  ;;  %v8523_v41 = vpack.c.bf16 %v886_v36, %v885_v33  ;;  %v8571_v31 = vpack.c.bf16 %v942_v25, %v941_v23  ;;  %v911_v33 = vld [vmem:[%s10055_s25 + $0xe40] sm:$0xff] }
 0x10e   : > { %8506 = vmatprep.subr.bf16.mxu1 %v8505_v47  ;;  %v935_v47 = vld [vmem:[%s10055_s25 + $0xf00] sm:$0xff]  ;;  %v2151_v25 = vcombine.high %v439_v10, %v439_v10 }
 0x10f   : > { %v8559_v57 = vpack.c.bf16 %v936_v49, %v935_v47  ;;  %v943_v36 = vld [vmem:[%s10055_s25 + $0xf40] sm:$0xff]  ;;  %v914_v47 = vld [vmem:[%s10055_s25 + $0xe58] sm:$0xff] }
 0x110   : > { %8476 = vmatpush3.bf16.msra.mxu0 %v8475_v54  ;;  %v953_v54 = vld [vmem:[%s10055_s25 + $0xf90] sm:$0xff]  ;;  %v1015_v23 = vld [vmem:[%s10055_s25 + $0x1180] sm:$0xff]  ;;  %v10693_v39 = vrot.slane %v2151_v25, %v10118_v14  ;;  %v994_v25 = vld [vmem:[%s10055_s25 + $0x10d8] sm:$0xff] }
 0x111   : > { %8508 = vmatpush3.bf16.msra.mxu1 %v8507_v34  ;;  %8478 = vmatprep.subr.bf16.mxu0 %v8477_v55  ;;  %v954_v34 = vld [vmem:[%s10055_s25 + $0xf98] sm:$0xff]  ;;  %v10614_v55 = vrot.slane %v2134_v40, %v10118_v14  ;;  %v961_v40 = vld [vmem:[%s10055_s25 + $0xfd0] sm:$0xff] }
 0x112   : > { %8510 = vmatprep.subr.bf16.mxu1 %v8509_v60  ;;  %v905_v60 = vld [vmem:[%s10055_s25 + $0xe10] sm:$0xff]  ;;  %v8561_v46 = vpack.c.bf16 %v954_v34, %v953_v54  ;;  %v932_v54 = vld [vmem:[%s10055_s25 + $0xee8] sm:$0xff]  ;;  %v963_v34 = vld [vmem:[%s10055_s25 + $0xfe0] sm:$0xff] }
 0x113   : > { %v2150_v4 = vcombine.high %v10614_v55, %v10614_v55  ;;  %v8531_v5 = vpack.c.bf16 %v906_v61, %v905_v60  ;;  %v8549_v60 = vpack.c.bf16 %v932_v54, %v931_v51  ;;  %v915_v61 = vld [vmem:[%s10055_s25 + $0xe60] sm:$0xff] }
 0x114   : > { %8480 = vmatpush3.bf16.msra.mxu0 %v8479_v0  ;;  %v924_v0 = vld [vmem:[%s10055_s25 + $0xea8] sm:$0xff]  ;;  %v1019_v54 = vld [vmem:[%s10055_s25 + $0x11a0] sm:$0xff] }
 0x115   : > { %8512 = vmatpush3.bf16.msra.mxu1 %v8511_v1  ;;  %8482 = vmatprep.subr.bf16.mxu0 %v8481_v2  ;;  %v2149_v1 = vcombine.high %v10609_v52, %v10609_v52  ;;  %v955_v2 = vld [vmem:[%s10055_s25 + $0xfa0] sm:$0xff]  ;;  %v8533_v7 = vpack.c.bf16 %v924_v0, %v923_v63  ;;  %v948_v0 = vld [vmem:[%s10055_s25 + $0xf68] sm:$0xff] }
 0x116   : > { %8514 = vmatprep.subr.bf16.mxu1 %v8513_v6  ;;  %v8563_v6 = vpack.c.bf16 %v938_v62, %v937_v58  ;;  %v8565_v11 = vpack.c.bf16 %v956_v3, %v955_v2  ;;  %v916_v58 = vld [vmem:[%s10055_s25 + $0xe68] sm:$0xff]  ;;  %v934_v2 = vld [vmem:[%s10055_s25 + $0xef8] sm:$0xff] }
 0x118   : > { %8484 = vmatpush3.bf16.msra.mxu0 %v8483_v15  ;;  %v925_v15 = vld [vmem:[%s10055_s25 + $0xeb0] sm:$0xff] }
 0x119   : > { %8516 = vmatpush3.bf16.msra.mxu1 %v8515_v17  ;;  %8486 = vmatprep.subr.bf16.mxu0 %v8485_v18  ;;  %v926_v17 = vld [vmem:[%s10055_s25 + $0xeb8] sm:$0xff] }
 0x11a   : > { %8518 = vmatprep.subr.bf16.mxu1 %v8517_v21  ;;  %v958_v18 = vld [vmem:[%s10055_s25 + $0xfb8] sm:$0xff]  ;;  %v8537_v20 = vpack.c.bf16 %v926_v17, %v925_v15  ;;  %v909_v21 = vld [vmem:[%s10055_s25 + $0xe30] sm:$0xff] }
 0x11b   : > { %v917_v17 = vld [vmem:[%s10055_s25 + $0xe70] sm:$0xff] }
 0x11c   : > { %8488 = vmatpush3.bf16.msra.mxu0 %v8487_v27  ;;  %v928_v27 = vld [vmem:[%s10055_s25 + $0xec8] sm:$0xff] }
 0x11d   : > { %8520 = vmatpush3.bf16.msra.mxu1 %v8519_v29  ;;  %8490 = vmatprep.subr.bf16.mxu0 %v8489_v30  ;;  %v960_v29 = vld [vmem:[%s10055_s25 + $0xfc8] sm:$0xff]  ;;  %v8539_v30 = vpack.c.bf16 %v910_v22, %v909_v21  ;;  %v8541_v32 = vpack.c.bf16 %v928_v27, %v927_v26 }
 0x11e   : > { %8522 = vmatprep.subr.bf16.mxu1 %v8521_v35  ;;  %v912_v35 = vld [vmem:[%s10055_s25 + $0xe48] sm:$0xff]  ;;  %v8573_v37 = vpack.c.bf16 %v960_v29, %v959_v28  ;;  %v967_v29 = vld [vmem:[%s10055_s25 + $0x1000] sm:$0xff] }
 0x11f   : > { %v984_v21 = vld [vmem:[%s10055_s25 + $0x1088] sm:$0xff] }
 0x120   : > { %8492 = vmatpush3.bf16.msra.mxu0 %v8491_v53  ;;  %v962_v53 = vld [vmem:[%s10055_s25 + $0xfd8] sm:$0xff] }
 0x121   : > { %8524 = vmatpush3.bf16.msra.mxu1 %v8523_v41  ;;  %8526 = vmatprep.subr.bf16.mxu0 %v8525_v42  ;;  %v8543_v41 = vpack.c.bf16 %v912_v35, %v911_v33  ;;  %v8575_v42 = vpack.c.bf16 %v944_v38, %v943_v36  ;;  %v8577_v49 = vpack.c.bf16 %v962_v53, %v961_v40  ;;  %v1000_v33 = vld [vmem:[%s10055_s25 + $0x1108] sm:$0xff]  ;;  %v985_v35 = vld [vmem:[%s10055_s25 + $0x1090] sm:$0xff]  ;;  %v986_v36 = vld [vmem:[%s10055_s25 + $0x1098] sm:$0xff] }
 0x122   : > { %8558 = vmatprep.subr.bf16.mxu1 %v8557_v48  ;;  %v945_v48 = vld [vmem:[%s10055_s25 + $0xf50] sm:$0xff] }
 0x123   : > { %3424 = vmatmul.mubr.f32.vlgmr.msra.gmra.mrb[12].mxu0 %v10532_v9  ;;  %v908_v9 = vld [vmem:[%s10055_s25 + $0xe28] sm:$0xff]  ;;  %v1017_v38 = vld [vmem:[%s10055_s25 + $0x1190] sm:$0xff] }
 0x124   : > { %8528 = vmatpush3.bf16.msra.mxu0 %v8527_v56  ;;  %3494 = vmatmul.mubr.f32.vlgmr.msra.gmra.mrb[12].mxu1 %v10537_v12  ;;  %v957_v12 = vld [vmem:[%s10055_s25 + $0xfb0] sm:$0xff]  ;;  %v8535_v19 = vpack.c.bf16 %v908_v9, %v907_v8  ;;  %v964_v56 = vld [vmem:[%s10055_s25 + $0xfe8] sm:$0xff]  ;;  %v8551_v9 = vpack.c.bf16 %v916_v58, %v915_v61  ;;  %v971_v61 = vld [vmem:[%s10055_s25 + $0x1020] sm:$0xff] }
 0x125   : > { %8560 = vmatpush3.bf16.msra.mxu1 %v8559_v57  ;;  %8530 = vmatprep.subr.bf16.mxu0 %v8529_v59  ;;  %v8569_v24 = vpack.c.bf16 %v958_v18, %v957_v12  ;;  %v8547_v57 = vpack.c.bf16 %v914_v47, %v913_v45  ;;  %v8579_v59 = vpack.c.bf16 %v946_v50, %v945_v48  ;;  %v918_v12 = vld [vmem:[%s10055_s25 + $0xe78] sm:$0xff]  ;;  %v949_v18 = vld [vmem:[%s10055_s25 + $0xf70] sm:$0xff]  ;;  %v988_v50 = vld [vmem:[%s10055_s25 + $0x10a8] sm:$0xff] }
 0x126   : > { %8562 = vmatprep.subr.bf16.mxu1 %v8561_v46  ;;  %3563 = vmatprep.mubr.f32.mxu0 %v2149_v1  ;;  %v947_v46 = vld [vmem:[%s10055_s25 + $0xf60] sm:$0xff]  ;;  %v8581_v63 = vpack.c.bf16 %v964_v56, %v963_v34  ;;  %v933_v1 = vld [vmem:[%s10055_s25 + $0xef0] sm:$0xff]  ;;  %v8555_v26 = vpack.c.bf16 %v918_v12, %v917_v17  ;;  %v8625_v47 = vpack.c.bf16 %v1018_v43, %v1017_v38  ;;  %v1002_v48 = vld [vmem:[%s10055_s25 + $0x1118] sm:$0xff] }
 0x127   : > { %3633 = vmatprep.mubr.f32.mxu1 %v2150_v4  ;;  %v8583_v13 = vpack.c.bf16 %v948_v0, %v947_v46  ;;  %v8553_v15 = vpack.c.bf16 %v934_v2, %v933_v1  ;;  %v1001_v45 = vld [vmem:[%s10055_s25 + $0x1110] sm:$0xff]  ;;  %v1020_v34 = vld [vmem:[%s10055_s25 + $0x11a8] sm:$0xff]  ;;  %v2167_v56 = vcombine.high %v10693_v39, %v10693_v39  ;;  %v1003_v58 = vld [vmem:[%s10055_s25 + $0x1120] sm:$0xff] }
 0x128   : > { %8532 = vmatpush3.bf16.msra.mxu0 %v8531_v5  ;;  %v965_v5 = vld [vmem:[%s10055_s25 + $0xff0] sm:$0xff]  ;;  %v8629_v46 = vpack.c.bf16 %v1020_v34, %v1019_v54  ;;  %v990_v0 = vld [vmem:[%s10055_s25 + $0x10b8] sm:$0xff]  ;;  %v995_v38 = vld [vmem:[%s10055_s25 + $0x10e0] sm:$0xff] }
 0x129   : > { %8564 = vmatpush3.bf16.msra.mxu1 %v8563_v6  ;;  %8534 = vmatprep.subr.bf16.mxu0 %v8533_v7  ;;  %v966_v6 = vld [vmem:[%s10055_s25 + $0xff8] sm:$0xff]  ;;  %v996_v43 = vld [vmem:[%s10055_s25 + $0x10e8] sm:$0xff]  ;;  %v997_v54 = vld [vmem:[%s10055_s25 + $0x10f0] sm:$0xff] }
 0x12a   : > { %8566 = vmatprep.subr.bf16.mxu1 %v8565_v11  ;;  %v1022_v1 = vld [vmem:[%s10055_s25 + $0x11b8] sm:$0xff] }
 0x12b   : > { %v998_v34 = vld [vmem:[%s10055_s25 + $0x10f8] sm:$0xff] }
 0x12c   : > { %8536 = vmatpush3.bf16.msra.mxu0 %v8535_v19  ;;  %v8585_v19 = vpack.c.bf16 %v966_v6, %v965_v5  ;;  %v973_v5 = vld [vmem:[%s10055_s25 + $0x1030] sm:$0xff]  ;;  %v974_v6 = vld [vmem:[%s10055_s25 + $0x1038] sm:$0xff] }
 0x12d   : > { %8568 = vmatpush3.bf16.msra.mxu1 %v8567_v16  ;;  %8538 = vmatprep.subr.bf16.mxu0 %v8537_v20  ;;  %v950_v16 = vld [vmem:[%s10055_s25 + $0xf78] sm:$0xff]  ;;  %v983_v20 = vld [vmem:[%s10055_s25 + $0x1080] sm:$0xff]  ;;  %v8603_v17 = vpack.c.bf16 %v974_v6, %v973_v5 }
 0x12e   : > { %8570 = vmatprep.subr.bf16.mxu1 %v8569_v24  ;;  %v1016_v24 = vld [vmem:[%s10055_s25 + $0x1188] sm:$0xff]  ;;  %v8587_v27 = vpack.c.bf16 %v950_v16, %v949_v18  ;;  %v8589_v28 = vpack.c.bf16 %v984_v21, %v983_v20  ;;  %v1007_v20 = vld [vmem:[%s10055_s25 + $0x1140] sm:$0xff]  ;;  %v1014_v5 = vld [vmem:[%s10055_s25 + $0x1178] sm:$0xff] }
 0x12f   : > { %v976_v16 = vld [vmem:[%s10055_s25 + $0x1048] sm:$0xff]  ;;  %v1047_v6 = vld [vmem:[%s10055_s25 + $0x1280] sm:$0xff] }
 0x130   : > { %8540 = vmatpush3.bf16.msra.mxu0 %v8539_v30  ;;  %v968_v30 = vld [vmem:[%s10055_s25 + $0x1008] sm:$0xff] }
 0x131   : > { %8572 = vmatpush3.bf16.msra.mxu1 %v8571_v31  ;;  %8542 = vmatprep.subr.bf16.mxu0 %v8541_v32  ;;  %v999_v31 = vld [vmem:[%s10055_s25 + $0x1100] sm:$0xff]  ;;  %v8621_v32 = vpack.c.bf16 %v1016_v24, %v1015_v23  ;;  %v8591_v40 = vpack.c.bf16 %v968_v30, %v967_v29  ;;  %v1008_v23 = vld [vmem:[%s10055_s25 + $0x1148] sm:$0xff]  ;;  %v993_v24 = vld [vmem:[%s10055_s25 + $0x10d0] sm:$0xff] }
 0x132   : > { %8574 = vmatprep.subr.bf16.mxu1 %v8573_v37  ;;  %v10688_v37 = vrot.slane %v439_v10, %v10118_v14  ;;  %v8623_v53 = vpack.c.bf16 %v1000_v33, %v999_v31  ;;  %v991_v10 = vld [vmem:[%s10055_s25 + $0x10c0] sm:$0xff]  ;;  %v8639_v29 = vpack.c.bf16 %v1008_v23, %v1007_v20  ;;  %v8609_v30 = vpack.c.bf16 %v994_v25, %v993_v24  ;;  %v977_v31 = vld [vmem:[%s10055_s25 + $0x1050] sm:$0xff]  ;;  %v1082_v25 = vld [vmem:[%s10055_s25 + $0x1398] sm:$0xff] }
 0x133   : > { %v1009_v33 = vld [vmem:[%s10055_s25 + $0x1150] sm:$0xff] }
 0x134   : > { %8544 = vmatpush3.bf16.msra.mxu0 %v8543_v41  ;;  %v8593_v41 = vpack.c.bf16 %v986_v36, %v985_v35  ;;  %v2166_v51 = vcombine.high %v10688_v37, %v10688_v37  ;;  %v1010_v36 = vld [vmem:[%s10055_s25 + $0x1158] sm:$0xff]  ;;  %v1049_v20 = vld [vmem:[%s10055_s25 + $0x1290] sm:$0xff] }
 0x135   : > { %8576 = vmatpush3.bf16.msra.mxu1 %v8575_v42  ;;  %8546 = vmatprep.subr.bf16.mxu0 %v8545_v44  ;;  %v969_v42 = vld [vmem:[%s10055_s25 + $0x1010] sm:$0xff]  ;;  %v970_v44 = vld [vmem:[%s10055_s25 + $0x1018] sm:$0xff] }
 0x136   : > { %v6345_v62 = vpop.f32.mrb[0].mxu0  ;;  %8578 = vmatprep.subr.bf16.mxu1 %v8577_v49  ;;  %v987_v49 = vld [vmem:[%s10055_s25 + $0x10a0] sm:$0xff]  ;;  %v1081_v24 = vld [vmem:[%s10055_s25 + $0x1390] sm:$0xff] }
 0x137   : > { %v6380_v3 = vpop.f32.mrb[0].mxu1  ;;  %v6346_v4 = vpop.f32.mrb[1].mxu0 }
 0x138   : > { %v6347_v7 = vadd.f32 %v6346_v4, %v6345_v62  ;;  %v6381_v8 = vpop.f32.mrb[1].mxu1  ;;  %8548 = vmatpush3.bf16.msra.mxu0 %v8547_v57  ;;  %v8595_v57 = vpack.c.bf16 %v970_v44, %v969_v42  ;;  %v1004_v62 = vld [vmem:[%s10055_s25 + $0x1128] sm:$0xff]  ;;  %v8643_v42 = vpack.c.bf16 %v1010_v36, %v1009_v33  ;;  %v8613_v44 = vpack.c.bf16 %v996_v43, %v995_v38  ;;  %v1051_v36 = vld [vmem:[%s10055_s25 + $0x12a0] sm:$0xff] }
 0x139   : > { %v6382_v11 = vadd.f32 %v6381_v8, %v6380_v3  ;;  %8580 = vmatpush3.bf16.msra.mxu1 %v8579_v59  ;;  %8550 = vmatprep.subr.bf16.mxu0 %v8549_v60  ;;  %v8627_v59 = vpack.c.bf16 %v1002_v48, %v1001_v45  ;;  %v8597_v60 = vpack.c.bf16 %v988_v50, %v987_v49  ;;  %v979_v45 = vld [vmem:[%s10055_s25 + $0x1060] sm:$0xff]  ;;  %v1052_v38 = vld [vmem:[%s10055_s25 + $0x12a8] sm:$0xff] }
 0x13a   : > { %8582 = vmatprep.subr.bf16.mxu1 %v8581_v63  ;;  %v989_v63 = vld [vmem:[%s10055_s25 + $0x10b0] sm:$0xff]  ;;  %v8631_v3 = vpack.c.bf16 %v1004_v62, %v1003_v58  ;;  %v1011_v48 = vld [vmem:[%s10055_s25 + $0x1160] sm:$0xff]  ;;  %v8689_v33 = vpack.c.bf16 %v1082_v25, %v1081_v24  ;;  %v1060_v25 = vld [vmem:[%s10055_s25 + $0x12e8] sm:$0xff] }
 0x13b   : > { %v10677_v22 = vadd.f32 %v6382_v11, %v6347_v7  ;;  %v8601_v4 = vpack.c.bf16 %v990_v0, %v989_v63  ;;  %v1005_v7 = vld [vmem:[%s10055_s25 + $0x1130] sm:$0xff]  ;;  %v992_v11 = vld [vmem:[%s10055_s25 + $0x10c8] sm:$0xff]  ;;  %v8617_v0 = vpack.c.bf16 %v998_v34, %v997_v54  ;;  %v1054_v54 = vld [vmem:[%s10055_s25 + $0x12b8] sm:$0xff] }
 0x13c   : > { %8552 = vmatpush3.bf16.msra.mxu0 %v8551_v9  ;;  %v1006_v9 = vld [vmem:[%s10055_s25 + $0x1138] sm:$0xff]  ;;  %v8605_v18 = vpack.c.bf16 %v992_v11, %v991_v10  ;;  %v1059_v24 = vld [vmem:[%s10055_s25 + $0x12e0] sm:$0xff] }
 0x13d   : > { %8584 = vmatpush3.bf16.msra.mxu1 %v8583_v13  ;;  %8554 = vmatprep.subr.bf16.mxu0 %v8553_v15  ;;  %v1023_v13 = vld [vmem:[%s10055_s25 + $0x11c0] sm:$0xff]  ;;  %v1024_v15 = vld [vmem:[%s10055_s25 + $0x11c8] sm:$0xff]  ;;  %v8635_v12 = vpack.c.bf16 %v1006_v9, %v1005_v7  ;;  %v1086_v34 = vld [vmem:[%s10055_s25 + $0x13b8] sm:$0xff] }
 0x13e   : > { %8586 = vmatprep.subr.bf16.mxu1 %v8585_v19  ;;  %v975_v19 = vld [vmem:[%s10055_s25 + $0x1040] sm:$0xff]  ;;  %v8637_v21 = vpack.c.bf16 %v1024_v15, %v1023_v13  ;;  %v1048_v7 = vld [vmem:[%s10055_s25 + $0x1288] sm:$0xff] }
 0x13f   : > { %v1080_v9 = vld [vmem:[%s10055_s25 + $0x1388] sm:$0xff]  ;;  %v8653_v15 = vpack.c.bf16 %v1048_v7, %v1047_v6  ;;  %v1071_v6 = vld [vmem:[%s10055_s25 + $0x1340] sm:$0xff] }
 0x140   : > { %8556 = vmatpush3.bf16.msra.mxu0 %v8555_v26  ;;  %v1025_v26 = vld [vmem:[%s10055_s25 + $0x11d0] sm:$0xff] }
 0x141   : > { %8588 = vmatpush3.bf16.msra.mxu1 %v8587_v27  ;;  %8590 = vmatprep.subr.bf16.mxu0 %v8589_v28  ;;  %v1026_v27 = vld [vmem:[%s10055_s25 + $0x11d8] sm:$0xff]  ;;  %v8607_v28 = vpack.c.bf16 %v976_v16, %v975_v19  ;;  %v1064_v16 = vld [vmem:[%s10055_s25 + $0x1308] sm:$0xff] }
 0x142   : > { %8622 = vmatprep.subr.bf16.mxu1 %v8621_v32  ;;  %v978_v32 = vld [vmem:[%s10055_s25 + $0x1058] sm:$0xff]  ;;  %v8641_v35 = vpack.c.bf16 %v1026_v27, %v1025_v26 }
 0x143   : > { %3564 = vmatmul.mubr.f32.vlgmr.msra.gmra.mrb[14].mxu0 %v10609_v52  ;;  %v972_v52 = vld [vmem:[%s10055_s25 + $0x1028] sm:$0xff] }
 0x144   : > { %8592 = vmatpush3.bf16.msra.mxu0 %v8591_v40  ;;  %3634 = vmatmul.mubr.f32.vlgmr.msra.gmra.mrb[14].mxu1 %v10614_v55  ;;  %v1021_v55 = vld [vmem:[%s10055_s25 + $0x11b0] sm:$0xff]  ;;  %v8599_v2 = vpack.c.bf16 %v972_v52, %v971_v61  ;;  %v1027_v40 = vld [vmem:[%s10055_s25 + $0x11e0] sm:$0xff] }
 0x145   : > { %8624 = vmatpush3.bf16.msra.mxu1 %v8623_v53  ;;  %8594 = vmatprep.subr.bf16.mxu0 %v8593_v41  ;;  %v8633_v8 = vpack.c.bf16 %v1022_v1, %v1021_v55  ;;  %v1028_v53 = vld [vmem:[%s10055_s25 + $0x11e8] sm:$0xff]  ;;  %v8611_v41 = vpack.c.bf16 %v978_v32, %v977_v31  ;;  %v981_v55 = vld [vmem:[%s10055_s25 + $0x1070] sm:$0xff]  ;;  %v982_v1 = vld [vmem:[%s10055_s25 + $0x1078] sm:$0xff] }
 0x146   : > { %8626 = vmatprep.subr.bf16.mxu1 %v8625_v47  ;;  %3703 = vmatprep.mubr.f32.mxu0 %v2166_v51  ;;  %v980_v47 = vld [vmem:[%s10055_s25 + $0x1068] sm:$0xff]  ;;  %v8645_v50 = vpack.c.bf16 %v1028_v53, %v1027_v40  ;;  %v1034_v31 = vld [vmem:[%s10055_s25 + $0x1218] sm:$0xff]  ;;  %v1065_v32 = vld [vmem:[%s10055_s25 + $0x1310] sm:$0xff] }
 0x147   : > { %3773 = vmatprep.mubr.f32.mxu1 %v2167_v56  ;;  %v1012_v51 = vld [vmem:[%s10055_s25 + $0x1168] sm:$0xff]  ;;  %v8615_v58 = vpack.c.bf16 %v980_v47, %v979_v45  ;;  %v1083_v40 = vld [vmem:[%s10055_s25 + $0x13a0] sm:$0xff]  ;;  %v8661_v45 = vpack.c.bf16 %v1052_v38, %v1051_v36 }
 0x148   : > { %8596 = vmatpush3.bf16.msra.mxu0 %v8595_v57  ;;  %v8647_v63 = vpack.c.bf16 %v1012_v51, %v1011_v48  ;;  %v1084_v53 = vld [vmem:[%s10055_s25 + $0x13a8] sm:$0xff]  ;;  %v1035_v47 = vld [vmem:[%s10055_s25 + $0x1220] sm:$0xff]  ;;  %v1053_v51 = vld [vmem:[%s10055_s25 + $0x12b0] sm:$0xff] }
 0x149   : > { %8628 = vmatpush3.bf16.msra.mxu1 %v8627_v59  ;;  %8598 = vmatprep.subr.bf16.mxu0 %v8597_v60  ;;  %v1029_v59 = vld [vmem:[%s10055_s25 + $0x11f0] sm:$0xff]  ;;  %v1030_v60 = vld [vmem:[%s10055_s25 + $0x11f8] sm:$0xff]  ;;  %v1067_v48 = vld [vmem:[%s10055_s25 + $0x1320] sm:$0xff] }
 0x14a   : > { %8630 = vmatprep.subr.bf16.mxu1 %v8629_v46  ;;  %v440_v46 = vld [vmem:[%s10065_s21 + $0x48] sm:$0xff] }
 0x14b   : > { %v2168_v10 = vcombine.high %v440_v46, %v440_v46  ;;  %v10768_v23 = vrot.slane %v440_v46, %v10118_v14  ;;  %v1070_v46 = vld [vmem:[%s10055_s25 + $0x1338] sm:$0xff] }
 0x14c   : > { %8600 = vmatpush3.bf16.msra.mxu0 %v8599_v2  ;;  %v1013_v2 = vld [vmem:[%s10055_s25 + $0x1170] sm:$0xff] }
 0x14d   : > { %8632 = vmatpush3.bf16.msra.mxu1 %v8631_v3  ;;  %8602 = vmatprep.subr.bf16.mxu0 %v8601_v4  ;;  %v8649_v4 = vpack.c.bf16 %v1030_v60, %v1029_v59  ;;  %v8651_v13 = vpack.c.bf16 %v1014_v5, %v1013_v2  ;;  %v10773_v26 = vrot.slane %v2168_v10, %v10118_v14  ;;  %v1037_v60 = vld [vmem:[%s10055_s25 + $0x1230] sm:$0xff]  ;;  %v1040_v5 = vld [vmem:[%s10055_s25 + $0x1248] sm:$0xff]  ;;  %v1058_v10 = vld [vmem:[%s10055_s25 + $0x12d8] sm:$0xff] }
 0x14e   : > { %8634 = vmatprep.subr.bf16.mxu1 %v8633_v8  ;;  %v1079_v8 = vld [vmem:[%s10055_s25 + $0x1380] sm:$0xff]  ;;  %v2183_v43 = vcombine.high %v10768_v23, %v10768_v23  ;;  %v8665_v59 = vpack.c.bf16 %v1054_v54, %v1053_v51 }
 0x14f   : > { %v8685_v19 = vpack.c.bf16 %v1080_v9, %v1079_v8  ;;  %v1072_v8 = vld [vmem:[%s10055_s25 + $0x1348] sm:$0xff]  ;;  %v1057_v9 = vld [vmem:[%s10055_s25 + $0x12d0] sm:$0xff] }
 0x150   : > { %8604 = vmatpush3.bf16.msra.mxu0 %v8603_v17  ;;  %v1031_v17 = vld [vmem:[%s10055_s25 + $0x1200] sm:$0xff] }
 0x151   : > { %8636 = vmatpush3.bf16.msra.mxu1 %v8635_v12  ;;  %8606 = vmatprep.subr.bf16.mxu0 %v8605_v18  ;;  %v1032_v12 = vld [vmem:[%s10055_s25 + $0x1208] sm:$0xff]  ;;  %v1063_v18 = vld [vmem:[%s10055_s25 + $0x1300] sm:$0xff] }
 0x152   : > { %8638 = vmatprep.subr.bf16.mxu1 %v8637_v21  ;;  %v1050_v21 = vld [vmem:[%s10055_s25 + $0x1298] sm:$0xff]  ;;  %v8655_v27 = vpack.c.bf16 %v1032_v12, %v1031_v17  ;;  %v8703_v17 = vpack.c.bf16 %v1072_v8, %v1071_v6  ;;  %v8673_v12 = vpack.c.bf16 %v1058_v10, %v1057_v9  ;;  %v1113_v6 = vld [vmem:[%s10055_s25 + $0x1490] sm:$0xff] }
 0x153   : > { %v1145_v9 = vld [vmem:[%s10055_s25 + $0x1590] sm:$0xff]  ;;  %v1146_v10 = vld [vmem:[%s10055_s25 + $0x1598] sm:$0xff] }
 0x154   : > { %8608 = vmatpush3.bf16.msra.mxu0 %v8607_v28  ;;  %v8687_v28 = vpack.c.bf16 %v1064_v16, %v1063_v18  ;;  %v1041_v18 = vld [vmem:[%s10055_s25 + $0x1250] sm:$0xff] }
 0x155   : > { %8640 = vmatpush3.bf16.msra.mxu1 %v8639_v29  ;;  %8610 = vmatprep.subr.bf16.mxu0 %v8609_v30  ;;  %v8657_v29 = vpack.c.bf16 %v1050_v21, %v1049_v20  ;;  %v1033_v30 = vld [vmem:[%s10055_s25 + $0x1210] sm:$0xff]  ;;  %v1074_v21 = vld [vmem:[%s10055_s25 + $0x1358] sm:$0xff] }
 0x156   : > { %v6415_v49 = vpop.f32.mrb[2].mxu0  ;;  %8642 = vmatprep.subr.bf16.mxu1 %v8641_v35  ;;  %v1066_v35 = vld [vmem:[%s10055_s25 + $0x1318] sm:$0xff]  ;;  %v1073_v16 = vld [vmem:[%s10055_s25 + $0x1350] sm:$0xff] }
 0x157   : > { %v6416_v56 = vpop.f32.mrb[3].mxu0  ;;  %v6450_v57 = vpop.f32.mrb[2].mxu1 }
 0x158   : > { %v6417_v61 = vadd.f32 %v6416_v56, %v6415_v49  ;;  %8612 = vmatpush3.bf16.msra.mxu0 %v8611_v41  ;;  %v6451_v52 = vpop.f32.mrb[3].mxu1  ;;  %v2184_v41 = vcombine.high %v10773_v26, %v10773_v26  ;;  %v8693_v49 = vpack.c.bf16 %v1084_v53, %v1083_v40  ;;  %v1061_v40 = vld [vmem:[%s10055_s25 + $0x12f0] sm:$0xff]  ;;  %v1062_v53 = vld [vmem:[%s10055_s25 + $0x12f8] sm:$0xff] }
 0x159   : > { %v6452_v62 = vadd.f32 %v6451_v52, %v6450_v57  ;;  %8644 = vmatpush3.bf16.msra.mxu1 %v8643_v42  ;;  %8614 = vmatprep.subr.bf16.mxu0 %v8613_v44  ;;  %v8659_v42 = vpack.c.bf16 %v1034_v31, %v1033_v30  ;;  %v8691_v44 = vpack.c.bf16 %v1066_v35, %v1065_v32  ;;  %v1069_v52 = vld [vmem:[%s10055_s25 + $0x1330] sm:$0xff]  ;;  %v1043_v32 = vld [vmem:[%s10055_s25 + $0x1260] sm:$0xff] }
 0x15a   : > { %v2726_v3 = vadd.f32 %v6417_v61, %v10677_v22  ;;  %8646 = vmatprep.subr.bf16.mxu1 %v8645_v50  ;;  %v8619_v22 = vpack.c.bf16 %v982_v1, %v981_v55  ;;  %v1068_v50 = vld [vmem:[%s10055_s25 + $0x1328] sm:$0xff]  ;;  %v1038_v61 = vld [vmem:[%s10055_s25 + $0x1238] sm:$0xff]  ;;  %v8699_v2 = vpack.c.bf16 %v1070_v46, %v1069_v52  ;;  %v8707_v30 = vpack.c.bf16 %v1074_v21, %v1073_v16  ;;  %v1075_v35 = vld [vmem:[%s10055_s25 + $0x1360] sm:$0xff] }
 0x15b   : > { %v8695_v57 = vpack.c.bf16 %v1068_v50, %v1067_v48  ;;  %v1088_v55 = vld [vmem:[%s10055_s25 + $0x13c8] sm:$0xff]  ;;  %v8667_v1 = vpack.c.bf16 %v1038_v61, %v1037_v60  ;;  %v8677_v31 = vpack.c.bf16 %v1060_v25, %v1059_v24  ;;  %v8681_v54 = vpack.c.bf16 %v1062_v53, %v1061_v40  ;;  %v1078_v60 = vld [vmem:[%s10055_s25 + $0x1378] sm:$0xff]  ;;  %v1111_v61 = vld [vmem:[%s10055_s25 + $0x1480] sm:$0xff] }
 0x15c   : > { %v10759_v11 = vadd.f32 %v6452_v62, %v2726_v3  ;;  %8616 = vmatpush3.bf16.msra.mxu0 %v8615_v58  ;;  %v1055_v62 = vld [vmem:[%s10055_s25 + $0x12c0] sm:$0xff]  ;;  %v1112_v52 = vld [vmem:[%s10055_s25 + $0x1488] sm:$0xff]  ;;  %v8753_v16 = vpack.c.bf16 %v1146_v10, %v1145_v9  ;;  %v1118_v40 = vld [vmem:[%s10055_s25 + $0x14b8] sm:$0xff] }
 0x15d   : > { %8648 = vmatpush3.bf16.msra.mxu1 %v8647_v63  ;;  %8618 = vmatprep.subr.bf16.mxu0 %v8617_v0  ;;  %v1056_v63 = vld [vmem:[%s10055_s25 + $0x12c8] sm:$0xff]  ;;  %v1087_v0 = vld [vmem:[%s10055_s25 + $0x13c0] sm:$0xff]  ;;  %v1150_v53 = vld [vmem:[%s10055_s25 + $0x15b8] sm:$0xff] }
 0x15e   : > { %8650 = vmatprep.subr.bf16.mxu1 %v8649_v4  ;;  %v8669_v3 = vpack.c.bf16 %v1056_v63, %v1055_v62  ;;  %v1039_v4 = vld [vmem:[%s10055_s25 + $0x1240] sm:$0xff]  ;;  %v8701_v7 = vpack.c.bf16 %v1088_v55, %v1087_v0  ;;  %v1144_v46 = vld [vmem:[%s10055_s25 + $0x1588] sm:$0xff]  ;;  %v8717_v55 = vpack.c.bf16 %v1112_v52, %v1111_v61 }
 0x15f   : > { %v1115_v21 = vld [vmem:[%s10055_s25 + $0x14a0] sm:$0xff]  ;;  %v1116_v24 = vld [vmem:[%s10055_s25 + $0x14a8] sm:$0xff] }
 0x160   : > { %8620 = vmatpush3.bf16.msra.mxu0 %v8619_v22  ;;  %v1089_v22 = vld [vmem:[%s10055_s25 + $0x13d0] sm:$0xff]  ;;  %v1135_v61 = vld [vmem:[%s10055_s25 + $0x1540] sm:$0xff]  ;;  %v1124_v10 = vld [vmem:[%s10055_s25 + $0x14e8] sm:$0xff] }
 0x161   : > { %8652 = vmatpush3.bf16.msra.mxu1 %v8651_v13  ;;  %8654 = vmatprep.subr.bf16.mxu0 %v8653_v15  ;;  %v1090_v13 = vld [vmem:[%s10055_s25 + $0x13d8] sm:$0xff]  ;;  %v8671_v15 = vpack.c.bf16 %v1040_v5, %v1039_v4  ;;  %v1128_v5 = vld [vmem:[%s10055_s25 + $0x1508] sm:$0xff]  ;;  %v1123_v9 = vld [vmem:[%s10055_s25 + $0x14e0] sm:$0xff] }
 0x162   : > { %8686 = vmatprep.subr.bf16.mxu1 %v8685_v19  ;;  %v1042_v19 = vld [vmem:[%s10055_s25 + $0x1258] sm:$0xff]  ;;  %v8705_v20 = vpack.c.bf16 %v1090_v13, %v1089_v22 }
 0x163   : > { %3704 = vmatmul.mubr.f32.vlgmr.msra.gmra.mrb[16].mxu0 %v10688_v37  ;;  %v1036_v37 = vld [vmem:[%s10055_s25 + $0x1228] sm:$0xff] }
 0x164   : > { %8656 = vmatpush3.bf16.msra.mxu0 %v8655_v27  ;;  %3774 = vmatmul.mubr.f32.vlgmr.msra.gmra.mrb[16].mxu1 %v10693_v39  ;;  %v1085_v39 = vld [vmem:[%s10055_s25 + $0x13b0] sm:$0xff]  ;;  %v8663_v56 = vpack.c.bf16 %v1036_v37, %v1035_v47  ;;  %v1091_v27 = vld [vmem:[%s10055_s25 + $0x13e0] sm:$0xff] }
 0x165   : > { %8688 = vmatpush3.bf16.msra.mxu1 %v8687_v28  ;;  %8658 = vmatprep.subr.bf16.mxu0 %v8657_v29  ;;  %v8697_v58 = vpack.c.bf16 %v1086_v34, %v1085_v39  ;;  %v1092_v28 = vld [vmem:[%s10055_s25 + $0x13e8] sm:$0xff]  ;;  %v8675_v29 = vpack.c.bf16 %v1042_v19, %v1041_v18  ;;  %v1045_v39 = vld [vmem:[%s10055_s25 + $0x1270] sm:$0xff]  ;;  %v1046_v34 = vld [vmem:[%s10055_s25 + $0x1278] sm:$0xff] }
 0x166   : > { %8690 = vmatprep.subr.bf16.mxu1 %v8689_v33  ;;  %3843 = vmatprep.mubr.f32.mxu0 %v2183_v43  ;;  %v1044_v33 = vld [vmem:[%s10055_s25 + $0x1268] sm:$0xff]  ;;  %v8709_v38 = vpack.c.bf16 %v1092_v28, %v1091_v27  ;;  %v1098_v18 = vld [vmem:[%s10055_s25 + $0x1418] sm:$0xff]  ;;  %v1129_v19 = vld [vmem:[%s10055_s25 + $0x1510] sm:$0xff] }
 0x167   : > { %3913 = vmatprep.mubr.f32.mxu1 %v2184_v41  ;;  %v1076_v43 = vld [vmem:[%s10055_s25 + $0x1368] sm:$0xff]  ;;  %v8679_v48 = vpack.c.bf16 %v1044_v33, %v1043_v32  ;;  %v1147_v27 = vld [vmem:[%s10055_s25 + $0x15a0] sm:$0xff]  ;;  %v8725_v32 = vpack.c.bf16 %v1116_v24, %v1115_v21 }
 0x168   : > { %8660 = vmatpush3.bf16.msra.mxu0 %v8659_v42  ;;  %v8711_v51 = vpack.c.bf16 %v1076_v43, %v1075_v35  ;;  %v1148_v28 = vld [vmem:[%s10055_s25 + $0x15a8] sm:$0xff]  ;;  %v1099_v33 = vld [vmem:[%s10055_s25 + $0x1420] sm:$0xff]  ;;  %v1117_v43 = vld [vmem:[%s10055_s25 + $0x14b0] sm:$0xff] }
 0x169   : > { %8692 = vmatpush3.bf16.msra.mxu1 %v8691_v44  ;;  %8662 = vmatprep.subr.bf16.mxu0 %v8661_v45  ;;  %v1093_v44 = vld [vmem:[%s10055_s25 + $0x13f0] sm:$0xff]  ;;  %v1094_v45 = vld [vmem:[%s10055_s25 + $0x13f8] sm:$0xff]  ;;  %v1131_v35 = vld [vmem:[%s10055_s25 + $0x1520] sm:$0xff] }
 0x16a   : > { %8694 = vmatprep.subr.bf16.mxu1 %v8693_v49  ;;  %v441_v49 = vld [vmem:[%s10065_s21 + $0x50] sm:$0xff] }
 0x16b   : > { %v2185_v62 = vcombine.high %v441_v49, %v441_v49  ;;  %v10848_v8 = vrot.slane %v441_v49, %v10118_v14  ;;  %v1134_v49 = vld [vmem:[%s10055_s25 + $0x1538] sm:$0xff] }
 0x16c   : > { %8664 = vmatpush3.bf16.msra.mxu0 %v8663_v56  ;;  %v1077_v56 = vld [vmem:[%s10055_s25 + $0x1370] sm:$0xff] }
 0x16d   : > { %8696 = vmatpush3.bf16.msra.mxu1 %v8695_v57  ;;  %8666 = vmatprep.subr.bf16.mxu0 %v8665_v59  ;;  %v8713_v59 = vpack.c.bf16 %v1094_v45, %v1093_v44  ;;  %v8715_v0 = vpack.c.bf16 %v1078_v60, %v1077_v56  ;;  %v10853_v22 = vrot.slane %v2185_v62, %v10118_v14  ;;  %v1101_v45 = vld [vmem:[%s10055_s25 + $0x1430] sm:$0xff]  ;;  %v1104_v60 = vld [vmem:[%s10055_s25 + $0x1448] sm:$0xff]  ;;  %v1122_v62 = vld [vmem:[%s10055_s25 + $0x14d8] sm:$0xff] }
 0x16e   : > { %8698 = vmatprep.subr.bf16.mxu1 %v8697_v58  ;;  %v1143_v58 = vld [vmem:[%s10055_s25 + $0x1580] sm:$0xff]  ;;  %v2200_v25 = vcombine.high %v10848_v8, %v10848_v8  ;;  %v8729_v44 = vpack.c.bf16 %v1118_v40, %v1117_v43 }
 0x16f   : > { %v8749_v4 = vpack.c.bf16 %v1144_v46, %v1143_v58  ;;  %v1136_v58 = vld [vmem:[%s10055_s25 + $0x1548] sm:$0xff]  ;;  %v1121_v46 = vld [vmem:[%s10055_s25 + $0x14d0] sm:$0xff] }
 0x170   : > { %8668 = vmatpush3.bf16.msra.mxu0 %v8667_v1  ;;  %v1095_v1 = vld [vmem:[%s10055_s25 + $0x1400] sm:$0xff] }
 0x171   : > { %8700 = vmatpush3.bf16.msra.mxu1 %v8699_v2  ;;  %8670 = vmatprep.subr.bf16.mxu0 %v8669_v3  ;;  %v1096_v2 = vld [vmem:[%s10055_s25 + $0x1408] sm:$0xff]  ;;  %v1127_v3 = vld [vmem:[%s10055_s25 + $0x1500] sm:$0xff] }
 0x172   : > { %8702 = vmatprep.subr.bf16.mxu1 %v8701_v7  ;;  %v1114_v7 = vld [vmem:[%s10055_s25 + $0x1498] sm:$0xff]  ;;  %v8719_v13 = vpack.c.bf16 %v1096_v2, %v1095_v1  ;;  %v8767_v1 = vpack.c.bf16 %v1136_v58, %v1135_v61  ;;  %v8737_v2 = vpack.c.bf16 %v1122_v62, %v1121_v46  ;;  %v1177_v61 = vld [vmem:[%s10055_s25 + $0x1690] sm:$0xff] }
 0x173   : > { %v1209_v46 = vld [vmem:[%s10055_s25 + $0x1790] sm:$0xff]  ;;  %v1210_v62 = vld [vmem:[%s10055_s25 + $0x1798] sm:$0xff] }
 0x174   : > { %8672 = vmatpush3.bf16.msra.mxu0 %v8671_v15  ;;  %v8751_v15 = vpack.c.bf16 %v1128_v5, %v1127_v3  ;;  %v1105_v3 = vld [vmem:[%s10055_s25 + $0x1450] sm:$0xff] }
 0x175   : > { %8704 = vmatpush3.bf16.msra.mxu1 %v8703_v17  ;;  %8674 = vmatprep.subr.bf16.mxu0 %v8673_v12  ;;  %v8721_v17 = vpack.c.bf16 %v1114_v7, %v1113_v6  ;;  %v1097_v12 = vld [vmem:[%s10055_s25 + $0x1410] sm:$0xff]  ;;  %v1138_v7 = vld [vmem:[%s10055_s25 + $0x1558] sm:$0xff] }
 0x176   : > { %v6485_v36 = vpop.f32.mrb[4].mxu0  ;;  %8706 = vmatprep.subr.bf16.mxu1 %v8705_v20  ;;  %v1130_v20 = vld [vmem:[%s10055_s25 + $0x1518] sm:$0xff]  ;;  %v1137_v5 = vld [vmem:[%s10055_s25 + $0x1550] sm:$0xff] }
 0x177   : > { %v6486_v41 = vpop.f32.mrb[5].mxu0  ;;  %v6520_v42 = vpop.f32.mrb[4].mxu1 }
 0x178   : > { %v6487_v47 = vadd.f32 %v6486_v41, %v6485_v36  ;;  %8676 = vmatpush3.bf16.msra.mxu0 %v8675_v29  ;;  %v6521_v37 = vpop.f32.mrb[5].mxu1  ;;  %v2201_v29 = vcombine.high %v10853_v22, %v10853_v22  ;;  %v8757_v36 = vpack.c.bf16 %v1148_v28, %v1147_v27  ;;  %v1125_v27 = vld [vmem:[%s10055_s25 + $0x14f0] sm:$0xff]  ;;  %v1126_v28 = vld [vmem:[%s10055_s25 + $0x14f8] sm:$0xff] }
 0x179   : > { %v6522_v50 = vadd.f32 %v6521_v37, %v6520_v42  ;;  %8708 = vmatpush3.bf16.msra.mxu1 %v8707_v30  ;;  %8678 = vmatprep.subr.bf16.mxu0 %v8677_v31  ;;  %v8723_v30 = vpack.c.bf16 %v1098_v18, %v1097_v12  ;;  %v8755_v31 = vpack.c.bf16 %v1130_v20, %v1129_v19  ;;  %v1133_v37 = vld [vmem:[%s10055_s25 + $0x1530] sm:$0xff]  ;;  %v1107_v19 = vld [vmem:[%s10055_s25 + $0x1460] sm:$0xff] }
 0x17a   : > { %v2866_v57 = vadd.f32 %v6487_v47, %v10759_v11  ;;  %8710 = vmatprep.subr.bf16.mxu1 %v8709_v38  ;;  %v8683_v11 = vpack.c.bf16 %v1046_v34, %v1045_v39  ;;  %v1132_v38 = vld [vmem:[%s10055_s25 + $0x1528] sm:$0xff]  ;;  %v1102_v47 = vld [vmem:[%s10055_s25 + $0x1438] sm:$0xff]  ;;  %v8763_v56 = vpack.c.bf16 %v1134_v49, %v1133_v37  ;;  %v8771_v12 = vpack.c.bf16 %v1138_v7, %v1137_v5  ;;  %v1139_v20 = vld [vmem:[%s10055_s25 + $0x1560] sm:$0xff] }
 0x17b   : > { %v8759_v42 = vpack.c.bf16 %v1132_v38, %v1131_v35  ;;  %v1152_v39 = vld [vmem:[%s10055_s25 + $0x15c8] sm:$0xff]  ;;  %v8731_v34 = vpack.c.bf16 %v1102_v47, %v1101_v45  ;;  %v8741_v18 = vpack.c.bf16 %v1124_v10, %v1123_v9  ;;  %v8745_v40 = vpack.c.bf16 %v1126_v28, %v1125_v27  ;;  %v1142_v45 = vld [vmem:[%s10055_s25 + $0x1578] sm:$0xff]  ;;  %v1175_v47 = vld [vmem:[%s10055_s25 + $0x1680] sm:$0xff] }
 0x17c   : > { %v10839_v63 = vadd.f32 %v6522_v50, %v2866_v57  ;;  %8680 = vmatpush3.bf16.msra.mxu0 %v8679_v48  ;;  %v1119_v50 = vld [vmem:[%s10055_s25 + $0x14c0] sm:$0xff]  ;;  %v1176_v37 = vld [vmem:[%s10055_s25 + $0x1688] sm:$0xff]  ;;  %v8817_v5 = vpack.c.bf16 %v1210_v62, %v1209_v46  ;;  %v1182_v27 = vld [vmem:[%s10055_s25 + $0x16b8] sm:$0xff] }
 0x17d   : > { %8712 = vmatpush3.bf16.msra.mxu1 %v8711_v51  ;;  %8682 = vmatprep.subr.bf16.mxu0 %v8681_v54  ;;  %v1120_v51 = vld [vmem:[%s10055_s25 + $0x14c8] sm:$0xff]  ;;  %v1151_v54 = vld [vmem:[%s10055_s25 + $0x15c0] sm:$0xff]  ;;  %v1214_v28 = vld [vmem:[%s10055_s25 + $0x17b8] sm:$0xff] }
 0x17e   : > { %8714 = vmatprep.subr.bf16.mxu1 %v8713_v59  ;;  %v8733_v57 = vpack.c.bf16 %v1120_v51, %v1119_v50  ;;  %v1103_v59 = vld [vmem:[%s10055_s25 + $0x1440] sm:$0xff]  ;;  %v8765_v52 = vpack.c.bf16 %v1152_v39, %v1151_v54  ;;  %v1208_v49 = vld [vmem:[%s10055_s25 + $0x1788] sm:$0xff]  ;;  %v8781_v39 = vpack.c.bf16 %v1176_v37, %v1175_v47 }
 0x17f   : > { %v1179_v7 = vld [vmem:[%s10055_s25 + $0x16a0] sm:$0xff]  ;;  %v1180_v9 = vld [vmem:[%s10055_s25 + $0x16a8] sm:$0xff] }
 0x180   : > { %8684 = vmatpush3.bf16.msra.mxu0 %v8683_v11  ;;  %v1153_v11 = vld [vmem:[%s10055_s25 + $0x15d0] sm:$0xff]  ;;  %v1199_v47 = vld [vmem:[%s10055_s25 + $0x1740] sm:$0xff]  ;;  %v1188_v62 = vld [vmem:[%s10055_s25 + $0x16e8] sm:$0xff] }
 0x181   : > { %8716 = vmatpush3.bf16.msra.mxu1 %v8715_v0  ;;  %8718 = vmatprep.subr.bf16.mxu0 %v8717_v55  ;;  %v1154_v0 = vld [vmem:[%s10055_s25 + $0x15d8] sm:$0xff]  ;;  %v8735_v55 = vpack.c.bf16 %v1104_v60, %v1103_v59  ;;  %v1192_v60 = vld [vmem:[%s10055_s25 + $0x1708] sm:$0xff]  ;;  %v1187_v46 = vld [vmem:[%s10055_s25 + $0x16e0] sm:$0xff] }
 0x182   : > { %8750 = vmatprep.subr.bf16.mxu1 %v8749_v4  ;;  %v1106_v4 = vld [vmem:[%s10055_s25 + $0x1458] sm:$0xff]  ;;  %v8769_v6 = vpack.c.bf16 %v1154_v0, %v1153_v11 }
 0x183   : > { %3844 = vmatmul.mubr.f32.vlgmr.msra.gmra.mrb[18].mxu0 %v10768_v23  ;;  %v1100_v23 = vld [vmem:[%s10055_s25 + $0x1428] sm:$0xff] }
 0x184   : > { %8720 = vmatpush3.bf16.msra.mxu0 %v8719_v13  ;;  %3914 = vmatmul.mubr.f32.vlgmr.msra.gmra.mrb[18].mxu1 %v10773_v26  ;;  %v1149_v26 = vld [vmem:[%s10055_s25 + $0x15b0] sm:$0xff]  ;;  %v8727_v41 = vpack.c.bf16 %v1100_v23, %v1099_v33  ;;  %v1155_v13 = vld [vmem:[%s10055_s25 + $0x15e0] sm:$0xff] }
 0x185   : > { %8752 = vmatpush3.bf16.msra.mxu1 %v8751_v15  ;;  %8722 = vmatprep.subr.bf16.mxu0 %v8721_v17  ;;  %v8761_v48 = vpack.c.bf16 %v1150_v53, %v1149_v26  ;;  %v1156_v15 = vld [vmem:[%s10055_s25 + $0x15e8] sm:$0xff]  ;;  %v8739_v17 = vpack.c.bf16 %v1106_v4, %v1105_v3  ;;  %v1109_v26 = vld [vmem:[%s10055_s25 + $0x1470] sm:$0xff]  ;;  %v1110_v53 = vld [vmem:[%s10055_s25 + $0x1478] sm:$0xff] }
 0x186   : > { %8754 = vmatprep.subr.bf16.mxu1 %v8753_v16  ;;  %3983 = vmatprep.mubr.f32.mxu0 %v2200_v25  ;;  %v1108_v16 = vld [vmem:[%s10055_s25 + $0x1468] sm:$0xff]  ;;  %v8773_v24 = vpack.c.bf16 %v1156_v15, %v1155_v13  ;;  %v1162_v3 = vld [vmem:[%s10055_s25 + $0x1618] sm:$0xff]  ;;  %v1193_v4 = vld [vmem:[%s10055_s25 + $0x1710] sm:$0xff] }
 0x187   : > { %4053 = vmatprep.mubr.f32.mxu1 %v2201_v29  ;;  %v1140_v25 = vld [vmem:[%s10055_s25 + $0x1568] sm:$0xff]  ;;  %v8743_v35 = vpack.c.bf16 %v1108_v16, %v1107_v19  ;;  %v1211_v13 = vld [vmem:[%s10055_s25 + $0x17a0] sm:$0xff]  ;;  %v8789_v19 = vpack.c.bf16 %v1180_v9, %v1179_v7 }
 0x188   : > { %8724 = vmatpush3.bf16.msra.mxu0 %v8723_v30  ;;  %v8775_v43 = vpack.c.bf16 %v1140_v25, %v1139_v20  ;;  %v1212_v15 = vld [vmem:[%s10055_s25 + $0x17a8] sm:$0xff]  ;;  %v1163_v16 = vld [vmem:[%s10055_s25 + $0x1620] sm:$0xff]  ;;  %v1181_v25 = vld [vmem:[%s10055_s25 + $0x16b0] sm:$0xff] }
 0x189   : > { %8756 = vmatpush3.bf16.msra.mxu1 %v8755_v31  ;;  %8726 = vmatprep.subr.bf16.mxu0 %v8725_v32  ;;  %v1157_v31 = vld [vmem:[%s10055_s25 + $0x15f0] sm:$0xff]  ;;  %v1158_v32 = vld [vmem:[%s10055_s25 + $0x15f8] sm:$0xff]  ;;  %v1195_v20 = vld [vmem:[%s10055_s25 + $0x1720] sm:$0xff] }
 0x18a   : > { %8758 = vmatprep.subr.bf16.mxu1 %v8757_v36  ;;  %v442_v36 = vld [vmem:[%s10065_s21 + $0x58] sm:$0xff] }
 0x18b   : > { %v2202_v50 = vcombine.high %v442_v36, %v442_v36  ;;  %v10928_v58 = vrot.slane %v442_v36, %v10118_v14  ;;  %v1198_v36 = vld [vmem:[%s10055_s25 + $0x1738] sm:$0xff] }
 0x18c   : > { %8728 = vmatpush3.bf16.msra.mxu0 %v8727_v41  ;;  %v1141_v41 = vld [vmem:[%s10055_s25 + $0x1570] sm:$0xff] }
 0x18d   : > { %8760 = vmatpush3.bf16.msra.mxu1 %v8759_v42  ;;  %8730 = vmatprep.subr.bf16.mxu0 %v8729_v44  ;;  %v8777_v44 = vpack.c.bf16 %v1158_v32, %v1157_v31  ;;  %v8779_v54 = vpack.c.bf16 %v1142_v45, %v1141_v41  ;;  %v10933_v11 = vrot.slane %v2202_v50, %v10118_v14  ;;  %v1165_v32 = vld [vmem:[%s10055_s25 + $0x1630] sm:$0xff]  ;;  %v1168_v45 = vld [vmem:[%s10055_s25 + $0x1648] sm:$0xff]  ;;  %v1186_v50 = vld [vmem:[%s10055_s25 + $0x16d8] sm:$0xff] }
 0x18e   : > { %8762 = vmatprep.subr.bf16.mxu1 %v8761_v48  ;;  %v1207_v48 = vld [vmem:[%s10055_s25 + $0x1780] sm:$0xff]  ;;  %v2217_v10 = vcombine.high %v10928_v58, %v10928_v58  ;;  %v8793_v31 = vpack.c.bf16 %v1182_v27, %v1181_v25 }
 0x18f   : > { %v8813_v59 = vpack.c.bf16 %v1208_v49, %v1207_v48  ;;  %v1200_v48 = vld [vmem:[%s10055_s25 + $0x1748] sm:$0xff]  ;;  %v1185_v49 = vld [vmem:[%s10055_s25 + $0x16d0] sm:$0xff] }
 0x190   : > { %8732 = vmatpush3.bf16.msra.mxu0 %v8731_v34  ;;  %v1159_v34 = vld [vmem:[%s10055_s25 + $0x1600] sm:$0xff] }
 0x191   : > { %8764 = vmatpush3.bf16.msra.mxu1 %v8763_v56  ;;  %8734 = vmatprep.subr.bf16.mxu0 %v8733_v57  ;;  %v1160_v56 = vld [vmem:[%s10055_s25 + $0x1608] sm:$0xff]  ;;  %v1191_v57 = vld [vmem:[%s10055_s25 + $0x1700] sm:$0xff] }
 0x192   : > { %8766 = vmatprep.subr.bf16.mxu1 %v8765_v52  ;;  %v1178_v52 = vld [vmem:[%s10055_s25 + $0x1698] sm:$0xff]  ;;  %v8783_v0 = vpack.c.bf16 %v1160_v56, %v1159_v34  ;;  %v8831_v34 = vpack.c.bf16 %v1200_v48, %v1199_v47  ;;  %v8801_v56 = vpack.c.bf16 %v1186_v50, %v1185_v49  ;;  %v1241_v47 = vld [vmem:[%s10055_s25 + $0x1890] sm:$0xff] }
 0x193   : > { %v1273_v49 = vld [vmem:[%s10055_s25 + $0x1990] sm:$0xff]  ;;  %v1274_v50 = vld [vmem:[%s10055_s25 + $0x1998] sm:$0xff] }
 0x194   : > { %8736 = vmatpush3.bf16.msra.mxu0 %v8735_v55  ;;  %v8815_v55 = vpack.c.bf16 %v1192_v60, %v1191_v57  ;;  %v1169_v57 = vld [vmem:[%s10055_s25 + $0x1650] sm:$0xff] }
 0x195   : > { %8768 = vmatpush3.bf16.msra.mxu1 %v8767_v1  ;;  %8738 = vmatprep.subr.bf16.mxu0 %v8737_v2  ;;  %v8785_v1 = vpack.c.bf16 %v1178_v52, %v1177_v61  ;;  %v1161_v2 = vld [vmem:[%s10055_s25 + $0x1610] sm:$0xff]  ;;  %v1202_v52 = vld [vmem:[%s10055_s25 + $0x1758] sm:$0xff] }
 0x196   : > { %v6555_v21 = vpop.f32.mrb[6].mxu0  ;;  %8770 = vmatprep.subr.bf16.mxu1 %v8769_v6  ;;  %v1194_v6 = vld [vmem:[%s10055_s25 + $0x1718] sm:$0xff]  ;;  %v1201_v60 = vld [vmem:[%s10055_s25 + $0x1750] sm:$0xff] }
 0x197   : > { %v6556_v29 = vpop.f32.mrb[7].mxu0  ;;  %v6590_v30 = vpop.f32.mrb[6].mxu1 }
 0x198   : > { %v6557_v33 = vadd.f32 %v6556_v29, %v6555_v21  ;;  %8740 = vmatpush3.bf16.msra.mxu0 %v8739_v17  ;;  %v6591_v23 = vpop.f32.mrb[7].mxu1  ;;  %v2218_v17 = vcombine.high %v10933_v11, %v10933_v11  ;;  %v8821_v21 = vpack.c.bf16 %v1212_v15, %v1211_v13  ;;  %v1189_v13 = vld [vmem:[%s10055_s25 + $0x16f0] sm:$0xff]  ;;  %v1190_v15 = vld [vmem:[%s10055_s25 + $0x16f8] sm:$0xff] }
 0x199   : > { %v6592_v38 = vadd.f32 %v6591_v23, %v6590_v30  ;;  %8772 = vmatpush3.bf16.msra.mxu1 %v8771_v12  ;;  %8742 = vmatprep.subr.bf16.mxu0 %v8741_v18  ;;  %v8787_v12 = vpack.c.bf16 %v1162_v3, %v1161_v2  ;;  %v8819_v18 = vpack.c.bf16 %v1194_v6, %v1193_v4  ;;  %v1197_v23 = vld [vmem:[%s10055_s25 + $0x1730] sm:$0xff]  ;;  %v1171_v4 = vld [vmem:[%s10055_s25 + $0x1660] sm:$0xff] }
 0x19a   : > { %v3006_v42 = vadd.f32 %v6557_v33, %v10839_v63  ;;  %8774 = vmatprep.subr.bf16.mxu1 %v8773_v24  ;;  %v8747_v63 = vpack.c.bf16 %v1110_v53, %v1109_v26  ;;  %v1196_v24 = vld [vmem:[%s10055_s25 + $0x1728] sm:$0xff]  ;;  %v1166_v33 = vld [vmem:[%s10055_s25 + $0x1638] sm:$0xff]  ;;  %v8827_v41 = vpack.c.bf16 %v1198_v36, %v1197_v23  ;;  %v8835_v2 = vpack.c.bf16 %v1202_v52, %v1201_v60  ;;  %v1203_v6 = vld [vmem:[%s10055_s25 + $0x1760] sm:$0xff] }
 0x19b   : > { %v8823_v30 = vpack.c.bf16 %v1196_v24, %v1195_v20  ;;  %v1216_v26 = vld [vmem:[%s10055_s25 + $0x17c8] sm:$0xff]  ;;  %v8795_v53 = vpack.c.bf16 %v1166_v33, %v1165_v32  ;;  %v8805_v3 = vpack.c.bf16 %v1188_v62, %v1187_v46  ;;  %v8809_v27 = vpack.c.bf16 %v1190_v15, %v1189_v13  ;;  %v1206_v32 = vld [vmem:[%s10055_s25 + $0x1778] sm:$0xff]  ;;  %v1239_v33 = vld [vmem:[%s10055_s25 + $0x1880] sm:$0xff] }
 0x19c   : > { %v10919_v51 = vadd.f32 %v6592_v38, %v3006_v42  ;;  %8744 = vmatpush3.bf16.msra.mxu0 %v8743_v35  ;;  %v1183_v38 = vld [vmem:[%s10055_s25 + $0x16c0] sm:$0xff]  ;;  %v1240_v23 = vld [vmem:[%s10055_s25 + $0x1888] sm:$0xff]  ;;  %v8881_v60 = vpack.c.bf16 %v1274_v50, %v1273_v49  ;;  %v1246_v13 = vld [vmem:[%s10055_s25 + $0x18b8] sm:$0xff] }
 0x19d   : > { %8776 = vmatpush3.bf16.msra.mxu1 %v8775_v43  ;;  %8746 = vmatprep.subr.bf16.mxu0 %v8745_v40  ;;  %v1184_v43 = vld [vmem:[%s10055_s25 + $0x16c8] sm:$0xff]  ;;  %v1215_v40 = vld [vmem:[%s10055_s25 + $0x17c0] sm:$0xff]  ;;  %v1278_v15 = vld [vmem:[%s10055_s25 + $0x19b8] sm:$0xff] }
 0x19e   : > { %8778 = vmatprep.subr.bf16.mxu1 %v8777_v44  ;;  %v8797_v42 = vpack.c.bf16 %v1184_v43, %v1183_v38  ;;  %v1167_v44 = vld [vmem:[%s10055_s25 + $0x1640] sm:$0xff]  ;;  %v8829_v37 = vpack.c.bf16 %v1216_v26, %v1215_v40  ;;  %v1272_v36 = vld [vmem:[%s10055_s25 + $0x1988] sm:$0xff]  ;;  %v8845_v26 = vpack.c.bf16 %v1240_v23, %v1239_v33 }
 0x19f   : > { %v1243_v52 = vld [vmem:[%s10055_s25 + $0x18a0] sm:$0xff]  ;;  %v1244_v46 = vld [vmem:[%s10055_s25 + $0x18a8] sm:$0xff] }
 0x1a0   : > { %8748 = vmatpush3.bf16.msra.mxu0 %v8747_v63  ;;  %v1217_v63 = vld [vmem:[%s10055_s25 + $0x17d0] sm:$0xff]  ;;  %v1263_v33 = vld [vmem:[%s10055_s25 + $0x1940] sm:$0xff]  ;;  %v1252_v50 = vld [vmem:[%s10055_s25 + $0x18e8] sm:$0xff] }
 0x1a1   : > { %8780 = vmatpush3.bf16.msra.mxu1 %v8779_v54  ;;  %8782 = vmatprep.subr.bf16.mxu0 %v8781_v39  ;;  %v1218_v54 = vld [vmem:[%s10055_s25 + $0x17d8] sm:$0xff]  ;;  %v8799_v39 = vpack.c.bf16 %v1168_v45, %v1167_v44  ;;  %v1256_v45 = vld [vmem:[%s10055_s25 + $0x1908] sm:$0xff]  ;;  %v1251_v49 = vld [vmem:[%s10055_s25 + $0x18e0] sm:$0xff] }
 0x1a2   : > { %8814 = vmatprep.subr.bf16.mxu1 %v8813_v59  ;;  %v1170_v59 = vld [vmem:[%s10055_s25 + $0x1658] sm:$0xff]  ;;  %v8833_v61 = vpack.c.bf16 %v1218_v54, %v1217_v63 }
 0x1a3   : > { %3984 = vmatmul.mubr.f32.vlgmr.msra.gmra.mrb[20].mxu0 %v10848_v8  ;;  %v1164_v8 = vld [vmem:[%s10055_s25 + $0x1628] sm:$0xff] }
 0x1a4   : > { %8784 = vmatpush3.bf16.msra.mxu0 %v8783_v0  ;;  %4054 = vmatmul.mubr.f32.vlgmr.msra.gmra.mrb[20].mxu1 %v10853_v22  ;;  %v1213_v22 = vld [vmem:[%s10055_s25 + $0x17b0] sm:$0xff]  ;;  %v8791_v29 = vpack.c.bf16 %v1164_v8, %v1163_v16  ;;  %v1219_v0 = vld [vmem:[%s10055_s25 + $0x17e0] sm:$0xff] }
 0x1a5   : > { %8816 = vmatpush3.bf16.msra.mxu1 %v8815_v55  ;;  %8786 = vmatprep.subr.bf16.mxu0 %v8785_v1  ;;  %v8825_v35 = vpack.c.bf16 %v1214_v28, %v1213_v22  ;;  %v1220_v55 = vld [vmem:[%s10055_s25 + $0x17e8] sm:$0xff]  ;;  %v8803_v1 = vpack.c.bf16 %v1170_v59, %v1169_v57  ;;  %v1173_v22 = vld [vmem:[%s10055_s25 + $0x1670] sm:$0xff]  ;;  %v1174_v28 = vld [vmem:[%s10055_s25 + $0x1678] sm:$0xff] }
 0x1a6   : > { %8818 = vmatprep.subr.bf16.mxu1 %v8817_v5  ;;  %4123 = vmatprep.mubr.f32.mxu0 %v2217_v10  ;;  %v1172_v5 = vld [vmem:[%s10055_s25 + $0x1668] sm:$0xff]  ;;  %v8837_v9 = vpack.c.bf16 %v1220_v55, %v1219_v0  ;;  %v1226_v57 = vld [vmem:[%s10055_s25 + $0x1818] sm:$0xff]  ;;  %v1257_v59 = vld [vmem:[%s10055_s25 + $0x1910] sm:$0xff] }
 0x1a7   : > { %4193 = vmatprep.mubr.f32.mxu1 %v2218_v17  ;;  %v1204_v10 = vld [vmem:[%s10055_s25 + $0x1768] sm:$0xff]  ;;  %v8807_v20 = vpack.c.bf16 %v1172_v5, %v1171_v4  ;;  %v1275_v0 = vld [vmem:[%s10055_s25 + $0x19a0] sm:$0xff]  ;;  %v8853_v4 = vpack.c.bf16 %v1244_v46, %v1243_v52 }
 0x1a8   : > { %8788 = vmatpush3.bf16.msra.mxu0 %v8787_v12  ;;  %v8839_v25 = vpack.c.bf16 %v1204_v10, %v1203_v6  ;;  %v1276_v55 = vld [vmem:[%s10055_s25 + $0x19a8] sm:$0xff]  ;;  %v1227_v5 = vld [vmem:[%s10055_s25 + $0x1820] sm:$0xff]  ;;  %v1245_v10 = vld [vmem:[%s10055_s25 + $0x18b0] sm:$0xff] }
 0x1a9   : > { %8820 = vmatpush3.bf16.msra.mxu1 %v8819_v18  ;;  %8790 = vmatprep.subr.bf16.mxu0 %v8789_v19  ;;  %v1221_v18 = vld [vmem:[%s10055_s25 + $0x17f0] sm:$0xff]  ;;  %v1222_v19 = vld [vmem:[%s10055_s25 + $0x17f8] sm:$0xff]  ;;  %v1259_v6 = vld [vmem:[%s10055_s25 + $0x1920] sm:$0xff] }
 0x1aa   : > { %8822 = vmatprep.subr.bf16.mxu1 %v8821_v21  ;;  %v443_v21 = vld [vmem:[%s10065_s21 + $0x60] sm:$0xff] }
 0x1ab   : > { %v2219_v38 = vcombine.high %v443_v21, %v443_v21  ;;  %v11008_v48 = vrot.slane %v443_v21, %v10118_v14  ;;  %v1262_v21 = vld [vmem:[%s10055_s25 + $0x1938] sm:$0xff] }
 0x1ac   : > { %8792 = vmatpush3.bf16.msra.mxu0 %v8791_v29  ;;  %v1205_v29 = vld [vmem:[%s10055_s25 + $0x1770] sm:$0xff] }
 0x1ad   : > { %8824 = vmatpush3.bf16.msra.mxu1 %v8823_v30  ;;  %8794 = vmatprep.subr.bf16.mxu0 %v8793_v31  ;;  %v8841_v31 = vpack.c.bf16 %v1222_v19, %v1221_v18  ;;  %v8843_v40 = vpack.c.bf16 %v1206_v32, %v1205_v29  ;;  %v11013_v63 = vrot.slane %v2219_v38, %v10118_v14  ;;  %v1229_v19 = vld [vmem:[%s10055_s25 + $0x1830] sm:$0xff]  ;;  %v1232_v32 = vld [vmem:[%s10055_s25 + $0x1848] sm:$0xff]  ;;  %v1250_v38 = vld [vmem:[%s10055_s25 + $0x18d8] sm:$0xff] }
 0x1ae   : > { %8826 = vmatprep.subr.bf16.mxu1 %v8825_v35  ;;  %v1271_v35 = vld [vmem:[%s10055_s25 + $0x1980] sm:$0xff]  ;;  %v2234_v62 = vcombine.high %v11008_v48, %v11008_v48  ;;  %v8857_v18 = vpack.c.bf16 %v1246_v13, %v1245_v10 }
 0x1af   : > { %v8877_v44 = vpack.c.bf16 %v1272_v36, %v1271_v35  ;;  %v1264_v35 = vld [vmem:[%s10055_s25 + $0x1948] sm:$0xff]  ;;  %v1249_v36 = vld [vmem:[%s10055_s25 + $0x18d0] sm:$0xff] }
 0x1b0   : > { %8796 = vmatpush3.bf16.msra.mxu0 %v8795_v53  ;;  %v1223_v53 = vld [vmem:[%s10055_s25 + $0x1800] sm:$0xff] }
 0x1b1   : > { %8828 = vmatpush3.bf16.msra.mxu1 %v8827_v41  ;;  %8798 = vmatprep.subr.bf16.mxu0 %v8797_v42  ;;  %v1224_v41 = vld [vmem:[%s10055_s25 + $0x1808] sm:$0xff]  ;;  %v1255_v42 = vld [vmem:[%s10055_s25 + $0x1900] sm:$0xff] }
 0x1b2   : > { %8830 = vmatprep.subr.bf16.mxu1 %v8829_v37  ;;  %v1242_v37 = vld [vmem:[%s10055_s25 + $0x1898] sm:$0xff]  ;;  %v8847_v54 = vpack.c.bf16 %v1224_v41, %v1223_v53  ;;  %v8895_v53 = vpack.c.bf16 %v1264_v35, %v1263_v33  ;;  %v8865_v41 = vpack.c.bf16 %v1250_v38, %v1249_v36  ;;  %v1305_v33 = vld [vmem:[%s10055_s25 + $0x1a90] sm:$0xff] }
 0x1b3   : > { %v1337_v36 = vld [vmem:[%s10055_s25 + $0x1b90] sm:$0xff]  ;;  %v1338_v38 = vld [vmem:[%s10055_s25 + $0x1b98] sm:$0xff] }
 0x1b4   : > { %8800 = vmatpush3.bf16.msra.mxu0 %v8799_v39  ;;  %v8879_v39 = vpack.c.bf16 %v1256_v45, %v1255_v42  ;;  %v1233_v42 = vld [vmem:[%s10055_s25 + $0x1850] sm:$0xff] }
 0x1b5   : > { %8832 = vmatpush3.bf16.msra.mxu1 %v8831_v34  ;;  %8802 = vmatprep.subr.bf16.mxu0 %v8801_v56  ;;  %v8849_v34 = vpack.c.bf16 %v1242_v37, %v1241_v47  ;;  %v1225_v56 = vld [vmem:[%s10055_s25 + $0x1810] sm:$0xff]  ;;  %v1266_v37 = vld [vmem:[%s10055_s25 + $0x1958] sm:$0xff] }
 0x1b6   : > { %v6625_v7 = vpop.f32.mrb[8].mxu0  ;;  %8834 = vmatprep.subr.bf16.mxu1 %v8833_v61  ;;  %v1258_v61 = vld [vmem:[%s10055_s25 + $0x1918] sm:$0xff]  ;;  %v1265_v45 = vld [vmem:[%s10055_s25 + $0x1950] sm:$0xff] }
 0x1b7   : > { %v6626_v17 = vpop.f32.mrb[9].mxu0  ;;  %v6660_v12 = vpop.f32.mrb[8].mxu1 }
 0x1b8   : > { %v6627_v16 = vadd.f32 %v6626_v17, %v6625_v7  ;;  %8804 = vmatpush3.bf16.msra.mxu0 %v8803_v1  ;;  %v6661_v8 = vpop.f32.mrb[9].mxu1  ;;  %v2235_v1 = vcombine.high %v11013_v63, %v11013_v63  ;;  %v8885_v7 = vpack.c.bf16 %v1276_v55, %v1275_v0  ;;  %v1253_v0 = vld [vmem:[%s10055_s25 + $0x18f0] sm:$0xff]  ;;  %v1254_v55 = vld [vmem:[%s10055_s25 + $0x18f8] sm:$0xff] }
 0x1b9   : > { %v6662_v24 = vadd.f32 %v6661_v8, %v6660_v12  ;;  %8836 = vmatpush3.bf16.msra.mxu1 %v8835_v2  ;;  %8806 = vmatprep.subr.bf16.mxu0 %v8805_v3  ;;  %v8851_v2 = vpack.c.bf16 %v1226_v57, %v1225_v56  ;;  %v8883_v3 = vpack.c.bf16 %v1258_v61, %v1257_v59  ;;  %v1261_v8 = vld [vmem:[%s10055_s25 + $0x1930] sm:$0xff]  ;;  %v1235_v59 = vld [vmem:[%s10055_s25 + $0x1860] sm:$0xff] }
 0x1ba   : > { %v3146_v30 = vadd.f32 %v6627_v16, %v10919_v51  ;;  %8838 = vmatprep.subr.bf16.mxu1 %v8837_v9  ;;  %v8811_v51 = vpack.c.bf16 %v1174_v28, %v1173_v22  ;;  %v1260_v9 = vld [vmem:[%s10055_s25 + $0x1928] sm:$0xff]  ;;  %v1230_v16 = vld [vmem:[%s10055_s25 + $0x1838] sm:$0xff]  ;;  %v8891_v29 = vpack.c.bf16 %v1262_v21, %v1261_v8  ;;  %v8899_v56 = vpack.c.bf16 %v1266_v37, %v1265_v45  ;;  %v1267_v61 = vld [vmem:[%s10055_s25 + $0x1960] sm:$0xff] }
 0x1bb   : > { %v8887_v12 = vpack.c.bf16 %v1260_v9, %v1259_v6  ;;  %v1280_v22 = vld [vmem:[%s10055_s25 + $0x19c8] sm:$0xff]  ;;  %v8859_v28 = vpack.c.bf16 %v1230_v16, %v1229_v19  ;;  %v8869_v57 = vpack.c.bf16 %v1252_v50, %v1251_v49  ;;  %v8873_v13 = vpack.c.bf16 %v1254_v55, %v1253_v0  ;;  %v1270_v19 = vld [vmem:[%s10055_s25 + $0x1978] sm:$0xff]  ;;  %v1303_v16 = vld [vmem:[%s10055_s25 + $0x1a80] sm:$0xff] }
 0x1bc   : > { %v10999_v43 = vadd.f32 %v6662_v24, %v3146_v30  ;;  %8808 = vmatpush3.bf16.msra.mxu0 %v8807_v20  ;;  %v1247_v24 = vld [vmem:[%s10055_s25 + $0x18c0] sm:$0xff]  ;;  %v1304_v8 = vld [vmem:[%s10055_s25 + $0x1a88] sm:$0xff]  ;;  %v8945_v45 = vpack.c.bf16 %v1338_v38, %v1337_v36  ;;  %v1310_v0 = vld [vmem:[%s10055_s25 + $0x1ab8] sm:$0xff] }
 0x1bd   : > { %8840 = vmatpush3.bf16.msra.mxu1 %v8839_v25  ;;  %8810 = vmatprep.subr.bf16.mxu0 %v8809_v27  ;;  %v1248_v25 = vld [vmem:[%s10055_s25 + $0x18c8] sm:$0xff]  ;;  %v1279_v27 = vld [vmem:[%s10055_s25 + $0x19c0] sm:$0xff]  ;;  %v1342_v55 = vld [vmem:[%s10055_s25 + $0x1bb8] sm:$0xff] }
 0x1be   : > { %8842 = vmatprep.subr.bf16.mxu1 %v8841_v31  ;;  %v8861_v30 = vpack.c.bf16 %v1248_v25, %v1247_v24  ;;  %v1231_v31 = vld [vmem:[%s10055_s25 + $0x1840] sm:$0xff]  ;;  %v8893_v23 = vpack.c.bf16 %v1280_v22, %v1279_v27  ;;  %v1336_v21 = vld [vmem:[%s10055_s25 + $0x1b88] sm:$0xff]  ;;  %v8909_v22 = vpack.c.bf16 %v1304_v8, %v1303_v16 }
 0x1bf   : > { %v1307_v37 = vld [vmem:[%s10055_s25 + $0x1aa0] sm:$0xff]  ;;  %v1308_v49 = vld [vmem:[%s10055_s25 + $0x1aa8] sm:$0xff] }
 0x1c0   : > { %8812 = vmatpush3.bf16.msra.mxu0 %v8811_v51  ;;  %v1281_v51 = vld [vmem:[%s10055_s25 + $0x19d0] sm:$0xff]  ;;  %v1327_v16 = vld [vmem:[%s10055_s25 + $0x1b40] sm:$0xff]  ;;  %v1316_v38 = vld [vmem:[%s10055_s25 + $0x1ae8] sm:$0xff] }
 0x1c1   : > { %8844 = vmatpush3.bf16.msra.mxu1 %v8843_v40  ;;  %8846 = vmatprep.subr.bf16.mxu0 %v8845_v26  ;;  %v1282_v40 = vld [vmem:[%s10055_s25 + $0x19d8] sm:$0xff]  ;;  %v8863_v26 = vpack.c.bf16 %v1232_v32, %v1231_v31  ;;  %v1320_v32 = vld [vmem:[%s10055_s25 + $0x1b08] sm:$0xff]  ;;  %v1315_v36 = vld [vmem:[%s10055_s25 + $0x1ae0] sm:$0xff] }
 0x1c2   : > { %8878 = vmatprep.subr.bf16.mxu1 %v8877_v44  ;;  %v1234_v44 = vld [vmem:[%s10055_s25 + $0x1858] sm:$0xff]  ;;  %v8897_v47 = vpack.c.bf16 %v1282_v40, %v1281_v51 }
 0x1c3   : > { %4124 = vmatmul.mubr.f32.vlgmr.msra.gmra.mrb[22].mxu0 %v10928_v58  ;;  %v1228_v58 = vld [vmem:[%s10055_s25 + $0x1828] sm:$0xff] }
 0x1c4   : > { %8848 = vmatpush3.bf16.msra.mxu0 %v8847_v54  ;;  %4194 = vmatmul.mubr.f32.vlgmr.msra.gmra.mrb[22].mxu1 %v10933_v11  ;;  %v1277_v11 = vld [vmem:[%s10055_s25 + $0x19b0] sm:$0xff]  ;;  %v8855_v17 = vpack.c.bf16 %v1228_v58, %v1227_v5  ;;  %v1283_v54 = vld [vmem:[%s10055_s25 + $0x19e0] sm:$0xff] }
 0x1c5   : > { %8880 = vmatpush3.bf16.msra.mxu1 %v8879_v39  ;;  %8850 = vmatprep.subr.bf16.mxu0 %v8849_v34  ;;  %v8889_v20 = vpack.c.bf16 %v1278_v15, %v1277_v11  ;;  %v1284_v39 = vld [vmem:[%s10055_s25 + $0x19e8] sm:$0xff]  ;;  %v8867_v34 = vpack.c.bf16 %v1234_v44, %v1233_v42  ;;  %v1237_v11 = vld [vmem:[%s10055_s25 + $0x1870] sm:$0xff]  ;;  %v1238_v15 = vld [vmem:[%s10055_s25 + $0x1878] sm:$0xff] }
 0x1c6   : > { %8882 = vmatprep.subr.bf16.mxu1 %v8881_v60  ;;  %4263 = vmatprep.mubr.f32.mxu0 %v2234_v62  ;;  %v1236_v60 = vld [vmem:[%s10055_s25 + $0x1868] sm:$0xff]  ;;  %v8901_v46 = vpack.c.bf16 %v1284_v39, %v1283_v54  ;;  %v1290_v42 = vld [vmem:[%s10055_s25 + $0x1a18] sm:$0xff]  ;;  %v1321_v44 = vld [vmem:[%s10055_s25 + $0x1b10] sm:$0xff] }
 0x1c7   : > { %4333 = vmatprep.mubr.f32.mxu1 %v2235_v1  ;;  %v1268_v62 = vld [vmem:[%s10055_s25 + $0x1968] sm:$0xff]  ;;  %v8871_v6 = vpack.c.bf16 %v1236_v60, %v1235_v59  ;;  %v1339_v54 = vld [vmem:[%s10055_s25 + $0x1ba0] sm:$0xff]  ;;  %v8917_v59 = vpack.c.bf16 %v1308_v49, %v1307_v37 }
 0x1c8   : > { %8852 = vmatpush3.bf16.msra.mxu0 %v8851_v2  ;;  %v8903_v10 = vpack.c.bf16 %v1268_v62, %v1267_v61  ;;  %v1340_v39 = vld [vmem:[%s10055_s25 + $0x1ba8] sm:$0xff]  ;;  %v1291_v60 = vld [vmem:[%s10055_s25 + $0x1a20] sm:$0xff]  ;;  %v1309_v62 = vld [vmem:[%s10055_s25 + $0x1ab0] sm:$0xff] }
 0x1c9   : > { %8884 = vmatpush3.bf16.msra.mxu1 %v8883_v3  ;;  %8854 = vmatprep.subr.bf16.mxu0 %v8853_v4  ;;  %v1285_v3 = vld [vmem:[%s10055_s25 + $0x19f0] sm:$0xff]  ;;  %v1286_v4 = vld [vmem:[%s10055_s25 + $0x19f8] sm:$0xff]  ;;  %v1323_v61 = vld [vmem:[%s10055_s25 + $0x1b20] sm:$0xff] }
 0x1ca   : > { %8886 = vmatprep.subr.bf16.mxu1 %v8885_v7  ;;  %v444_v7 = vld [vmem:[%s10065_s21 + $0x68] sm:$0xff] }
 0x1cb   : > { %v2236_v24 = vcombine.high %v444_v7, %v444_v7  ;;  %v11088_v35 = vrot.slane %v444_v7, %v10118_v14  ;;  %v1326_v7 = vld [vmem:[%s10055_s25 + $0x1b38] sm:$0xff] }
 0x1cc   : > { %8856 = vmatpush3.bf16.msra.mxu0 %v8855_v17  ;;  %v1269_v17 = vld [vmem:[%s10055_s25 + $0x1970] sm:$0xff] }
 0x1cd   : > { %8888 = vmatpush3.bf16.msra.mxu1 %v8887_v12  ;;  %8858 = vmatprep.subr.bf16.mxu0 %v8857_v18  ;;  %v8905_v18 = vpack.c.bf16 %v1286_v4, %v1285_v3  ;;  %v8907_v27 = vpack.c.bf16 %v1270_v19, %v1269_v17  ;;  %v11093_v51 = vrot.slane %v2236_v24, %v10118_v14  ;;  %v1293_v4 = vld [vmem:[%s10055_s25 + $0x1a30] sm:$0xff]  ;;  %v1296_v19 = vld [vmem:[%s10055_s25 + $0x1a48] sm:$0xff]  ;;  %v1314_v24 = vld [vmem:[%s10055_s25 + $0x1ad8] sm:$0xff] }
 0x1ce   : > { %8890 = vmatprep.subr.bf16.mxu1 %v8889_v20  ;;  %v1335_v20 = vld [vmem:[%s10055_s25 + $0x1b80] sm:$0xff]  ;;  %v2251_v50 = vcombine.high %v11088_v35, %v11088_v35  ;;  %v8921_v3 = vpack.c.bf16 %v1310_v0, %v1309_v62 }
 0x1cf   : > { %v8941_v31 = vpack.c.bf16 %v1336_v21, %v1335_v20  ;;  %v1328_v20 = vld [vmem:[%s10055_s25 + $0x1b48] sm:$0xff]  ;;  %v1313_v21 = vld [vmem:[%s10055_s25 + $0x1ad0] sm:$0xff] }
 0x1d0   : > { %8860 = vmatpush3.bf16.msra.mxu0 %v8859_v28  ;;  %v1287_v28 = vld [vmem:[%s10055_s25 + $0x1a00] sm:$0xff] }
 0x1d1   : > { %8892 = vmatpush3.bf16.msra.mxu1 %v8891_v29  ;;  %8862 = vmatprep.subr.bf16.mxu0 %v8861_v30  ;;  %v1288_v29 = vld [vmem:[%s10055_s25 + $0x1a08] sm:$0xff]  ;;  %v1319_v30 = vld [vmem:[%s10055_s25 + $0x1b00] sm:$0xff] }
 0x1d2   : > { %8894 = vmatprep.subr.bf16.mxu1 %v8893_v23  ;;  %v1306_v23 = vld [vmem:[%s10055_s25 + $0x1a98] sm:$0xff]  ;;  %v8911_v40 = vpack.c.bf16 %v1288_v29, %v1287_v28  ;;  %v8959_v28 = vpack.c.bf16 %v1328_v20, %v1327_v16  ;;  %v8929_v29 = vpack.c.bf16 %v1314_v24, %v1313_v21  ;;  %v1369_v16 = vld [vmem:[%s10055_s25 + $0x1c90] sm:$0xff] }
 0x1d3   : > { %v1401_v21 = vld [vmem:[%s10055_s25 + $0x1d90] sm:$0xff]  ;;  %v1402_v24 = vld [vmem:[%s10055_s25 + $0x1d98] sm:$0xff] }
 0x1d4   : > { %8864 = vmatpush3.bf16.msra.mxu0 %v8863_v26  ;;  %v8943_v26 = vpack.c.bf16 %v1320_v32, %v1319_v30  ;;  %v1297_v30 = vld [vmem:[%s10055_s25 + $0x1a50] sm:$0xff] }
 0x1d5   : > { %8896 = vmatpush3.bf16.msra.mxu1 %v8895_v53  ;;  %8866 = vmatprep.subr.bf16.mxu0 %v8865_v41  ;;  %v8913_v53 = vpack.c.bf16 %v1306_v23, %v1305_v33  ;;  %v1289_v41 = vld [vmem:[%s10055_s25 + $0x1a10] sm:$0xff]  ;;  %v1330_v23 = vld [vmem:[%s10055_s25 + $0x1b58] sm:$0xff] }
 0x1d6   : > { %v6695_v52 = vpop.f32.mrb[10].mxu0  ;;  %8898 = vmatprep.subr.bf16.mxu1 %v8897_v47  ;;  %v1322_v47 = vld [vmem:[%s10055_s25 + $0x1b18] sm:$0xff]  ;;  %v1329_v32 = vld [vmem:[%s10055_s25 + $0x1b50] sm:$0xff] }
 0x1d7   : > { %v6696_v1 = vpop.f32.mrb[11].mxu0  ;;  %v6730_v2 = vpop.f32.mrb[10].mxu1 }
 0x1d8   : > { %v6697_v5 = vadd.f32 %v6696_v1, %v6695_v52  ;;  %8868 = vmatpush3.bf16.msra.mxu0 %v8867_v34  ;;  %v6731_v58 = vpop.f32.mrb[11].mxu1  ;;  %v2252_v34 = vcombine.high %v11093_v51, %v11093_v51  ;;  %v8949_v52 = vpack.c.bf16 %v1340_v39, %v1339_v54  ;;  %v1317_v54 = vld [vmem:[%s10055_s25 + $0x1af0] sm:$0xff]  ;;  %v1318_v39 = vld [vmem:[%s10055_s25 + $0x1af8] sm:$0xff] }
 0x1d9   : > { %v6732_v9 = vadd.f32 %v6731_v58, %v6730_v2  ;;  %8900 = vmatpush3.bf16.msra.mxu1 %v8899_v56  ;;  %8870 = vmatprep.subr.bf16.mxu0 %v8869_v57  ;;  %v8915_v56 = vpack.c.bf16 %v1290_v42, %v1289_v41  ;;  %v8947_v57 = vpack.c.bf16 %v1322_v47, %v1321_v44  ;;  %v1325_v58 = vld [vmem:[%s10055_s25 + $0x1b30] sm:$0xff]  ;;  %v1299_v44 = vld [vmem:[%s10055_s25 + $0x1a60] sm:$0xff] }
 0x1da   : > { %v3286_v12 = vadd.f32 %v6697_v5, %v10999_v43  ;;  %8902 = vmatprep.subr.bf16.mxu1 %v8901_v46  ;;  %v8875_v43 = vpack.c.bf16 %v1238_v15, %v1237_v11  ;;  %v1324_v46 = vld [vmem:[%s10055_s25 + $0x1b28] sm:$0xff]  ;;  %v1294_v5 = vld [vmem:[%s10055_s25 + $0x1a38] sm:$0xff]  ;;  %v8955_v17 = vpack.c.bf16 %v1326_v7, %v1325_v58  ;;  %v8963_v41 = vpack.c.bf16 %v1330_v23, %v1329_v32  ;;  %v1331_v47 = vld [vmem:[%s10055_s25 + $0x1b60] sm:$0xff] }
 0x1db   : > { %v8951_v2 = vpack.c.bf16 %v1324_v46, %v1323_v61  ;;  %v1344_v11 = vld [vmem:[%s10055_s25 + $0x1bc8] sm:$0xff]  ;;  %v8923_v15 = vpack.c.bf16 %v1294_v5, %v1293_v4  ;;  %v8933_v42 = vpack.c.bf16 %v1316_v38, %v1315_v36  ;;  %v8937_v0 = vpack.c.bf16 %v1318_v39, %v1317_v54  ;;  %v1334_v4 = vld [vmem:[%s10055_s25 + $0x1b78] sm:$0xff]  ;;  %v1367_v5 = vld [vmem:[%s10055_s25 + $0x1c80] sm:$0xff] }
 0x1dc   : > { %v11079_v25 = vadd.f32 %v6732_v9, %v3286_v12  ;;  %8872 = vmatpush3.bf16.msra.mxu0 %v8871_v6  ;;  %v1311_v9 = vld [vmem:[%s10055_s25 + $0x1ac0] sm:$0xff]  ;;  %v1368_v58 = vld [vmem:[%s10055_s25 + $0x1c88] sm:$0xff]  ;;  %v9009_v32 = vpack.c.bf16 %v1402_v24, %v1401_v21  ;;  %v1374_v54 = vld [vmem:[%s10055_s25 + $0x1cb8] sm:$0xff] }
 0x1dd   : > { %8904 = vmatpush3.bf16.msra.mxu1 %v8903_v10  ;;  %8874 = vmatprep.subr.bf16.mxu0 %v8873_v13  ;;  %v1312_v10 = vld [vmem:[%s10055_s25 + $0x1ac8] sm:$0xff]  ;;  %v1343_v13 = vld [vmem:[%s10055_s25 + $0x1bc0] sm:$0xff]  ;;  %v1406_v39 = vld [vmem:[%s10055_s25 + $0x1db8] sm:$0xff] }
 0x1de   : > { %8906 = vmatprep.subr.bf16.mxu1 %v8905_v18  ;;  %v8925_v12 = vpack.c.bf16 %v1312_v10, %v1311_v9  ;;  %v1295_v18 = vld [vmem:[%s10055_s25 + $0x1a40] sm:$0xff]  ;;  %v8957_v8 = vpack.c.bf16 %v1344_v11, %v1343_v13  ;;  %v1400_v7 = vld [vmem:[%s10055_s25 + $0x1d88] sm:$0xff]  ;;  %v8973_v11 = vpack.c.bf16 %v1368_v58, %v1367_v5 }
 0x1df   : > { %v1371_v23 = vld [vmem:[%s10055_s25 + $0x1ca0] sm:$0xff]  ;;  %v1372_v36 = vld [vmem:[%s10055_s25 + $0x1ca8] sm:$0xff] }
 0x1e0   : > { %8876 = vmatpush3.bf16.msra.mxu0 %v8875_v43  ;;  %v1345_v43 = vld [vmem:[%s10055_s25 + $0x1bd0] sm:$0xff]  ;;  %v1391_v5 = vld [vmem:[%s10055_s25 + $0x1d40] sm:$0xff]  ;;  %v1380_v24 = vld [vmem:[%s10055_s25 + $0x1ce8] sm:$0xff] }
 0x1e1   : > { %8908 = vmatpush3.bf16.msra.mxu1 %v8907_v27  ;;  %8910 = vmatprep.subr.bf16.mxu0 %v8909_v22  ;;  %v1346_v27 = vld [vmem:[%s10055_s25 + $0x1bd8] sm:$0xff]  ;;  %v8927_v22 = vpack.c.bf16 %v1296_v19, %v1295_v18  ;;  %v1384_v19 = vld [vmem:[%s10055_s25 + $0x1d08] sm:$0xff]  ;;  %v1379_v21 = vld [vmem:[%s10055_s25 + $0x1ce0] sm:$0xff] }
 0x1e2   : > { %8942 = vmatprep.subr.bf16.mxu1 %v8941_v31  ;;  %v1298_v31 = vld [vmem:[%s10055_s25 + $0x1a58] sm:$0xff]  ;;  %v8961_v33 = vpack.c.bf16 %v1346_v27, %v1345_v43 }
 0x1e3   : > { %4264 = vmatmul.mubr.f32.vlgmr.msra.gmra.mrb[24].mxu0 %v11008_v48  ;;  %v1292_v48 = vld [vmem:[%s10055_s25 + $0x1a28] sm:$0xff] }
 0x1e4   : > { %8912 = vmatpush3.bf16.msra.mxu0 %v8911_v40  ;;  %4334 = vmatmul.mubr.f32.vlgmr.msra.gmra.mrb[24].mxu1 %v11013_v63  ;;  %v1341_v63 = vld [vmem:[%s10055_s25 + $0x1bb0] sm:$0xff]  ;;  %v8919_v1 = vpack.c.bf16 %v1292_v48, %v1291_v60  ;;  %v1347_v40 = vld [vmem:[%s10055_s25 + $0x1be0] sm:$0xff] }
 0x1e5   : > { %8944 = vmatpush3.bf16.msra.mxu1 %v8943_v26  ;;  %8914 = vmatprep.subr.bf16.mxu0 %v8913_v53  ;;  %v8953_v6 = vpack.c.bf16 %v1342_v55, %v1341_v63  ;;  %v1348_v26 = vld [vmem:[%s10055_s25 + $0x1be8] sm:$0xff]  ;;  %v8931_v53 = vpack.c.bf16 %v1298_v31, %v1297_v30  ;;  %v1301_v63 = vld [vmem:[%s10055_s25 + $0x1a70] sm:$0xff]  ;;  %v1302_v55 = vld [vmem:[%s10055_s25 + $0x1a78] sm:$0xff] }
 0x1e6   : > { %8946 = vmatprep.subr.bf16.mxu1 %v8945_v45  ;;  %4403 = vmatprep.mubr.f32.mxu0 %v2251_v50  ;;  %v1300_v45 = vld [vmem:[%s10055_s25 + $0x1a68] sm:$0xff]  ;;  %v8965_v49 = vpack.c.bf16 %v1348_v26, %v1347_v40  ;;  %v1354_v30 = vld [vmem:[%s10055_s25 + $0x1c18] sm:$0xff]  ;;  %v1385_v31 = vld [vmem:[%s10055_s25 + $0x1d10] sm:$0xff] }
 0x1e7   : > { %4473 = vmatprep.mubr.f32.mxu1 %v2252_v34  ;;  %v1332_v50 = vld [vmem:[%s10055_s25 + $0x1b68] sm:$0xff]  ;;  %v8935_v61 = vpack.c.bf16 %v1300_v45, %v1299_v44  ;;  %v1403_v40 = vld [vmem:[%s10055_s25 + $0x1da0] sm:$0xff]  ;;  %v8981_v44 = vpack.c.bf16 %v1372_v36, %v1371_v23 }
 0x1e8   : > { %8916 = vmatpush3.bf16.msra.mxu0 %v8915_v56  ;;  %v8967_v62 = vpack.c.bf16 %v1332_v50, %v1331_v47  ;;  %v1404_v26 = vld [vmem:[%s10055_s25 + $0x1da8] sm:$0xff]  ;;  %v1355_v45 = vld [vmem:[%s10055_s25 + $0x1c20] sm:$0xff]  ;;  %v1373_v50 = vld [vmem:[%s10055_s25 + $0x1cb0] sm:$0xff] }
 0x1e9   : > { %8948 = vmatpush3.bf16.msra.mxu1 %v8947_v57  ;;  %8918 = vmatprep.subr.bf16.mxu0 %v8917_v59  ;;  %v1349_v57 = vld [vmem:[%s10055_s25 + $0x1bf0] sm:$0xff]  ;;  %v1350_v59 = vld [vmem:[%s10055_s25 + $0x1bf8] sm:$0xff]  ;;  %v1387_v47 = vld [vmem:[%s10055_s25 + $0x1d20] sm:$0xff] }
 0x1ea   : > { %8950 = vmatprep.subr.bf16.mxu1 %v8949_v52  ;;  %v445_v52 = vld [vmem:[%s10065_s21 + $0x70] sm:$0xff] }
 0x1eb   : > { %v2253_v9 = vcombine.high %v445_v52, %v445_v52  ;;  %v11168_v20 = vrot.slane %v445_v52, %v10118_v14  ;;  %v1390_v52 = vld [vmem:[%s10055_s25 + $0x1d38] sm:$0xff] }
 0x1ec   : > { %8920 = vmatpush3.bf16.msra.mxu0 %v8919_v1  ;;  %v1333_v1 = vld [vmem:[%s10055_s25 + $0x1b70] sm:$0xff] }
 0x1ed   : > { %8952 = vmatpush3.bf16.msra.mxu1 %v8951_v2  ;;  %8922 = vmatprep.subr.bf16.mxu0 %v8921_v3  ;;  %v8969_v3 = vpack.c.bf16 %v1350_v59, %v1349_v57  ;;  %v8971_v13 = vpack.c.bf16 %v1334_v4, %v1333_v1  ;;  %v11173_v43 = vrot.slane %v2253_v9, %v10118_v14  ;;  %v1357_v59 = vld [vmem:[%s10055_s25 + $0x1c30] sm:$0xff]  ;;  %v1360_v4 = vld [vmem:[%s10055_s25 + $0x1c48] sm:$0xff]  ;;  %v1378_v9 = vld [vmem:[%s10055_s25 + $0x1cd8] sm:$0xff] }
 0x1ee   : > { %8954 = vmatprep.subr.bf16.mxu1 %v8953_v6  ;;  %v1399_v6 = vld [vmem:[%s10055_s25 + $0x1d80] sm:$0xff]  ;;  %v2268_v38 = vcombine.high %v11168_v20, %v11168_v20  ;;  %v8985_v57 = vpack.c.bf16 %v1374_v54, %v1373_v50 }
 0x1ef   : > { %v9005_v18 = vpack.c.bf16 %v1400_v7, %v1399_v6  ;;  %v1392_v6 = vld [vmem:[%s10055_s25 + $0x1d48] sm:$0xff]  ;;  %v1377_v7 = vld [vmem:[%s10055_s25 + $0x1cd0] sm:$0xff] }
 0x1f0   : > { %8924 = vmatpush3.bf16.msra.mxu0 %v8923_v15  ;;  %v1351_v15 = vld [vmem:[%s10055_s25 + $0x1c00] sm:$0xff] }
 0x1f1   : > { %8956 = vmatpush3.bf16.msra.mxu1 %v8955_v17  ;;  %8926 = vmatprep.subr.bf16.mxu0 %v8925_v12  ;;  %v1352_v17 = vld [vmem:[%s10055_s25 + $0x1c08] sm:$0xff]  ;;  %v1383_v12 = vld [vmem:[%s10055_s25 + $0x1d00] sm:$0xff] }
 0x1f2   : > { %8958 = vmatprep.subr.bf16.mxu1 %v8957_v8  ;;  %v1370_v8 = vld [vmem:[%s10055_s25 + $0x1c98] sm:$0xff]  ;;  %v8975_v27 = vpack.c.bf16 %v1352_v17, %v1351_v15  ;;  %v9023_v15 = vpack.c.bf16 %v1392_v6, %v1391_v5  ;;  %v8993_v17 = vpack.c.bf16 %v1378_v9, %v1377_v7  ;;  %v1433_v5 = vld [vmem:[%s10055_s25 + $0x1e90] sm:$0xff] }
 0x1f3   : > { %v1465_v7 = vld [vmem:[%s10055_s25 + $0x1f90] sm:$0xff]  ;;  %v1466_v9 = vld [vmem:[%s10055_s25 + $0x1f98] sm:$0xff] }
 0x1f4   : > { %8928 = vmatpush3.bf16.msra.mxu0 %v8927_v22  ;;  %v9007_v22 = vpack.c.bf16 %v1384_v19, %v1383_v12  ;;  %v1361_v12 = vld [vmem:[%s10055_s25 + $0x1c50] sm:$0xff] }
 0x1f5   : > { %8960 = vmatpush3.bf16.msra.mxu1 %v8959_v28  ;;  %8930 = vmatprep.subr.bf16.mxu0 %v8929_v29  ;;  %v8977_v28 = vpack.c.bf16 %v1370_v8, %v1369_v16  ;;  %v1353_v29 = vld [vmem:[%s10055_s25 + $0x1c10] sm:$0xff]  ;;  %v1394_v8 = vld [vmem:[%s10055_s25 + $0x1d58] sm:$0xff] }
 0x1f6   : > { %v6765_v37 = vpop.f32.mrb[12].mxu0  ;;  %8962 = vmatprep.subr.bf16.mxu1 %v8961_v33  ;;  %v1386_v33 = vld [vmem:[%s10055_s25 + $0x1d18] sm:$0xff]  ;;  %v1393_v19 = vld [vmem:[%s10055_s25 + $0x1d50] sm:$0xff] }
 0x1f7   : > { %v6766_v34 = vpop.f32.mrb[13].mxu0  ;;  %v6800_v56 = vpop.f32.mrb[12].mxu1 }
 0x1f8   : > { %v6767_v60 = vadd.f32 %v6766_v34, %v6765_v37  ;;  %8932 = vmatpush3.bf16.msra.mxu0 %v8931_v53  ;;  %v6801_v48 = vpop.f32.mrb[13].mxu1  ;;  %v2269_v53 = vcombine.high %v11173_v43, %v11173_v43  ;;  %v9013_v37 = vpack.c.bf16 %v1404_v26, %v1403_v40  ;;  %v1381_v40 = vld [vmem:[%s10055_s25 + $0x1cf0] sm:$0xff]  ;;  %v1382_v26 = vld [vmem:[%s10055_s25 + $0x1cf8] sm:$0xff] }
 0x1f9   : > { %v6802_v46 = vadd.f32 %v6801_v48, %v6800_v56  ;;  %8964 = vmatpush3.bf16.msra.mxu1 %v8963_v41  ;;  %8934 = vmatprep.subr.bf16.mxu0 %v8933_v42  ;;  %v8979_v41 = vpack.c.bf16 %v1354_v30, %v1353_v29  ;;  %v9011_v42 = vpack.c.bf16 %v1386_v33, %v1385_v31  ;;  %v1389_v48 = vld [vmem:[%s10055_s25 + $0x1d30] sm:$0xff]  ;;  %v1363_v31 = vld [vmem:[%s10055_s25 + $0x1c60] sm:$0xff] }
 0x1fa   : > { %v3426_v2 = vadd.f32 %v6767_v60, %v11079_v25  ;;  %8966 = vmatprep.subr.bf16.mxu1 %v8965_v49  ;;  %v8939_v25 = vpack.c.bf16 %v1302_v55, %v1301_v63  ;;  %v1388_v49 = vld [vmem:[%s10055_s25 + $0x1d28] sm:$0xff]  ;;  %v1358_v60 = vld [vmem:[%s10055_s25 + $0x1c38] sm:$0xff]  ;;  %v9019_v1 = vpack.c.bf16 %v1390_v52, %v1389_v48  ;;  %v9027_v29 = vpack.c.bf16 %v1394_v8, %v1393_v19  ;;  %v1395_v33 = vld [vmem:[%s10055_s25 + $0x1d60] sm:$0xff] }
 0x1fb   : > { %v9015_v56 = vpack.c.bf16 %v1388_v49, %v1387_v47  ;;  %v1408_v63 = vld [vmem:[%s10055_s25 + $0x1dc8] sm:$0xff]  ;;  %v8987_v55 = vpack.c.bf16 %v1358_v60, %v1357_v59  ;;  %v8997_v30 = vpack.c.bf16 %v1380_v24, %v1379_v21  ;;  %v9001_v54 = vpack.c.bf16 %v1382_v26, %v1381_v40  ;;  %v1398_v59 = vld [vmem:[%s10055_s25 + $0x1d78] sm:$0xff]  ;;  %v1431_v60 = vld [vmem:[%s10055_s25 + $0x1e80] sm:$0xff] }
 0x1fc   : > { %v11159_v10 = vadd.f32 %v6802_v46, %v3426_v2  ;;  %8936 = vmatpush3.bf16.msra.mxu0 %v8935_v61  ;;  %v1375_v46 = vld [vmem:[%s10055_s25 + $0x1cc0] sm:$0xff]  ;;  %v1432_v48 = vld [vmem:[%s10055_s25 + $0x1e88] sm:$0xff]  ;;  %v9073_v19 = vpack.c.bf16 %v1466_v9, %v1465_v7  ;;  %v1438_v40 = vld [vmem:[%s10055_s25 + $0x1eb8] sm:$0xff] }
 0x1fd   : > { %8968 = vmatpush3.bf16.msra.mxu1 %v8967_v62  ;;  %8938 = vmatprep.subr.bf16.mxu0 %v8937_v0  ;;  %v1376_v62 = vld [vmem:[%s10055_s25 + $0x1cc8] sm:$0xff]  ;;  %v1407_v0 = vld [vmem:[%s10055_s25 + $0x1dc0] sm:$0xff]  ;;  %v1470_v26 = vld [vmem:[%s10055_s25 + $0x1fb8] sm:$0xff] }
 0x1fe   : > { %8970 = vmatprep.subr.bf16.mxu1 %v8969_v3  ;;  %v8989_v2 = vpack.c.bf16 %v1376_v62, %v1375_v46  ;;  %v1359_v3 = vld [vmem:[%s10055_s25 + $0x1c40] sm:$0xff]  ;;  %v9021_v58 = vpack.c.bf16 %v1408_v63, %v1407_v0  ;;  %v1464_v52 = vld [vmem:[%s10055_s25 + $0x1f88] sm:$0xff]  ;;  %v9037_v63 = vpack.c.bf16 %v1432_v48, %v1431_v60 }
 0x1ff   : > { %v1435_v8 = vld [vmem:[%s10055_s25 + $0x1ea0] sm:$0xff]  ;;  %v1436_v21 = vld [vmem:[%s10055_s25 + $0x1ea8] sm:$0xff] }
 0x200   : > { %8940 = vmatpush3.bf16.msra.mxu0 %v8939_v25  ;;  %v1409_v25 = vld [vmem:[%s10055_s25 + $0x1dd0] sm:$0xff]  ;;  %v1455_v60 = vld [vmem:[%s10055_s25 + $0x1f40] sm:$0xff]  ;;  %v1444_v9 = vld [vmem:[%s10055_s25 + $0x1ee8] sm:$0xff] }
 0x201   : > { %8972 = vmatpush3.bf16.msra.mxu1 %v8971_v13  ;;  %8974 = vmatprep.subr.bf16.mxu0 %v8973_v11  ;;  %v1410_v13 = vld [vmem:[%s10055_s25 + $0x1dd8] sm:$0xff]  ;;  %v8991_v11 = vpack.c.bf16 %v1360_v4, %v1359_v3  ;;  %v1448_v4 = vld [vmem:[%s10055_s25 + $0x1f08] sm:$0xff]  ;;  %v1443_v7 = vld [vmem:[%s10055_s25 + $0x1ee0] sm:$0xff] }
 0x202   : > { %9006 = vmatprep.subr.bf16.mxu1 %v9005_v18  ;;  %v1362_v18 = vld [vmem:[%s10055_s25 + $0x1c58] sm:$0xff]  ;;  %v9025_v16 = vpack.c.bf16 %v1410_v13, %v1409_v25 }
 0x203   : > { %4404 = vmatmul.mubr.f32.vlgmr.msra.gmra.mrb[26].mxu0 %v11088_v35  ;;  %v1356_v35 = vld [vmem:[%s10055_s25 + $0x1c28] sm:$0xff] }
 0x204   : > { %8976 = vmatpush3.bf16.msra.mxu0 %v8975_v27  ;;  %4474 = vmatmul.mubr.f32.vlgmr.msra.gmra.mrb[26].mxu1 %v11093_v51  ;;  %v1405_v51 = vld [vmem:[%s10055_s25 + $0x1db0] sm:$0xff]  ;;  %v8983_v34 = vpack.c.bf16 %v1356_v35, %v1355_v45  ;;  %v1411_v27 = vld [vmem:[%s10055_s25 + $0x1de0] sm:$0xff] }
 0x205   : > { %9008 = vmatpush3.bf16.msra.mxu1 %v9007_v22  ;;  %8978 = vmatprep.subr.bf16.mxu0 %v8977_v28  ;;  %v9017_v61 = vpack.c.bf16 %v1406_v39, %v1405_v51  ;;  %v1412_v22 = vld [vmem:[%s10055_s25 + $0x1de8] sm:$0xff]  ;;  %v8995_v28 = vpack.c.bf16 %v1362_v18, %v1361_v12  ;;  %v1365_v51 = vld [vmem:[%s10055_s25 + $0x1c70] sm:$0xff]  ;;  %v1366_v39 = vld [vmem:[%s10055_s25 + $0x1c78] sm:$0xff] }
 0x206   : > { %9010 = vmatprep.subr.bf16.mxu1 %v9009_v32  ;;  %4543 = vmatprep.mubr.f32.mxu0 %v2268_v38  ;;  %v1364_v32 = vld [vmem:[%s10055_s25 + $0x1c68] sm:$0xff]  ;;  %v9029_v36 = vpack.c.bf16 %v1412_v22, %v1411_v27  ;;  %v1418_v12 = vld [vmem:[%s10055_s25 + $0x1e18] sm:$0xff]  ;;  %v1449_v18 = vld [vmem:[%s10055_s25 + $0x1f10] sm:$0xff] }
 0x207   : > { %4613 = vmatprep.mubr.f32.mxu1 %v2269_v53  ;;  %v1396_v38 = vld [vmem:[%s10055_s25 + $0x1d68] sm:$0xff]  ;;  %v8999_v47 = vpack.c.bf16 %v1364_v32, %v1363_v31  ;;  %v1467_v27 = vld [vmem:[%s10055_s25 + $0x1fa0] sm:$0xff]  ;;  %v9045_v31 = vpack.c.bf16 %v1436_v21, %v1435_v8 }
 0x208   : > { %8980 = vmatpush3.bf16.msra.mxu0 %v8979_v41  ;;  %v9031_v50 = vpack.c.bf16 %v1396_v38, %v1395_v33  ;;  %v1468_v22 = vld [vmem:[%s10055_s25 + $0x1fa8] sm:$0xff]  ;;  %v1419_v32 = vld [vmem:[%s10055_s25 + $0x1e20] sm:$0xff]  ;;  %v1437_v38 = vld [vmem:[%s10055_s25 + $0x1eb0] sm:$0xff] }
 0x209   : > { %9012 = vmatpush3.bf16.msra.mxu1 %v9011_v42  ;;  %8982 = vmatprep.subr.bf16.mxu0 %v8981_v44  ;;  %v1413_v42 = vld [vmem:[%s10055_s25 + $0x1df0] sm:$0xff]  ;;  %v1414_v44 = vld [vmem:[%s10055_s25 + $0x1df8] sm:$0xff]  ;;  %v1451_v33 = vld [vmem:[%s10055_s25 + $0x1f20] sm:$0xff] }
 0x20a   : > { %9014 = vmatprep.subr.bf16.mxu1 %v9013_v37  ;;  %v446_v37 = vld [vmem:[%s10065_s21 + $0x78] sm:$0xff] }
 0x20b   : > { %v2270_v46 = vcombine.high %v446_v37, %v446_v37  ;;  %v11248_v6 = vrot.slane %v446_v37, %v10118_v14  ;;  %v1454_v37 = vld [vmem:[%s10055_s25 + $0x1f38] sm:$0xff] }
 0x20c   : > { %8984 = vmatpush3.bf16.msra.mxu0 %v8983_v34  ;;  %v1397_v34 = vld [vmem:[%s10055_s25 + $0x1d70] sm:$0xff] }
 0x20d   : > { %9016 = vmatpush3.bf16.msra.mxu1 %v9015_v56  ;;  %8986 = vmatprep.subr.bf16.mxu0 %v8985_v57  ;;  %v9033_v57 = vpack.c.bf16 %v1414_v44, %v1413_v42  ;;  %v9035_v0 = vpack.c.bf16 %v1398_v59, %v1397_v34  ;;  %v11253_v25 = vrot.slane %v2270_v46, %v10118_v14  ;;  %v1421_v44 = vld [vmem:[%s10055_s25 + $0x1e30] sm:$0xff]  ;;  %v1424_v59 = vld [vmem:[%s10055_s25 + $0x1e48] sm:$0xff]  ;;  %v1442_v46 = vld [vmem:[%s10055_s25 + $0x1ed8] sm:$0xff] }
 0x20e   : > { %9018 = vmatprep.subr.bf16.mxu1 %v9017_v61  ;;  %v1463_v61 = vld [vmem:[%s10055_s25 + $0x1f80] sm:$0xff]  ;;  %v2285_v24 = vcombine.high %v11248_v6, %v11248_v6  ;;  %v9049_v42 = vpack.c.bf16 %v1438_v40, %v1437_v38 }
 0x20f   : > { %v9069_v3 = vpack.c.bf16 %v1464_v52, %v1463_v61  ;;  %v1456_v61 = vld [vmem:[%s10055_s25 + $0x1f48] sm:$0xff]  ;;  %v1441_v52 = vld [vmem:[%s10055_s25 + $0x1ed0] sm:$0xff] }
 0x210   : > { %8988 = vmatpush3.bf16.msra.mxu0 %v8987_v55  ;;  %v1415_v55 = vld [vmem:[%s10055_s25 + $0x1e00] sm:$0xff] }
 0x211   : > { %9020 = vmatpush3.bf16.msra.mxu1 %v9019_v1  ;;  %8990 = vmatprep.subr.bf16.mxu0 %v8989_v2  ;;  %v1416_v1 = vld [vmem:[%s10055_s25 + $0x1e08] sm:$0xff]  ;;  %v1447_v2 = vld [vmem:[%s10055_s25 + $0x1f00] sm:$0xff] }
 0x212   : > { %9022 = vmatprep.subr.bf16.mxu1 %v9021_v58  ;;  %v1434_v58 = vld [vmem:[%s10055_s25 + $0x1e98] sm:$0xff]  ;;  %v9039_v13 = vpack.c.bf16 %v1416_v1, %v1415_v55  ;;  %v9087_v55 = vpack.c.bf16 %v1456_v61, %v1455_v60  ;;  %v9057_v1 = vpack.c.bf16 %v1442_v46, %v1441_v52  ;;  %v1497_v60 = vld [vmem:[%s10055_s25 + $0x2090] sm:$0xff] }
 0x213   : > { %v1529_v52 = vld [vmem:[%s10055_s25 + $0x2190] sm:$0xff]  ;;  %v1530_v46 = vld [vmem:[%s10055_s25 + $0x2198] sm:$0xff] }
 0x214   : > { %8992 = vmatpush3.bf16.msra.mxu0 %v8991_v11  ;;  %v9071_v11 = vpack.c.bf16 %v1448_v4, %v1447_v2  ;;  %v1425_v2 = vld [vmem:[%s10055_s25 + $0x1e50] sm:$0xff] }
 0x215   : > { %9024 = vmatpush3.bf16.msra.mxu1 %v9023_v15  ;;  %8994 = vmatprep.subr.bf16.mxu0 %v8993_v17  ;;  %v9041_v15 = vpack.c.bf16 %v1434_v58, %v1433_v5  ;;  %v1417_v17 = vld [vmem:[%s10055_s25 + $0x1e10] sm:$0xff]  ;;  %v1458_v58 = vld [vmem:[%s10055_s25 + $0x1f58] sm:$0xff] }
 0x216   : > { %v6835_v23 = vpop.f32.mrb[14].mxu0  ;;  %9026 = vmatprep.subr.bf16.mxu1 %v9025_v16  ;;  %v1450_v16 = vld [vmem:[%s10055_s25 + $0x1f18] sm:$0xff]  ;;  %v1457_v4 = vld [vmem:[%s10055_s25 + $0x1f50] sm:$0xff] }
 0x217   : > { %v6836_v53 = vpop.f32.mrb[15].mxu0  ;;  %v6870_v41 = vpop.f32.mrb[14].mxu1 }
 0x218   : > { %v6837_v45 = vadd.f32 %v6836_v53, %v6835_v23  ;;  %8996 = vmatpush3.bf16.msra.mxu0 %v8995_v28  ;;  %v6871_v35 = vpop.f32.mrb[15].mxu1  ;;  %v2286_v28 = vcombine.high %v11253_v25, %v11253_v25  ;;  %v9077_v23 = vpack.c.bf16 %v1468_v22, %v1467_v27  ;;  %v1445_v27 = vld [vmem:[%s10055_s25 + $0x1ef0] sm:$0xff]  ;;  %v1446_v22 = vld [vmem:[%s10055_s25 + $0x1ef8] sm:$0xff] }
 0x219   : > { %v6872_v49 = vadd.f32 %v6871_v35, %v6870_v41  ;;  %9028 = vmatpush3.bf16.msra.mxu1 %v9027_v29  ;;  %8998 = vmatprep.subr.bf16.mxu0 %v8997_v30  ;;  %v9043_v29 = vpack.c.bf16 %v1418_v12, %v1417_v17  ;;  %v9075_v30 = vpack.c.bf16 %v1450_v16, %v1449_v18  ;;  %v1453_v35 = vld [vmem:[%s10055_s25 + $0x1f30] sm:$0xff]  ;;  %v1427_v18 = vld [vmem:[%s10055_s25 + $0x1e60] sm:$0xff] }
 0x21a   : > { %v3566_v56 = vadd.f32 %v6837_v45, %v11159_v10  ;;  %9030 = vmatprep.subr.bf16.mxu1 %v9029_v36  ;;  %v9003_v10 = vpack.c.bf16 %v1366_v39, %v1365_v51  ;;  %v1452_v36 = vld [vmem:[%s10055_s25 + $0x1f28] sm:$0xff]  ;;  %v1422_v45 = vld [vmem:[%s10055_s25 + $0x1e38] sm:$0xff]  ;;  %v9083_v34 = vpack.c.bf16 %v1454_v37, %v1453_v35  ;;  %v9091_v17 = vpack.c.bf16 %v1458_v58, %v1457_v4  ;;  %v1459_v16 = vld [vmem:[%s10055_s25 + $0x1f60] sm:$0xff] }
 0x21b   : > { %v9079_v41 = vpack.c.bf16 %v1452_v36, %v1451_v33  ;;  %v1472_v51 = vld [vmem:[%s10055_s25 + $0x1fc8] sm:$0xff]  ;;  %v9051_v39 = vpack.c.bf16 %v1422_v45, %v1421_v44  ;;  %v9061_v12 = vpack.c.bf16 %v1444_v9, %v1443_v7  ;;  %v9065_v40 = vpack.c.bf16 %v1446_v22, %v1445_v27  ;;  %v1462_v44 = vld [vmem:[%s10055_s25 + $0x1f78] sm:$0xff]  ;;  %v1495_v45 = vld [vmem:[%s10055_s25 + $0x2080] sm:$0xff] }
 0x21c   : > { %v11239_v62 = vadd.f32 %v6872_v49, %v3566_v56  ;;  %9000 = vmatpush3.bf16.msra.mxu0 %v8999_v47  ;;  %v1439_v49 = vld [vmem:[%s10055_s25 + $0x1ec0] sm:$0xff]  ;;  %v1496_v35 = vld [vmem:[%s10055_s25 + $0x2088] sm:$0xff]  ;;  %v9137_v4 = vpack.c.bf16 %v1530_v46, %v1529_v52  ;;  %v1502_v27 = vld [vmem:[%s10055_s25 + $0x20b8] sm:$0xff] }
 0x21d   : > { %9032 = vmatpush3.bf16.msra.mxu1 %v9031_v50  ;;  %9002 = vmatprep.subr.bf16.mxu0 %v9001_v54  ;;  %v1440_v50 = vld [vmem:[%s10055_s25 + $0x1ec8] sm:$0xff]  ;;  %v1471_v54 = vld [vmem:[%s10055_s25 + $0x1fc0] sm:$0xff]  ;;  %v1534_v22 = vld [vmem:[%s10055_s25 + $0x21b8] sm:$0xff] }
 0x21e   : > { %9034 = vmatprep.subr.bf16.mxu1 %v9033_v57  ;;  %v9053_v56 = vpack.c.bf16 %v1440_v50, %v1439_v49  ;;  %v1423_v57 = vld [vmem:[%s10055_s25 + $0x1e40] sm:$0xff]  ;;  %v9085_v48 = vpack.c.bf16 %v1472_v51, %v1471_v54  ;;  %v1528_v37 = vld [vmem:[%s10055_s25 + $0x2188] sm:$0xff]  ;;  %v9101_v51 = vpack.c.bf16 %v1496_v35, %v1495_v45 }
 0x21f   : > { %v1499_v58 = vld [vmem:[%s10055_s25 + $0x20a0] sm:$0xff]  ;;  %v1500_v7 = vld [vmem:[%s10055_s25 + $0x20a8] sm:$0xff] }
 0x220   : > { %9004 = vmatpush3.bf16.msra.mxu0 %v9003_v10  ;;  %v1473_v10 = vld [vmem:[%s10055_s25 + $0x1fd0] sm:$0xff]  ;;  %v1519_v45 = vld [vmem:[%s10055_s25 + $0x2140] sm:$0xff]  ;;  %v1508_v46 = vld [vmem:[%s10055_s25 + $0x20e8] sm:$0xff] }
 0x221   : > { %9036 = vmatpush3.bf16.msra.mxu1 %v9035_v0  ;;  %9038 = vmatprep.subr.bf16.mxu0 %v9037_v63  ;;  %v1474_v0 = vld [vmem:[%s10055_s25 + $0x1fd8] sm:$0xff]  ;;  %v9055_v63 = vpack.c.bf16 %v1424_v59, %v1423_v57  ;;  %v1512_v59 = vld [vmem:[%s10055_s25 + $0x2108] sm:$0xff]  ;;  %v1507_v52 = vld [vmem:[%s10055_s25 + $0x20e0] sm:$0xff] }
 0x222   : > { %9070 = vmatprep.subr.bf16.mxu1 %v9069_v3  ;;  %v1426_v3 = vld [vmem:[%s10055_s25 + $0x1e58] sm:$0xff]  ;;  %v9089_v5 = vpack.c.bf16 %v1474_v0, %v1473_v10 }
 0x223   : > { %4544 = vmatmul.mubr.f32.vlgmr.msra.gmra.mrb[28].mxu0 %v11168_v20  ;;  %v1420_v20 = vld [vmem:[%s10055_s25 + $0x1e28] sm:$0xff] }
 0x224   : > { %9040 = vmatpush3.bf16.msra.mxu0 %v9039_v13  ;;  %4614 = vmatmul.mubr.f32.vlgmr.msra.gmra.mrb[28].mxu1 %v11173_v43  ;;  %v1469_v43 = vld [vmem:[%s10055_s25 + $0x1fb0] sm:$0xff]  ;;  %v9047_v53 = vpack.c.bf16 %v1420_v20, %v1419_v32  ;;  %v1475_v13 = vld [vmem:[%s10055_s25 + $0x1fe0] sm:$0xff] }
 0x225   : > { %9072 = vmatpush3.bf16.msra.mxu1 %v9071_v11  ;;  %9042 = vmatprep.subr.bf16.mxu0 %v9041_v15  ;;  %v9081_v47 = vpack.c.bf16 %v1470_v26, %v1469_v43  ;;  %v1476_v11 = vld [vmem:[%s10055_s25 + $0x1fe8] sm:$0xff]  ;;  %v9059_v15 = vpack.c.bf16 %v1426_v3, %v1425_v2  ;;  %v1429_v43 = vld [vmem:[%s10055_s25 + $0x1e70] sm:$0xff]  ;;  %v1430_v26 = vld [vmem:[%s10055_s25 + $0x1e78] sm:$0xff] }
 0x226   : > { %9074 = vmatprep.subr.bf16.mxu1 %v9073_v19  ;;  %4683 = vmatprep.mubr.f32.mxu0 %v2285_v24  ;;  %v1428_v19 = vld [vmem:[%s10055_s25 + $0x1e68] sm:$0xff]  ;;  %v9093_v21 = vpack.c.bf16 %v1476_v11, %v1475_v13  ;;  %v1482_v2 = vld [vmem:[%s10055_s25 + $0x2018] sm:$0xff]  ;;  %v1513_v3 = vld [vmem:[%s10055_s25 + $0x2110] sm:$0xff] }
 0x227   : > { %4753 = vmatprep.mubr.f32.mxu1 %v2286_v28  ;;  %v1460_v24 = vld [vmem:[%s10055_s25 + $0x1f68] sm:$0xff]  ;;  %v9063_v33 = vpack.c.bf16 %v1428_v19, %v1427_v18  ;;  %v1531_v13 = vld [vmem:[%s10055_s25 + $0x21a0] sm:$0xff]  ;;  %v9109_v18 = vpack.c.bf16 %v1500_v7, %v1499_v58 }
 0x228   : > { %9044 = vmatpush3.bf16.msra.mxu0 %v9043_v29  ;;  %v9095_v38 = vpack.c.bf16 %v1460_v24, %v1459_v16  ;;  %v1532_v11 = vld [vmem:[%s10055_s25 + $0x21a8] sm:$0xff]  ;;  %v1483_v19 = vld [vmem:[%s10055_s25 + $0x2020] sm:$0xff]  ;;  %v1501_v24 = vld [vmem:[%s10055_s25 + $0x20b0] sm:$0xff] }
 0x229   : > { %9076 = vmatpush3.bf16.msra.mxu1 %v9075_v30  ;;  %9046 = vmatprep.subr.bf16.mxu0 %v9045_v31  ;;  %v1477_v30 = vld [vmem:[%s10055_s25 + $0x1ff0] sm:$0xff]  ;;  %v1478_v31 = vld [vmem:[%s10055_s25 + $0x1ff8] sm:$0xff]  ;;  %v1515_v16 = vld [vmem:[%s10055_s25 + $0x2120] sm:$0xff] }
 0x22a   : > { %9078 = vmatprep.subr.bf16.mxu1 %v9077_v23  ;;  %v447_v23 = vld [vmem:[%s10065_s21 + $0x80] sm:$0xff] }
 0x22b   : > { %v2287_v49 = vcombine.high %v447_v23, %v447_v23  ;;  %v11328_v61 = vrot.slane %v447_v23, %v10118_v14  ;;  %v1518_v23 = vld [vmem:[%s10055_s25 + $0x2138] sm:$0xff] }
 0x22c   : > { %9048 = vmatpush3.bf16.msra.mxu0 %v9047_v53  ;;  %v1461_v53 = vld [vmem:[%s10055_s25 + $0x1f70] sm:$0xff] }
 0x22d   : > { %9080 = vmatpush3.bf16.msra.mxu1 %v9079_v41  ;;  %9050 = vmatprep.subr.bf16.mxu0 %v9049_v42  ;;  %v9097_v42 = vpack.c.bf16 %v1478_v31, %v1477_v30  ;;  %v9099_v54 = vpack.c.bf16 %v1462_v44, %v1461_v53  ;;  %v11333_v10 = vrot.slane %v2287_v49, %v10118_v14  ;;  %v1485_v31 = vld [vmem:[%s10055_s25 + $0x2030] sm:$0xff]  ;;  %v1488_v44 = vld [vmem:[%s10055_s25 + $0x2048] sm:$0xff]  ;;  %v1506_v49 = vld [vmem:[%s10055_s25 + $0x20d8] sm:$0xff] }
 0x22e   : > { %9082 = vmatprep.subr.bf16.mxu1 %v9081_v47  ;;  %v1527_v47 = vld [vmem:[%s10055_s25 + $0x2180] sm:$0xff]  ;;  %v2302_v9 = vcombine.high %v11328_v61, %v11328_v61  ;;  %v9113_v30 = vpack.c.bf16 %v1502_v27, %v1501_v24 }
 0x22f   : > { %v9133_v57 = vpack.c.bf16 %v1528_v37, %v1527_v47  ;;  %v1520_v47 = vld [vmem:[%s10055_s25 + $0x2148] sm:$0xff]  ;;  %v1505_v37 = vld [vmem:[%s10055_s25 + $0x20d0] sm:$0xff] }
 0x230   : > { %9052 = vmatpush3.bf16.msra.mxu0 %v9051_v39  ;;  %v1479_v39 = vld [vmem:[%s10055_s25 + $0x2000] sm:$0xff] }
 0x231   : > { %9084 = vmatpush3.bf16.msra.mxu1 %v9083_v34  ;;  %9054 = vmatprep.subr.bf16.mxu0 %v9053_v56  ;;  %v1480_v34 = vld [vmem:[%s10055_s25 + $0x2008] sm:$0xff]  ;;  %v1511_v56 = vld [vmem:[%s10055_s25 + $0x2100] sm:$0xff] }
 0x232   : > { %9086 = vmatprep.subr.bf16.mxu1 %v9085_v48  ;;  %v1498_v48 = vld [vmem:[%s10055_s25 + $0x2098] sm:$0xff]  ;;  %v9103_v0 = vpack.c.bf16 %v1480_v34, %v1479_v39  ;;  %v9151_v39 = vpack.c.bf16 %v1520_v47, %v1519_v45  ;;  %v9121_v34 = vpack.c.bf16 %v1506_v49, %v1505_v37  ;;  %v1561_v45 = vld [vmem:[%s10055_s25 + $0x2290] sm:$0xff] }
 0x233   : > { %v1593_v37 = vld [vmem:[%s10055_s25 + $0x2390] sm:$0xff]  ;;  %v1594_v49 = vld [vmem:[%s10055_s25 + $0x2398] sm:$0xff] }
 0x234   : > { %9056 = vmatpush3.bf16.msra.mxu0 %v9055_v63  ;;  %v9135_v63 = vpack.c.bf16 %v1512_v59, %v1511_v56  ;;  %v1489_v56 = vld [vmem:[%s10055_s25 + $0x2050] sm:$0xff] }
 0x235   : > { %9088 = vmatpush3.bf16.msra.mxu1 %v9087_v55  ;;  %9058 = vmatprep.subr.bf16.mxu0 %v9057_v1  ;;  %v9105_v55 = vpack.c.bf16 %v1498_v48, %v1497_v60  ;;  %v1481_v1 = vld [vmem:[%s10055_s25 + $0x2010] sm:$0xff]  ;;  %v1522_v48 = vld [vmem:[%s10055_s25 + $0x2158] sm:$0xff] }
 0x236   : > { %v6905_v8 = vpop.f32.mrb[16].mxu0  ;;  %9090 = vmatprep.subr.bf16.mxu1 %v9089_v5  ;;  %v1514_v5 = vld [vmem:[%s10055_s25 + $0x2118] sm:$0xff]  ;;  %v1521_v59 = vld [vmem:[%s10055_s25 + $0x2150] sm:$0xff] }
 0x237   : > { %v6906_v28 = vpop.f32.mrb[17].mxu0  ;;  %v6940_v29 = vpop.f32.mrb[16].mxu1 }
 0x238   : > { %v6907_v32 = vadd.f32 %v6906_v28, %v6905_v8  ;;  %9060 = vmatpush3.bf16.msra.mxu0 %v9059_v15  ;;  %v6941_v20 = vpop.f32.mrb[17].mxu1  ;;  %v2303_v15 = vcombine.high %v11333_v10, %v11333_v10  ;;  %v9141_v8 = vpack.c.bf16 %v1532_v11, %v1531_v13  ;;  %v1509_v13 = vld [vmem:[%s10055_s25 + $0x20f0] sm:$0xff]  ;;  %v1510_v11 = vld [vmem:[%s10055_s25 + $0x20f8] sm:$0xff] }
 0x239   : > { %v6942_v36 = vadd.f32 %v6941_v20, %v6940_v29  ;;  %9092 = vmatpush3.bf16.msra.mxu1 %v9091_v17  ;;  %9062 = vmatprep.subr.bf16.mxu0 %v9061_v12  ;;  %v9107_v17 = vpack.c.bf16 %v1482_v2, %v1481_v1  ;;  %v9139_v12 = vpack.c.bf16 %v1514_v5, %v1513_v3  ;;  %v1517_v20 = vld [vmem:[%s10055_s25 + $0x2130] sm:$0xff]  ;;  %v1491_v3 = vld [vmem:[%s10055_s25 + $0x2060] sm:$0xff] }
 0x23a   : > { %v3706_v41 = vadd.f32 %v6907_v32, %v11239_v62  ;;  %9094 = vmatprep.subr.bf16.mxu1 %v9093_v21  ;;  %v9067_v62 = vpack.c.bf16 %v1430_v26, %v1429_v43  ;;  %v1516_v21 = vld [vmem:[%s10055_s25 + $0x2128] sm:$0xff]  ;;  %v1486_v32 = vld [vmem:[%s10055_s25 + $0x2038] sm:$0xff]  ;;  %v9147_v53 = vpack.c.bf16 %v1518_v23, %v1517_v20  ;;  %v9155_v1 = vpack.c.bf16 %v1522_v48, %v1521_v59  ;;  %v1523_v5 = vld [vmem:[%s10055_s25 + $0x2160] sm:$0xff] }
 0x23b   : > { %v9143_v29 = vpack.c.bf16 %v1516_v21, %v1515_v16  ;;  %v1536_v43 = vld [vmem:[%s10055_s25 + $0x21c8] sm:$0xff]  ;;  %v9115_v26 = vpack.c.bf16 %v1486_v32, %v1485_v31  ;;  %v9125_v2 = vpack.c.bf16 %v1508_v46, %v1507_v52  ;;  %v9129_v27 = vpack.c.bf16 %v1510_v11, %v1509_v13  ;;  %v1526_v31 = vld [vmem:[%s10055_s25 + $0x2178] sm:$0xff]  ;;  %v1559_v32 = vld [vmem:[%s10055_s25 + $0x2280] sm:$0xff] }
 0x23c   : > { %v11319_v50 = vadd.f32 %v6942_v36, %v3706_v41  ;;  %9064 = vmatpush3.bf16.msra.mxu0 %v9063_v33  ;;  %v1503_v36 = vld [vmem:[%s10055_s25 + $0x20c0] sm:$0xff]  ;;  %v1560_v20 = vld [vmem:[%s10055_s25 + $0x2288] sm:$0xff]  ;;  %v9201_v59 = vpack.c.bf16 %v1594_v49, %v1593_v37  ;;  %v1566_v13 = vld [vmem:[%s10055_s25 + $0x22b8] sm:$0xff] }
 0x23d   : > { %9096 = vmatpush3.bf16.msra.mxu1 %v9095_v38  ;;  %9066 = vmatprep.subr.bf16.mxu0 %v9065_v40  ;;  %v1504_v38 = vld [vmem:[%s10055_s25 + $0x20c8] sm:$0xff]  ;;  %v1535_v40 = vld [vmem:[%s10055_s25 + $0x21c0] sm:$0xff]  ;;  %v1598_v11 = vld [vmem:[%s10055_s25 + $0x23b8] sm:$0xff] }
 0x23e   : > { %9098 = vmatprep.subr.bf16.mxu1 %v9097_v42  ;;  %v9117_v41 = vpack.c.bf16 %v1504_v38, %v1503_v36  ;;  %v1487_v42 = vld [vmem:[%s10055_s25 + $0x2040] sm:$0xff]  ;;  %v9149_v35 = vpack.c.bf16 %v1536_v43, %v1535_v40  ;;  %v1592_v23 = vld [vmem:[%s10055_s25 + $0x2388] sm:$0xff]  ;;  %v9165_v43 = vpack.c.bf16 %v1560_v20, %v1559_v32 }
 0x23f   : > { %v1563_v48 = vld [vmem:[%s10055_s25 + $0x22a0] sm:$0xff]  ;;  %v1564_v52 = vld [vmem:[%s10055_s25 + $0x22a8] sm:$0xff] }
 0x240   : > { %9068 = vmatpush3.bf16.msra.mxu0 %v9067_v62  ;;  %v1537_v62 = vld [vmem:[%s10055_s25 + $0x21d0] sm:$0xff]  ;;  %v1583_v32 = vld [vmem:[%s10055_s25 + $0x2340] sm:$0xff]  ;;  %v1572_v49 = vld [vmem:[%s10055_s25 + $0x22e8] sm:$0xff] }
 0x241   : > { %9100 = vmatpush3.bf16.msra.mxu1 %v9099_v54  ;;  %9102 = vmatprep.subr.bf16.mxu0 %v9101_v51  ;;  %v1538_v54 = vld [vmem:[%s10055_s25 + $0x21d8] sm:$0xff]  ;;  %v9119_v51 = vpack.c.bf16 %v1488_v44, %v1487_v42  ;;  %v1576_v44 = vld [vmem:[%s10055_s25 + $0x2308] sm:$0xff]  ;;  %v1571_v37 = vld [vmem:[%s10055_s25 + $0x22e0] sm:$0xff] }
 0x242   : > { %9134 = vmatprep.subr.bf16.mxu1 %v9133_v57  ;;  %v1490_v57 = vld [vmem:[%s10055_s25 + $0x2058] sm:$0xff]  ;;  %v9153_v60 = vpack.c.bf16 %v1538_v54, %v1537_v62 }
 0x243   : > { %4684 = vmatmul.mubr.f32.vlgmr.msra.gmra.mrb[30].mxu0 %v11248_v6  ;;  %v1484_v6 = vld [vmem:[%s10055_s25 + $0x2028] sm:$0xff] }
 0x244   : > { %9104 = vmatpush3.bf16.msra.mxu0 %v9103_v0  ;;  %4754 = vmatmul.mubr.f32.vlgmr.msra.gmra.mrb[30].mxu1 %v11253_v25  ;;  %v1533_v25 = vld [vmem:[%s10055_s25 + $0x21b0] sm:$0xff]  ;;  %v9111_v28 = vpack.c.bf16 %v1484_v6, %v1483_v19  ;;  %v1539_v0 = vld [vmem:[%s10055_s25 + $0x21e0] sm:$0xff] }
 0x245   : > { %9136 = vmatpush3.bf16.msra.mxu1 %v9135_v63  ;;  %9106 = vmatprep.subr.bf16.mxu0 %v9105_v55  ;;  %v9145_v33 = vpack.c.bf16 %v1534_v22, %v1533_v25  ;;  %v1540_v63 = vld [vmem:[%s10055_s25 + $0x21e8] sm:$0xff]  ;;  %v9123_v55 = vpack.c.bf16 %v1490_v57, %v1489_v56  ;;  %v1493_v25 = vld [vmem:[%s10055_s25 + $0x2070] sm:$0xff]  ;;  %v1494_v22 = vld [vmem:[%s10055_s25 + $0x2078] sm:$0xff] }
 0x246   : > { %9138 = vmatprep.subr.bf16.mxu1 %v9137_v4  ;;  %4823 = vmatprep.mubr.f32.mxu0 %v2302_v9  ;;  %v1492_v4 = vld [vmem:[%s10055_s25 + $0x2068] sm:$0xff]  ;;  %v9157_v7 = vpack.c.bf16 %v1540_v63, %v1539_v0  ;;  %v1546_v56 = vld [vmem:[%s10055_s25 + $0x2218] sm:$0xff]  ;;  %v1577_v57 = vld [vmem:[%s10055_s25 + $0x2310] sm:$0xff] }
 0x247   : > { %4893 = vmatprep.mubr.f32.mxu1 %v2303_v15  ;;  %v1524_v9 = vld [vmem:[%s10055_s25 + $0x2168] sm:$0xff]  ;;  %v9127_v16 = vpack.c.bf16 %v1492_v4, %v1491_v3  ;;  %v1595_v0 = vld [vmem:[%s10055_s25 + $0x23a0] sm:$0xff]  ;;  %v9173_v3 = vpack.c.bf16 %v1564_v52, %v1563_v48 }
 0x248   : > { %9108 = vmatpush3.bf16.msra.mxu0 %v9107_v17  ;;  %v9159_v24 = vpack.c.bf16 %v1524_v9, %v1523_v5  ;;  %v1596_v63 = vld [vmem:[%s10055_s25 + $0x23a8] sm:$0xff]  ;;  %v1547_v4 = vld [vmem:[%s10055_s25 + $0x2220] sm:$0xff]  ;;  %v1565_v9 = vld [vmem:[%s10055_s25 + $0x22b0] sm:$0xff] }
 0x249   : > { %9140 = vmatpush3.bf16.msra.mxu1 %v9139_v12  ;;  %9110 = vmatprep.subr.bf16.mxu0 %v9109_v18  ;;  %v1541_v12 = vld [vmem:[%s10055_s25 + $0x21f0] sm:$0xff]  ;;  %v1542_v18 = vld [vmem:[%s10055_s25 + $0x21f8] sm:$0xff]  ;;  %v1579_v5 = vld [vmem:[%s10055_s25 + $0x2320] sm:$0xff] }
 0x24a   : > { %9142 = vmatprep.subr.bf16.mxu1 %v9141_v8  ;;  %v448_v8 = vld [vmem:[%s10065_s21 + $0x88] sm:$0xff] }
 0x24b   : > { %v2304_v36 = vcombine.high %v448_v8, %v448_v8  ;;  %v11408_v47 = vrot.slane %v448_v8, %v10118_v14  ;;  %v1582_v8 = vld [vmem:[%s10055_s25 + $0x2338] sm:$0xff] }
 0x24c   : > { %9112 = vmatpush3.bf16.msra.mxu0 %v9111_v28  ;;  %v1525_v28 = vld [vmem:[%s10055_s25 + $0x2170] sm:$0xff] }
 0x24d   : > { %9144 = vmatpush3.bf16.msra.mxu1 %v9143_v29  ;;  %9114 = vmatprep.subr.bf16.mxu0 %v9113_v30  ;;  %v9161_v30 = vpack.c.bf16 %v1542_v18, %v1541_v12  ;;  %v9163_v40 = vpack.c.bf16 %v1526_v31, %v1525_v28  ;;  %v11413_v62 = vrot.slane %v2304_v36, %v10118_v14  ;;  %v1549_v18 = vld [vmem:[%s10055_s25 + $0x2230] sm:$0xff]  ;;  %v1552_v31 = vld [vmem:[%s10055_s25 + $0x2248] sm:$0xff]  ;;  %v1570_v36 = vld [vmem:[%s10055_s25 + $0x22d8] sm:$0xff] }
 0x24e   : > { %9146 = vmatprep.subr.bf16.mxu1 %v9145_v33  ;;  %v1591_v33 = vld [vmem:[%s10055_s25 + $0x2380] sm:$0xff]  ;;  %v2319_v46 = vcombine.high %v11408_v47, %v11408_v47  ;;  %v9177_v12 = vpack.c.bf16 %v1566_v13, %v1565_v9 }
 0x24f   : > { %v9197_v42 = vpack.c.bf16 %v1592_v23, %v1591_v33  ;;  %v1584_v33 = vld [vmem:[%s10055_s25 + $0x2348] sm:$0xff]  ;;  %v1569_v23 = vld [vmem:[%s10055_s25 + $0x22d0] sm:$0xff] }
 0x250   : > { %9116 = vmatpush3.bf16.msra.mxu0 %v9115_v26  ;;  %v1543_v26 = vld [vmem:[%s10055_s25 + $0x2200] sm:$0xff] }
 0x251   : > { %9148 = vmatpush3.bf16.msra.mxu1 %v9147_v53  ;;  %9118 = vmatprep.subr.bf16.mxu0 %v9117_v41  ;;  %v1544_v53 = vld [vmem:[%s10055_s25 + $0x2208] sm:$0xff]  ;;  %v1575_v41 = vld [vmem:[%s10055_s25 + $0x2300] sm:$0xff] }
 0x252   : > { %9150 = vmatprep.subr.bf16.mxu1 %v9149_v35  ;;  %v1562_v35 = vld [vmem:[%s10055_s25 + $0x2298] sm:$0xff]  ;;  %v9167_v54 = vpack.c.bf16 %v1544_v53, %v1543_v26  ;;  %v9215_v26 = vpack.c.bf16 %v1584_v33, %v1583_v32  ;;  %v9185_v53 = vpack.c.bf16 %v1570_v36, %v1569_v23  ;;  %v1625_v32 = vld [vmem:[%s10055_s25 + $0x2490] sm:$0xff] }
 0x253   : > { %v1657_v23 = vld [vmem:[%s10055_s25 + $0x2590] sm:$0xff]  ;;  %v1658_v36 = vld [vmem:[%s10055_s25 + $0x2598] sm:$0xff] }
 0x254   : > { %9120 = vmatpush3.bf16.msra.mxu0 %v9119_v51  ;;  %v9199_v51 = vpack.c.bf16 %v1576_v44, %v1575_v41  ;;  %v1553_v41 = vld [vmem:[%s10055_s25 + $0x2250] sm:$0xff] }
 0x255   : > { %9152 = vmatpush3.bf16.msra.mxu1 %v9151_v39  ;;  %9122 = vmatprep.subr.bf16.mxu0 %v9121_v34  ;;  %v9169_v39 = vpack.c.bf16 %v1562_v35, %v1561_v45  ;;  %v1545_v34 = vld [vmem:[%s10055_s25 + $0x2210] sm:$0xff]  ;;  %v1586_v35 = vld [vmem:[%s10055_s25 + $0x2358] sm:$0xff] }
 0x256   : > { %v6975_v58 = vpop.f32.mrb[18].mxu0  ;;  %9154 = vmatprep.subr.bf16.mxu1 %v9153_v60  ;;  %v1578_v60 = vld [vmem:[%s10055_s25 + $0x2318] sm:$0xff]  ;;  %v1585_v44 = vld [vmem:[%s10055_s25 + $0x2350] sm:$0xff] }
 0x257   : > { %v6976_v15 = vpop.f32.mrb[19].mxu0  ;;  %v7010_v17 = vpop.f32.mrb[18].mxu1 }
 0x258   : > { %v6977_v19 = vadd.f32 %v6976_v15, %v6975_v58  ;;  %9124 = vmatpush3.bf16.msra.mxu0 %v9123_v55  ;;  %v7011_v6 = vpop.f32.mrb[19].mxu1  ;;  %v2320_v55 = vcombine.high %v11413_v62, %v11413_v62  ;;  %v9205_v58 = vpack.c.bf16 %v1596_v63, %v1595_v0  ;;  %v1573_v0 = vld [vmem:[%s10055_s25 + $0x22f0] sm:$0xff]  ;;  %v1574_v63 = vld [vmem:[%s10055_s25 + $0x22f8] sm:$0xff] }
 0x259   : > { %v7012_v21 = vadd.f32 %v7011_v6, %v7010_v17  ;;  %9156 = vmatpush3.bf16.msra.mxu1 %v9155_v1  ;;  %9126 = vmatprep.subr.bf16.mxu0 %v9125_v2  ;;  %v9171_v1 = vpack.c.bf16 %v1546_v56, %v1545_v34  ;;  %v9203_v2 = vpack.c.bf16 %v1578_v60, %v1577_v57  ;;  %v1581_v6 = vld [vmem:[%s10055_s25 + $0x2330] sm:$0xff]  ;;  %v1555_v57 = vld [vmem:[%s10055_s25 + $0x2260] sm:$0xff] }
 0x25a   : > { %v3846_v29 = vadd.f32 %v6977_v19, %v11319_v50  ;;  %9158 = vmatprep.subr.bf16.mxu1 %v9157_v7  ;;  %v9131_v50 = vpack.c.bf16 %v1494_v22, %v1493_v25  ;;  %v1580_v7 = vld [vmem:[%s10055_s25 + $0x2328] sm:$0xff]  ;;  %v1550_v19 = vld [vmem:[%s10055_s25 + $0x2238] sm:$0xff]  ;;  %v9211_v28 = vpack.c.bf16 %v1582_v8, %v1581_v6  ;;  %v9219_v34 = vpack.c.bf16 %v1586_v35, %v1585_v44  ;;  %v1587_v60 = vld [vmem:[%s10055_s25 + $0x2360] sm:$0xff] }
 0x25b   : > { %v9207_v17 = vpack.c.bf16 %v1580_v7, %v1579_v5  ;;  %v1600_v25 = vld [vmem:[%s10055_s25 + $0x23c8] sm:$0xff]  ;;  %v9179_v22 = vpack.c.bf16 %v1550_v19, %v1549_v18  ;;  %v9189_v56 = vpack.c.bf16 %v1572_v49, %v1571_v37  ;;  %v9193_v13 = vpack.c.bf16 %v1574_v63, %v1573_v0  ;;  %v1590_v18 = vld [vmem:[%s10055_s25 + $0x2378] sm:$0xff]  ;;  %v1623_v19 = vld [vmem:[%s10055_s25 + $0x2480] sm:$0xff] }
 0x25c   : > { %v11399_v38 = vadd.f32 %v7012_v21, %v3846_v29  ;;  %9128 = vmatpush3.bf16.msra.mxu0 %v9127_v16  ;;  %v1567_v21 = vld [vmem:[%s10055_s25 + $0x22c0] sm:$0xff]  ;;  %v1624_v6 = vld [vmem:[%s10055_s25 + $0x2488] sm:$0xff]  ;;  %v9265_v44 = vpack.c.bf16 %v1658_v36, %v1657_v23  ;;  %v1630_v0 = vld [vmem:[%s10055_s25 + $0x24b8] sm:$0xff] }
 0x25d   : > { %9160 = vmatpush3.bf16.msra.mxu1 %v9159_v24  ;;  %9130 = vmatprep.subr.bf16.mxu0 %v9129_v27  ;;  %v1568_v24 = vld [vmem:[%s10055_s25 + $0x22c8] sm:$0xff]  ;;  %v1599_v27 = vld [vmem:[%s10055_s25 + $0x23c0] sm:$0xff]  ;;  %v1662_v63 = vld [vmem:[%s10055_s25 + $0x25b8] sm:$0xff] }
 0x25e   : > { %9162 = vmatprep.subr.bf16.mxu1 %v9161_v30  ;;  %v9181_v29 = vpack.c.bf16 %v1568_v24, %v1567_v21  ;;  %v1551_v30 = vld [vmem:[%s10055_s25 + $0x2240] sm:$0xff]  ;;  %v9213_v20 = vpack.c.bf16 %v1600_v25, %v1599_v27  ;;  %v1656_v8 = vld [vmem:[%s10055_s25 + $0x2588] sm:$0xff]  ;;  %v9229_v25 = vpack.c.bf16 %v1624_v6, %v1623_v19 }
 0x25f   : > { %v1627_v35 = vld [vmem:[%s10055_s25 + $0x24a0] sm:$0xff]  ;;  %v1628_v37 = vld [vmem:[%s10055_s25 + $0x24a8] sm:$0xff] }
 0x260   : > { %9132 = vmatpush3.bf16.msra.mxu0 %v9131_v50  ;;  %v1601_v50 = vld [vmem:[%s10055_s25 + $0x23d0] sm:$0xff]  ;;  %v1647_v19 = vld [vmem:[%s10055_s25 + $0x2540] sm:$0xff]  ;;  %v1636_v36 = vld [vmem:[%s10055_s25 + $0x24e8] sm:$0xff] }
 0x261   : > { %9164 = vmatpush3.bf16.msra.mxu1 %v9163_v40  ;;  %9166 = vmatprep.subr.bf16.mxu0 %v9165_v43  ;;  %v1602_v40 = vld [vmem:[%s10055_s25 + $0x23d8] sm:$0xff]  ;;  %v9183_v43 = vpack.c.bf16 %v1552_v31, %v1551_v30  ;;  %v1640_v31 = vld [vmem:[%s10055_s25 + $0x2508] sm:$0xff]  ;;  %v1635_v23 = vld [vmem:[%s10055_s25 + $0x24e0] sm:$0xff] }
 0x262   : > { %9198 = vmatprep.subr.bf16.mxu1 %v9197_v42  ;;  %v1554_v42 = vld [vmem:[%s10055_s25 + $0x2258] sm:$0xff]  ;;  %v9217_v45 = vpack.c.bf16 %v1602_v40, %v1601_v50 }
 0x263   : > { %4824 = vmatmul.mubr.f32.vlgmr.msra.gmra.mrb[32].mxu0 %v11328_v61  ;;  %v1548_v61 = vld [vmem:[%s10055_s25 + $0x2228] sm:$0xff] }
 0x264   : > { %9168 = vmatpush3.bf16.msra.mxu0 %v9167_v54  ;;  %4894 = vmatmul.mubr.f32.vlgmr.msra.gmra.mrb[32].mxu1 %v11333_v10  ;;  %v1597_v10 = vld [vmem:[%s10055_s25 + $0x23b0] sm:$0xff]  ;;  %v9175_v15 = vpack.c.bf16 %v1548_v61, %v1547_v4  ;;  %v1603_v54 = vld [vmem:[%s10055_s25 + $0x23e0] sm:$0xff] }
 0x265   : > { %9200 = vmatpush3.bf16.msra.mxu1 %v9199_v51  ;;  %9170 = vmatprep.subr.bf16.mxu0 %v9169_v39  ;;  %v9209_v16 = vpack.c.bf16 %v1598_v11, %v1597_v10  ;;  %v1604_v51 = vld [vmem:[%s10055_s25 + $0x23e8] sm:$0xff]  ;;  %v9187_v39 = vpack.c.bf16 %v1554_v42, %v1553_v41  ;;  %v1557_v10 = vld [vmem:[%s10055_s25 + $0x2270] sm:$0xff]  ;;  %v1558_v11 = vld [vmem:[%s10055_s25 + $0x2278] sm:$0xff] }
 0x266   : > { %9202 = vmatprep.subr.bf16.mxu1 %v9201_v59  ;;  %4963 = vmatprep.mubr.f32.mxu0 %v2319_v46  ;;  %v1556_v59 = vld [vmem:[%s10055_s25 + $0x2268] sm:$0xff]  ;;  %v9221_v52 = vpack.c.bf16 %v1604_v51, %v1603_v54  ;;  %v1610_v41 = vld [vmem:[%s10055_s25 + $0x2418] sm:$0xff]  ;;  %v1641_v42 = vld [vmem:[%s10055_s25 + $0x2510] sm:$0xff] }
 0x267   : > { %5033 = vmatprep.mubr.f32.mxu1 %v2320_v55  ;;  %v1588_v46 = vld [vmem:[%s10055_s25 + $0x2368] sm:$0xff]  ;;  %v9191_v5 = vpack.c.bf16 %v1556_v59, %v1555_v57  ;;  %v1659_v54 = vld [vmem:[%s10055_s25 + $0x25a0] sm:$0xff]  ;;  %v9237_v57 = vpack.c.bf16 %v1628_v37, %v1627_v35 }
 0x268   : > { %9172 = vmatpush3.bf16.msra.mxu0 %v9171_v1  ;;  %v9223_v9 = vpack.c.bf16 %v1588_v46, %v1587_v60  ;;  %v1660_v51 = vld [vmem:[%s10055_s25 + $0x25a8] sm:$0xff]  ;;  %v1611_v59 = vld [vmem:[%s10055_s25 + $0x2420] sm:$0xff]  ;;  %v1629_v46 = vld [vmem:[%s10055_s25 + $0x24b0] sm:$0xff] }
 0x269   : > { %9204 = vmatpush3.bf16.msra.mxu1 %v9203_v2  ;;  %9174 = vmatprep.subr.bf16.mxu0 %v9173_v3  ;;  %v1605_v2 = vld [vmem:[%s10055_s25 + $0x23f0] sm:$0xff]  ;;  %v1606_v3 = vld [vmem:[%s10055_s25 + $0x23f8] sm:$0xff]  ;;  %v1643_v60 = vld [vmem:[%s10055_s25 + $0x2520] sm:$0xff] }
 0x26a   : > { %9206 = vmatprep.subr.bf16.mxu1 %v9205_v58  ;;  %v449_v58 = vld [vmem:[%s10065_s21 + $0x90] sm:$0xff] }
 0x26b   : > { %v2321_v21 = vcombine.high %v449_v58, %v449_v58  ;;  %v11488_v33 = vrot.slane %v449_v58, %v10118_v14  ;;  %v1646_v58 = vld [vmem:[%s10055_s25 + $0x2538] sm:$0xff] }
 0x26c   : > { %9176 = vmatpush3.bf16.msra.mxu0 %v9175_v15  ;;  %v1589_v15 = vld [vmem:[%s10055_s25 + $0x2370] sm:$0xff] }
 0x26d   : > { %9208 = vmatpush3.bf16.msra.mxu1 %v9207_v17  ;;  %9178 = vmatprep.subr.bf16.mxu0 %v9177_v12  ;;  %v9225_v12 = vpack.c.bf16 %v1606_v3, %v1605_v2  ;;  %v9227_v27 = vpack.c.bf16 %v1590_v18, %v1589_v15  ;;  %v11493_v50 = vrot.slane %v2321_v21, %v10118_v14  ;;  %v1613_v3 = vld [vmem:[%s10055_s25 + $0x2430] sm:$0xff]  ;;  %v1616_v18 = vld [vmem:[%s10055_s25 + $0x2448] sm:$0xff]  ;;  %v1634_v21 = vld [vmem:[%s10055_s25 + $0x24d8] sm:$0xff] }
 0x26e   : > { %9210 = vmatprep.subr.bf16.mxu1 %v9209_v16  ;;  %v1655_v16 = vld [vmem:[%s10055_s25 + $0x2580] sm:$0xff]  ;;  %v2336_v49 = vcombine.high %v11488_v33, %v11488_v33  ;;  %v9241_v2 = vpack.c.bf16 %v1630_v0, %v1629_v46 }
 0x26f   : > { %v9261_v30 = vpack.c.bf16 %v1656_v8, %v1655_v16  ;;  %v1648_v16 = vld [vmem:[%s10055_s25 + $0x2548] sm:$0xff]  ;;  %v1633_v8 = vld [vmem:[%s10055_s25 + $0x24d0] sm:$0xff] }
 0x270   : > { %9180 = vmatpush3.bf16.msra.mxu0 %v9179_v22  ;;  %v1607_v22 = vld [vmem:[%s10055_s25 + $0x2400] sm:$0xff] }
 0x271   : > { %9212 = vmatpush3.bf16.msra.mxu1 %v9211_v28  ;;  %9182 = vmatprep.subr.bf16.mxu0 %v9181_v29  ;;  %v1608_v28 = vld [vmem:[%s10055_s25 + $0x2408] sm:$0xff]  ;;  %v1639_v29 = vld [vmem:[%s10055_s25 + $0x2500] sm:$0xff] }
 0x272   : > { %9214 = vmatprep.subr.bf16.mxu1 %v9213_v20  ;;  %v1626_v20 = vld [vmem:[%s10055_s25 + $0x2498] sm:$0xff]  ;;  %v9231_v40 = vpack.c.bf16 %v1608_v28, %v1607_v22  ;;  %v9279_v22 = vpack.c.bf16 %v1648_v16, %v1647_v19  ;;  %v9249_v28 = vpack.c.bf16 %v1634_v21, %v1633_v8  ;;  %v1689_v19 = vld [vmem:[%s10055_s25 + $0x2690] sm:$0xff] }
 0x273   : > { %v1721_v8 = vld [vmem:[%s10055_s25 + $0x2790] sm:$0xff]  ;;  %v1722_v21 = vld [vmem:[%s10055_s25 + $0x2798] sm:$0xff] }
 0x274   : > { %9184 = vmatpush3.bf16.msra.mxu0 %v9183_v43  ;;  %v9263_v43 = vpack.c.bf16 %v1640_v31, %v1639_v29  ;;  %v1617_v29 = vld [vmem:[%s10055_s25 + $0x2450] sm:$0xff] }
 0x275   : > { %9216 = vmatpush3.bf16.msra.mxu1 %v9215_v26  ;;  %9186 = vmatprep.subr.bf16.mxu0 %v9185_v53  ;;  %v9233_v26 = vpack.c.bf16 %v1626_v20, %v1625_v32  ;;  %v1609_v53 = vld [vmem:[%s10055_s25 + $0x2410] sm:$0xff]  ;;  %v1650_v20 = vld [vmem:[%s10055_s25 + $0x2558] sm:$0xff] }
 0x276   : > { %v7045_v48 = vpop.f32.mrb[20].mxu0  ;;  %9218 = vmatprep.subr.bf16.mxu1 %v9217_v45  ;;  %v1642_v45 = vld [vmem:[%s10055_s25 + $0x2518] sm:$0xff]  ;;  %v1649_v31 = vld [vmem:[%s10055_s25 + $0x2550] sm:$0xff] }
 0x277   : > { %v7046_v55 = vpop.f32.mrb[21].mxu0  ;;  %v7080_v1 = vpop.f32.mrb[20].mxu1 }
 0x278   : > { %v7047_v4 = vadd.f32 %v7046_v55, %v7045_v48  ;;  %9188 = vmatpush3.bf16.msra.mxu0 %v9187_v39  ;;  %v7081_v61 = vpop.f32.mrb[21].mxu1  ;;  %v2337_v39 = vcombine.high %v11493_v50, %v11493_v50  ;;  %v9269_v48 = vpack.c.bf16 %v1660_v51, %v1659_v54  ;;  %v1637_v54 = vld [vmem:[%s10055_s25 + $0x24f0] sm:$0xff]  ;;  %v1638_v51 = vld [vmem:[%s10055_s25 + $0x24f8] sm:$0xff] }
 0x279   : > { %v7082_v7 = vadd.f32 %v7081_v61, %v7080_v1  ;;  %9220 = vmatpush3.bf16.msra.mxu1 %v9219_v34  ;;  %9190 = vmatprep.subr.bf16.mxu0 %v9189_v56  ;;  %v9235_v34 = vpack.c.bf16 %v1610_v41, %v1609_v53  ;;  %v9267_v56 = vpack.c.bf16 %v1642_v45, %v1641_v42  ;;  %v1645_v61 = vld [vmem:[%s10055_s25 + $0x2530] sm:$0xff]  ;;  %v1619_v42 = vld [vmem:[%s10055_s25 + $0x2460] sm:$0xff] }
 0x27a   : > { %v3986_v17 = vadd.f32 %v7047_v4, %v11399_v38  ;;  %9222 = vmatprep.subr.bf16.mxu1 %v9221_v52  ;;  %v9195_v38 = vpack.c.bf16 %v1558_v11, %v1557_v10  ;;  %v1644_v52 = vld [vmem:[%s10055_s25 + $0x2528] sm:$0xff]  ;;  %v1614_v4 = vld [vmem:[%s10055_s25 + $0x2438] sm:$0xff]  ;;  %v9275_v15 = vpack.c.bf16 %v1646_v58, %v1645_v61  ;;  %v9283_v53 = vpack.c.bf16 %v1650_v20, %v1649_v31  ;;  %v1651_v45 = vld [vmem:[%s10055_s25 + $0x2560] sm:$0xff] }
 0x27b   : > { %v9271_v1 = vpack.c.bf16 %v1644_v52, %v1643_v60  ;;  %v1664_v10 = vld [vmem:[%s10055_s25 + $0x25c8] sm:$0xff]  ;;  %v9243_v11 = vpack.c.bf16 %v1614_v4, %v1613_v3  ;;  %v9253_v41 = vpack.c.bf16 %v1636_v36, %v1635_v23  ;;  %v9257_v0 = vpack.c.bf16 %v1638_v51, %v1637_v54  ;;  %v1654_v3 = vld [vmem:[%s10055_s25 + $0x2578] sm:$0xff]  ;;  %v1687_v4 = vld [vmem:[%s10055_s25 + $0x2680] sm:$0xff] }
 0x27c   : > { %v11479_v24 = vadd.f32 %v7082_v7, %v3986_v17  ;;  %9192 = vmatpush3.bf16.msra.mxu0 %v9191_v5  ;;  %v1631_v7 = vld [vmem:[%s10055_s25 + $0x24c0] sm:$0xff]  ;;  %v1688_v61 = vld [vmem:[%s10055_s25 + $0x2688] sm:$0xff]  ;;  %v9329_v31 = vpack.c.bf16 %v1722_v21, %v1721_v8  ;;  %v1694_v54 = vld [vmem:[%s10055_s25 + $0x26b8] sm:$0xff] }
 0x27d   : > { %9224 = vmatpush3.bf16.msra.mxu1 %v9223_v9  ;;  %9194 = vmatprep.subr.bf16.mxu0 %v9193_v13  ;;  %v1632_v9 = vld [vmem:[%s10055_s25 + $0x24c8] sm:$0xff]  ;;  %v1663_v13 = vld [vmem:[%s10055_s25 + $0x25c0] sm:$0xff]  ;;  %v1726_v51 = vld [vmem:[%s10055_s25 + $0x27b8] sm:$0xff] }
 0x27e   : > { %9226 = vmatprep.subr.bf16.mxu1 %v9225_v12  ;;  %v9245_v17 = vpack.c.bf16 %v1632_v9, %v1631_v7  ;;  %v1615_v12 = vld [vmem:[%s10055_s25 + $0x2440] sm:$0xff]  ;;  %v9277_v6 = vpack.c.bf16 %v1664_v10, %v1663_v13  ;;  %v1720_v58 = vld [vmem:[%s10055_s25 + $0x2788] sm:$0xff]  ;;  %v9293_v10 = vpack.c.bf16 %v1688_v61, %v1687_v4 }
 0x27f   : > { %v1691_v20 = vld [vmem:[%s10055_s25 + $0x26a0] sm:$0xff]  ;;  %v1692_v23 = vld [vmem:[%s10055_s25 + $0x26a8] sm:$0xff] }
 0x280   : > { %9196 = vmatpush3.bf16.msra.mxu0 %v9195_v38  ;;  %v1665_v38 = vld [vmem:[%s10055_s25 + $0x25d0] sm:$0xff]  ;;  %v1711_v4 = vld [vmem:[%s10055_s25 + $0x2740] sm:$0xff]  ;;  %v1700_v21 = vld [vmem:[%s10055_s25 + $0x26e8] sm:$0xff] }
 0x281   : > { %9228 = vmatpush3.bf16.msra.mxu1 %v9227_v27  ;;  %9230 = vmatprep.subr.bf16.mxu0 %v9229_v25  ;;  %v1666_v27 = vld [vmem:[%s10055_s25 + $0x25d8] sm:$0xff]  ;;  %v9247_v25 = vpack.c.bf16 %v1616_v18, %v1615_v12  ;;  %v1704_v18 = vld [vmem:[%s10055_s25 + $0x2708] sm:$0xff]  ;;  %v1699_v8 = vld [vmem:[%s10055_s25 + $0x26e0] sm:$0xff] }
 0x282   : > { %9262 = vmatprep.subr.bf16.mxu1 %v9261_v30  ;;  %v1618_v30 = vld [vmem:[%s10055_s25 + $0x2458] sm:$0xff]  ;;  %v9281_v32 = vpack.c.bf16 %v1666_v27, %v1665_v38 }
 0x283   : > { %4964 = vmatmul.mubr.f32.vlgmr.msra.gmra.mrb[34].mxu0 %v11408_v47  ;;  %v1612_v47 = vld [vmem:[%s10055_s25 + $0x2428] sm:$0xff] }
 0x284   : > { %9232 = vmatpush3.bf16.msra.mxu0 %v9231_v40  ;;  %5034 = vmatmul.mubr.f32.vlgmr.msra.gmra.mrb[34].mxu1 %v11413_v62  ;;  %v1661_v62 = vld [vmem:[%s10055_s25 + $0x25b0] sm:$0xff]  ;;  %v9239_v55 = vpack.c.bf16 %v1612_v47, %v1611_v59  ;;  %v1667_v40 = vld [vmem:[%s10055_s25 + $0x25e0] sm:$0xff] }
 0x285   : > { %9264 = vmatpush3.bf16.msra.mxu1 %v9263_v43  ;;  %9234 = vmatprep.subr.bf16.mxu0 %v9233_v26  ;;  %v9273_v5 = vpack.c.bf16 %v1662_v63, %v1661_v62  ;;  %v1668_v43 = vld [vmem:[%s10055_s25 + $0x25e8] sm:$0xff]  ;;  %v9251_v26 = vpack.c.bf16 %v1618_v30, %v1617_v29  ;;  %v1621_v62 = vld [vmem:[%s10055_s25 + $0x2470] sm:$0xff]  ;;  %v1622_v63 = vld [vmem:[%s10055_s25 + $0x2478] sm:$0xff] }
 0x286   : > { %9266 = vmatprep.subr.bf16.mxu1 %v9265_v44  ;;  %5103 = vmatprep.mubr.f32.mxu0 %v2336_v49  ;;  %v1620_v44 = vld [vmem:[%s10055_s25 + $0x2468] sm:$0xff]  ;;  %v9285_v37 = vpack.c.bf16 %v1668_v43, %v1667_v40  ;;  %v1674_v29 = vld [vmem:[%s10055_s25 + $0x2618] sm:$0xff]  ;;  %v1705_v30 = vld [vmem:[%s10055_s25 + $0x2710] sm:$0xff] }
 0x287   : > { %5173 = vmatprep.mubr.f32.mxu1 %v2337_v39  ;;  %v1652_v49 = vld [vmem:[%s10055_s25 + $0x2568] sm:$0xff]  ;;  %v9255_v60 = vpack.c.bf16 %v1620_v44, %v1619_v42  ;;  %v1723_v40 = vld [vmem:[%s10055_s25 + $0x27a0] sm:$0xff]  ;;  %v9301_v42 = vpack.c.bf16 %v1692_v23, %v1691_v20 }
 0x288   : > { %9236 = vmatpush3.bf16.msra.mxu0 %v9235_v34  ;;  %v9287_v46 = vpack.c.bf16 %v1652_v49, %v1651_v45  ;;  %v1724_v43 = vld [vmem:[%s10055_s25 + $0x27a8] sm:$0xff]  ;;  %v1675_v44 = vld [vmem:[%s10055_s25 + $0x2620] sm:$0xff]  ;;  %v1693_v49 = vld [vmem:[%s10055_s25 + $0x26b0] sm:$0xff] }
 0x289   : > { %9268 = vmatpush3.bf16.msra.mxu1 %v9267_v56  ;;  %9238 = vmatprep.subr.bf16.mxu0 %v9237_v57  ;;  %v1669_v56 = vld [vmem:[%s10055_s25 + $0x25f0] sm:$0xff]  ;;  %v1670_v57 = vld [vmem:[%s10055_s25 + $0x25f8] sm:$0xff]  ;;  %v1707_v45 = vld [vmem:[%s10055_s25 + $0x2720] sm:$0xff] }
 0x28a   : > { %9270 = vmatprep.subr.bf16.mxu1 %v9269_v48  ;;  %v450_v48 = vld [vmem:[%s10065_s21 + $0x98] sm:$0xff] }
 0x28b   : > { %v2338_v7 = vcombine.high %v450_v48, %v450_v48  ;;  %v11568_v16 = vrot.slane %v450_v48, %v10118_v14  ;;  %v1710_v48 = vld [vmem:[%s10055_s25 + $0x2738] sm:$0xff] }
 0x28c   : > { %9240 = vmatpush3.bf16.msra.mxu0 %v9239_v55  ;;  %v1653_v55 = vld [vmem:[%s10055_s25 + $0x2570] sm:$0xff] }
 0x28d   : > { %9272 = vmatpush3.bf16.msra.mxu1 %v9271_v1  ;;  %9242 = vmatprep.subr.bf16.mxu0 %v9241_v2  ;;  %v9289_v2 = vpack.c.bf16 %v1670_v57, %v1669_v56  ;;  %v9291_v13 = vpack.c.bf16 %v1654_v3, %v1653_v55  ;;  %v11573_v38 = vrot.slane %v2338_v7, %v10118_v14  ;;  %v1677_v57 = vld [vmem:[%s10055_s25 + $0x2630] sm:$0xff]  ;;  %v1680_v3 = vld [vmem:[%s10055_s25 + $0x2648] sm:$0xff]  ;;  %v1698_v7 = vld [vmem:[%s10055_s25 + $0x26d8] sm:$0xff] }
 0x28e   : > { %9274 = vmatprep.subr.bf16.mxu1 %v9273_v5  ;;  %v1719_v5 = vld [vmem:[%s10055_s25 + $0x2780] sm:$0xff]  ;;  %v2353_v36 = vcombine.high %v11568_v16, %v11568_v16  ;;  %v9305_v56 = vpack.c.bf16 %v1694_v54, %v1693_v49 }
 0x28f   : > { %v9325_v12 = vpack.c.bf16 %v1720_v58, %v1719_v5  ;;  %v1712_v5 = vld [vmem:[%s10055_s25 + $0x2748] sm:$0xff]  ;;  %v1697_v58 = vld [vmem:[%s10055_s25 + $0x26d0] sm:$0xff] }
 0x290   : > { %9244 = vmatpush3.bf16.msra.mxu0 %v9243_v11  ;;  %v1671_v11 = vld [vmem:[%s10055_s25 + $0x2600] sm:$0xff] }
 0x291   : > { %9276 = vmatpush3.bf16.msra.mxu1 %v9275_v15  ;;  %9246 = vmatprep.subr.bf16.mxu0 %v9245_v17  ;;  %v1672_v15 = vld [vmem:[%s10055_s25 + $0x2608] sm:$0xff]  ;;  %v1703_v17 = vld [vmem:[%s10055_s25 + $0x2700] sm:$0xff] }
 0x292   : > { %9278 = vmatprep.subr.bf16.mxu1 %v9277_v6  ;;  %v1690_v6 = vld [vmem:[%s10055_s25 + $0x2698] sm:$0xff]  ;;  %v9295_v27 = vpack.c.bf16 %v1672_v15, %v1671_v11  ;;  %v9343_v11 = vpack.c.bf16 %v1712_v5, %v1711_v4  ;;  %v9313_v15 = vpack.c.bf16 %v1698_v7, %v1697_v58  ;;  %v1753_v4 = vld [vmem:[%s10055_s25 + $0x2890] sm:$0xff] }
 0x293   : > { %v1785_v58 = vld [vmem:[%s10055_s25 + $0x2990] sm:$0xff]  ;;  %v1786_v7 = vld [vmem:[%s10055_s25 + $0x2998] sm:$0xff] }
 0x294   : > { %9248 = vmatpush3.bf16.msra.mxu0 %v9247_v25  ;;  %v9327_v25 = vpack.c.bf16 %v1704_v18, %v1703_v17  ;;  %v1681_v17 = vld [vmem:[%s10055_s25 + $0x2650] sm:$0xff] }
 0x295   : > { %9280 = vmatpush3.bf16.msra.mxu1 %v9279_v22  ;;  %9250 = vmatprep.subr.bf16.mxu0 %v9249_v28  ;;  %v9297_v22 = vpack.c.bf16 %v1690_v6, %v1689_v19  ;;  %v1673_v28 = vld [vmem:[%s10055_s25 + $0x2610] sm:$0xff]  ;;  %v1714_v6 = vld [vmem:[%s10055_s25 + $0x2758] sm:$0xff] }
 0x296   : > { %v7115_v35 = vpop.f32.mrb[22].mxu0  ;;  %9282 = vmatprep.subr.bf16.mxu1 %v9281_v32  ;;  %v1706_v32 = vld [vmem:[%s10055_s25 + $0x2718] sm:$0xff]  ;;  %v1713_v18 = vld [vmem:[%s10055_s25 + $0x2750] sm:$0xff] }
 0x297   : > { %v7116_v39 = vpop.f32.mrb[23].mxu0  ;;  %v7150_v34 = vpop.f32.mrb[22].mxu1 }
 0x298   : > { %v7117_v59 = vadd.f32 %v7116_v39, %v7115_v35  ;;  %9252 = vmatpush3.bf16.msra.mxu0 %v9251_v26  ;;  %v7151_v47 = vpop.f32.mrb[23].mxu1  ;;  %v2354_v26 = vcombine.high %v11573_v38, %v11573_v38  ;;  %v9333_v35 = vpack.c.bf16 %v1724_v43, %v1723_v40  ;;  %v1701_v40 = vld [vmem:[%s10055_s25 + $0x26f0] sm:$0xff]  ;;  %v1702_v43 = vld [vmem:[%s10055_s25 + $0x26f8] sm:$0xff] }
 0x299   : > { %v7152_v52 = vadd.f32 %v7151_v47, %v7150_v34  ;;  %9284 = vmatpush3.bf16.msra.mxu1 %v9283_v53  ;;  %9254 = vmatprep.subr.bf16.mxu0 %v9253_v41  ;;  %v9299_v53 = vpack.c.bf16 %v1674_v29, %v1673_v28  ;;  %v9331_v41 = vpack.c.bf16 %v1706_v32, %v1705_v30  ;;  %v1709_v47 = vld [vmem:[%s10055_s25 + $0x2730] sm:$0xff]  ;;  %v1683_v30 = vld [vmem:[%s10055_s25 + $0x2660] sm:$0xff] }
 0x29a   : > { %v4126_v1 = vadd.f32 %v7117_v59, %v11479_v24  ;;  %9286 = vmatprep.subr.bf16.mxu1 %v9285_v37  ;;  %v9259_v24 = vpack.c.bf16 %v1622_v63, %v1621_v62  ;;  %v1708_v37 = vld [vmem:[%s10055_s25 + $0x2728] sm:$0xff]  ;;  %v1678_v59 = vld [vmem:[%s10055_s25 + $0x2638] sm:$0xff]  ;;  %v9339_v55 = vpack.c.bf16 %v1710_v48, %v1709_v47  ;;  %v9347_v28 = vpack.c.bf16 %v1714_v6, %v1713_v18  ;;  %v1715_v32 = vld [vmem:[%s10055_s25 + $0x2760] sm:$0xff] }
 0x29b   : > { %v9335_v34 = vpack.c.bf16 %v1708_v37, %v1707_v45  ;;  %v1728_v62 = vld [vmem:[%s10055_s25 + $0x27c8] sm:$0xff]  ;;  %v9307_v63 = vpack.c.bf16 %v1678_v59, %v1677_v57  ;;  %v9317_v29 = vpack.c.bf16 %v1700_v21, %v1699_v8  ;;  %v9321_v54 = vpack.c.bf16 %v1702_v43, %v1701_v40  ;;  %v1718_v57 = vld [vmem:[%s10055_s25 + $0x2778] sm:$0xff]  ;;  %v1751_v59 = vld [vmem:[%s10055_s25 + $0x2880] sm:$0xff] }
 0x29c   : > { %v11559_v9 = vadd.f32 %v7152_v52, %v4126_v1  ;;  %9256 = vmatpush3.bf16.msra.mxu0 %v9255_v60  ;;  %v1695_v52 = vld [vmem:[%s10055_s25 + $0x26c0] sm:$0xff]  ;;  %v1752_v47 = vld [vmem:[%s10055_s25 + $0x2888] sm:$0xff]  ;;  %v9393_v18 = vpack.c.bf16 %v1786_v7, %v1785_v58  ;;  %v1758_v40 = vld [vmem:[%s10055_s25 + $0x28b8] sm:$0xff] }
 0x29d   : > { %9288 = vmatpush3.bf16.msra.mxu1 %v9287_v46  ;;  %9258 = vmatprep.subr.bf16.mxu0 %v9257_v0  ;;  %v1696_v46 = vld [vmem:[%s10055_s25 + $0x26c8] sm:$0xff]  ;;  %v1727_v0 = vld [vmem:[%s10055_s25 + $0x27c0] sm:$0xff]  ;;  %v1790_v43 = vld [vmem:[%s10055_s25 + $0x29b8] sm:$0xff] }
 0x29e   : > { %9290 = vmatprep.subr.bf16.mxu1 %v9289_v2  ;;  %v9309_v1 = vpack.c.bf16 %v1696_v46, %v1695_v52  ;;  %v1679_v2 = vld [vmem:[%s10055_s25 + $0x2640] sm:$0xff]  ;;  %v9341_v61 = vpack.c.bf16 %v1728_v62, %v1727_v0  ;;  %v1784_v48 = vld [vmem:[%s10055_s25 + $0x2988] sm:$0xff]  ;;  %v9357_v62 = vpack.c.bf16 %v1752_v47, %v1751_v59 }
 0x29f   : > { %v1755_v6 = vld [vmem:[%s10055_s25 + $0x28a0] sm:$0xff]  ;;  %v1756_v8 = vld [vmem:[%s10055_s25 + $0x28a8] sm:$0xff] }
 0x2a0   : > { %9260 = vmatpush3.bf16.msra.mxu0 %v9259_v24  ;;  %v1729_v24 = vld [vmem:[%s10055_s25 + $0x27d0] sm:$0xff]  ;;  %v1775_v59 = vld [vmem:[%s10055_s25 + $0x2940] sm:$0xff]  ;;  %v1764_v7 = vld [vmem:[%s10055_s25 + $0x28e8] sm:$0xff] }
 0x2a1   : > { %9292 = vmatpush3.bf16.msra.mxu1 %v9291_v13  ;;  %9294 = vmatprep.subr.bf16.mxu0 %v9293_v10  ;;  %v1730_v13 = vld [vmem:[%s10055_s25 + $0x27d8] sm:$0xff]  ;;  %v9311_v10 = vpack.c.bf16 %v1680_v3, %v1679_v2  ;;  %v1768_v3 = vld [vmem:[%s10055_s25 + $0x2908] sm:$0xff]  ;;  %v1763_v58 = vld [vmem:[%s10055_s25 + $0x28e0] sm:$0xff] }
 0x2a2   : > { %9326 = vmatprep.subr.bf16.mxu1 %v9325_v12  ;;  %v1682_v12 = vld [vmem:[%s10055_s25 + $0x2658] sm:$0xff]  ;;  %v9345_v19 = vpack.c.bf16 %v1730_v13, %v1729_v24 }
 0x2a3   : > { %5104 = vmatmul.mubr.f32.vlgmr.msra.gmra.mrb[36].mxu0 %v11488_v33  ;;  %v1676_v33 = vld [vmem:[%s10055_s25 + $0x2628] sm:$0xff] }
 0x2a4   : > { %9296 = vmatpush3.bf16.msra.mxu0 %v9295_v27  ;;  %5174 = vmatmul.mubr.f32.vlgmr.msra.gmra.mrb[36].mxu1 %v11493_v50  ;;  %v1725_v50 = vld [vmem:[%s10055_s25 + $0x27b0] sm:$0xff]  ;;  %v9303_v39 = vpack.c.bf16 %v1676_v33, %v1675_v44  ;;  %v1731_v27 = vld [vmem:[%s10055_s25 + $0x27e0] sm:$0xff] }
 0x2a5   : > { %9328 = vmatpush3.bf16.msra.mxu1 %v9327_v25  ;;  %9298 = vmatprep.subr.bf16.mxu0 %v9297_v22  ;;  %v9337_v60 = vpack.c.bf16 %v1726_v51, %v1725_v50  ;;  %v1732_v25 = vld [vmem:[%s10055_s25 + $0x27e8] sm:$0xff]  ;;  %v9315_v22 = vpack.c.bf16 %v1682_v12, %v1681_v17  ;;  %v1685_v50 = vld [vmem:[%s10055_s25 + $0x2670] sm:$0xff]  ;;  %v1686_v51 = vld [vmem:[%s10055_s25 + $0x2678] sm:$0xff] }
 0x2a6   : > { %9330 = vmatprep.subr.bf16.mxu1 %v9329_v31  ;;  %5243 = vmatprep.mubr.f32.mxu0 %v2353_v36  ;;  %v1684_v31 = vld [vmem:[%s10055_s25 + $0x2668] sm:$0xff]  ;;  %v9349_v23 = vpack.c.bf16 %v1732_v25, %v1731_v27  ;;  %v1738_v17 = vld [vmem:[%s10055_s25 + $0x2818] sm:$0xff]  ;;  %v1769_v12 = vld [vmem:[%s10055_s25 + $0x2910] sm:$0xff] }
 0x2a7   : > { %5313 = vmatprep.mubr.f32.mxu1 %v2354_v26  ;;  %v1716_v36 = vld [vmem:[%s10055_s25 + $0x2768] sm:$0xff]  ;;  %v9319_v45 = vpack.c.bf16 %v1684_v31, %v1683_v30  ;;  %v1787_v27 = vld [vmem:[%s10055_s25 + $0x29a0] sm:$0xff]  ;;  %v9365_v30 = vpack.c.bf16 %v1756_v8, %v1755_v6 }
 0x2a8   : > { %9300 = vmatpush3.bf16.msra.mxu0 %v9299_v53  ;;  %v9351_v49 = vpack.c.bf16 %v1716_v36, %v1715_v32  ;;  %v1788_v25 = vld [vmem:[%s10055_s25 + $0x29a8] sm:$0xff]  ;;  %v1739_v31 = vld [vmem:[%s10055_s25 + $0x2820] sm:$0xff]  ;;  %v1757_v36 = vld [vmem:[%s10055_s25 + $0x28b0] sm:$0xff] }
 0x2a9   : > { %9332 = vmatpush3.bf16.msra.mxu1 %v9331_v41  ;;  %9302 = vmatprep.subr.bf16.mxu0 %v9301_v42  ;;  %v1733_v41 = vld [vmem:[%s10055_s25 + $0x27f0] sm:$0xff]  ;;  %v1734_v42 = vld [vmem:[%s10055_s25 + $0x27f8] sm:$0xff]  ;;  %v1771_v32 = vld [vmem:[%s10055_s25 + $0x2920] sm:$0xff] }
 0x2aa   : > { %9334 = vmatprep.subr.bf16.mxu1 %v9333_v35  ;;  %v451_v35 = vld [vmem:[%s10065_s21 + $0xa0] sm:$0xff] }
 0x2ab   : > { %v2355_v52 = vcombine.high %v451_v35, %v451_v35  ;;  %v11648_v5 = vrot.slane %v451_v35, %v10118_v14  ;;  %v1774_v35 = vld [vmem:[%s10055_s25 + $0x2938] sm:$0xff] }
 0x2ac   : > { %9304 = vmatpush3.bf16.msra.mxu0 %v9303_v39  ;;  %v1717_v39 = vld [vmem:[%s10055_s25 + $0x2770] sm:$0xff] }
 0x2ad   : > { %9336 = vmatpush3.bf16.msra.mxu1 %v9335_v34  ;;  %9306 = vmatprep.subr.bf16.mxu0 %v9305_v56  ;;  %v9353_v56 = vpack.c.bf16 %v1734_v42, %v1733_v41  ;;  %v9355_v0 = vpack.c.bf16 %v1718_v57, %v1717_v39  ;;  %v11653_v24 = vrot.slane %v2355_v52, %v10118_v14  ;;  %v1741_v42 = vld [vmem:[%s10055_s25 + $0x2830] sm:$0xff]  ;;  %v1744_v57 = vld [vmem:[%s10055_s25 + $0x2848] sm:$0xff]  ;;  %v1762_v52 = vld [vmem:[%s10055_s25 + $0x28d8] sm:$0xff] }
 0x2ae   : > { %9338 = vmatprep.subr.bf16.mxu1 %v9337_v60  ;;  %v1783_v60 = vld [vmem:[%s10055_s25 + $0x2980] sm:$0xff]  ;;  %v2370_v21 = vcombine.high %v11648_v5, %v11648_v5  ;;  %v9369_v41 = vpack.c.bf16 %v1758_v40, %v1757_v36 }
 0x2af   : > { %v9389_v2 = vpack.c.bf16 %v1784_v48, %v1783_v60  ;;  %v1776_v60 = vld [vmem:[%s10055_s25 + $0x2948] sm:$0xff]  ;;  %v1761_v48 = vld [vmem:[%s10055_s25 + $0x28d0] sm:$0xff] }
 0x2b0   : > { %9308 = vmatpush3.bf16.msra.mxu0 %v9307_v63  ;;  %v1735_v63 = vld [vmem:[%s10055_s25 + $0x2800] sm:$0xff] }
 0x2b1   : > { %9340 = vmatpush3.bf16.msra.mxu1 %v9339_v55  ;;  %9310 = vmatprep.subr.bf16.mxu0 %v9309_v1  ;;  %v1736_v55 = vld [vmem:[%s10055_s25 + $0x2808] sm:$0xff]  ;;  %v1767_v1 = vld [vmem:[%s10055_s25 + $0x2900] sm:$0xff] }
 0x2b2   : > { %9342 = vmatprep.subr.bf16.mxu1 %v9341_v61  ;;  %v1754_v61 = vld [vmem:[%s10055_s25 + $0x2898] sm:$0xff]  ;;  %v9359_v13 = vpack.c.bf16 %v1736_v55, %v1735_v63  ;;  %v9407_v63 = vpack.c.bf16 %v1776_v60, %v1775_v59  ;;  %v9377_v55 = vpack.c.bf16 %v1762_v52, %v1761_v48  ;;  %v1817_v59 = vld [vmem:[%s10055_s25 + $0x2a90] sm:$0xff] }
 0x2b3   : > { %v1849_v48 = vld [vmem:[%s10055_s25 + $0x2b90] sm:$0xff]  ;;  %v1850_v52 = vld [vmem:[%s10055_s25 + $0x2b98] sm:$0xff] }
 0x2b4   : > { %9312 = vmatpush3.bf16.msra.mxu0 %v9311_v10  ;;  %v9391_v10 = vpack.c.bf16 %v1768_v3, %v1767_v1  ;;  %v1745_v1 = vld [vmem:[%s10055_s25 + $0x2850] sm:$0xff] }
 0x2b5   : > { %9344 = vmatpush3.bf16.msra.mxu1 %v9343_v11  ;;  %9314 = vmatprep.subr.bf16.mxu0 %v9313_v15  ;;  %v9361_v11 = vpack.c.bf16 %v1754_v61, %v1753_v4  ;;  %v1737_v15 = vld [vmem:[%s10055_s25 + $0x2810] sm:$0xff]  ;;  %v1778_v61 = vld [vmem:[%s10055_s25 + $0x2958] sm:$0xff] }
 0x2b6   : > { %v7185_v20 = vpop.f32.mrb[24].mxu0  ;;  %9346 = vmatprep.subr.bf16.mxu1 %v9345_v19  ;;  %v1770_v19 = vld [vmem:[%s10055_s25 + $0x2918] sm:$0xff]  ;;  %v1777_v3 = vld [vmem:[%s10055_s25 + $0x2950] sm:$0xff] }
 0x2b7   : > { %v7186_v26 = vpop.f32.mrb[25].mxu0  ;;  %v7220_v53 = vpop.f32.mrb[24].mxu1 }
 0x2b8   : > { %v7187_v44 = vadd.f32 %v7186_v26, %v7185_v20  ;;  %9316 = vmatpush3.bf16.msra.mxu0 %v9315_v22  ;;  %v7221_v33 = vpop.f32.mrb[25].mxu1  ;;  %v2371_v22 = vcombine.high %v11653_v24, %v11653_v24  ;;  %v9397_v20 = vpack.c.bf16 %v1788_v25, %v1787_v27  ;;  %v1765_v27 = vld [vmem:[%s10055_s25 + $0x28f0] sm:$0xff]  ;;  %v1766_v25 = vld [vmem:[%s10055_s25 + $0x28f8] sm:$0xff] }
 0x2b9   : > { %v7222_v37 = vadd.f32 %v7221_v33, %v7220_v53  ;;  %9348 = vmatpush3.bf16.msra.mxu1 %v9347_v28  ;;  %9318 = vmatprep.subr.bf16.mxu0 %v9317_v29  ;;  %v9363_v28 = vpack.c.bf16 %v1738_v17, %v1737_v15  ;;  %v9395_v29 = vpack.c.bf16 %v1770_v19, %v1769_v12  ;;  %v1773_v33 = vld [vmem:[%s10055_s25 + $0x2930] sm:$0xff]  ;;  %v1747_v12 = vld [vmem:[%s10055_s25 + $0x2860] sm:$0xff] }
 0x2ba   : > { %v4266_v34 = vadd.f32 %v7187_v44, %v11559_v9  ;;  %9350 = vmatprep.subr.bf16.mxu1 %v9349_v23  ;;  %v9323_v9 = vpack.c.bf16 %v1686_v51, %v1685_v50  ;;  %v1772_v23 = vld [vmem:[%s10055_s25 + $0x2928] sm:$0xff]  ;;  %v1742_v44 = vld [vmem:[%s10055_s25 + $0x2838] sm:$0xff]  ;;  %v9403_v39 = vpack.c.bf16 %v1774_v35, %v1773_v33  ;;  %v9411_v15 = vpack.c.bf16 %v1778_v61, %v1777_v3  ;;  %v1779_v19 = vld [vmem:[%s10055_s25 + $0x2960] sm:$0xff] }
 0x2bb   : > { %v9399_v53 = vpack.c.bf16 %v1772_v23, %v1771_v32  ;;  %v1792_v50 = vld [vmem:[%s10055_s25 + $0x29c8] sm:$0xff]  ;;  %v9371_v51 = vpack.c.bf16 %v1742_v44, %v1741_v42  ;;  %v9381_v17 = vpack.c.bf16 %v1764_v7, %v1763_v58  ;;  %v9385_v40 = vpack.c.bf16 %v1766_v25, %v1765_v27  ;;  %v1782_v42 = vld [vmem:[%s10055_s25 + $0x2978] sm:$0xff]  ;;  %v1815_v44 = vld [vmem:[%s10055_s25 + $0x2a80] sm:$0xff] }
 0x2bc   : > { %v11639_v46 = vadd.f32 %v7222_v37, %v4266_v34  ;;  %9320 = vmatpush3.bf16.msra.mxu0 %v9319_v45  ;;  %v1759_v37 = vld [vmem:[%s10055_s25 + $0x28c0] sm:$0xff]  ;;  %v1816_v33 = vld [vmem:[%s10055_s25 + $0x2a88] sm:$0xff]  ;;  %v9457_v3 = vpack.c.bf16 %v1850_v52, %v1849_v48  ;;  %v1822_v27 = vld [vmem:[%s10055_s25 + $0x2ab8] sm:$0xff] }
 0x2bd   : > { %9352 = vmatpush3.bf16.msra.mxu1 %v9351_v49  ;;  %9322 = vmatprep.subr.bf16.mxu0 %v9321_v54  ;;  %v1760_v49 = vld [vmem:[%s10055_s25 + $0x28c8] sm:$0xff]  ;;  %v1791_v54 = vld [vmem:[%s10055_s25 + $0x29c0] sm:$0xff]  ;;  %v1854_v25 = vld [vmem:[%s10055_s25 + $0x2bb8] sm:$0xff] }
 0x2be   : > { %9354 = vmatprep.subr.bf16.mxu1 %v9353_v56  ;;  %v9373_v34 = vpack.c.bf16 %v1760_v49, %v1759_v37  ;;  %v1743_v56 = vld [vmem:[%s10055_s25 + $0x2840] sm:$0xff]  ;;  %v9405_v47 = vpack.c.bf16 %v1792_v50, %v1791_v54  ;;  %v1848_v35 = vld [vmem:[%s10055_s25 + $0x2b88] sm:$0xff]  ;;  %v9421_v50 = vpack.c.bf16 %v1816_v33, %v1815_v44 }
 0x2bf   : > { %v1819_v61 = vld [vmem:[%s10055_s25 + $0x2aa0] sm:$0xff]  ;;  %v1820_v58 = vld [vmem:[%s10055_s25 + $0x2aa8] sm:$0xff] }
 0x2c0   : > { %9324 = vmatpush3.bf16.msra.mxu0 %v9323_v9  ;;  %v1793_v9 = vld [vmem:[%s10055_s25 + $0x29d0] sm:$0xff]  ;;  %v1839_v44 = vld [vmem:[%s10055_s25 + $0x2b40] sm:$0xff]  ;;  %v1828_v52 = vld [vmem:[%s10055_s25 + $0x2ae8] sm:$0xff] }
 0x2c1   : > { %9356 = vmatpush3.bf16.msra.mxu1 %v9355_v0  ;;  %9358 = vmatprep.subr.bf16.mxu0 %v9357_v62  ;;  %v1794_v0 = vld [vmem:[%s10055_s25 + $0x29d8] sm:$0xff]  ;;  %v9375_v62 = vpack.c.bf16 %v1744_v57, %v1743_v56  ;;  %v1832_v57 = vld [vmem:[%s10055_s25 + $0x2b08] sm:$0xff]  ;;  %v1827_v48 = vld [vmem:[%s10055_s25 + $0x2ae0] sm:$0xff] }
 0x2c2   : > { %9390 = vmatprep.subr.bf16.mxu1 %v9389_v2  ;;  %v1746_v2 = vld [vmem:[%s10055_s25 + $0x2858] sm:$0xff]  ;;  %v9409_v4 = vpack.c.bf16 %v1794_v0, %v1793_v9 }
 0x2c3   : > { %5244 = vmatmul.mubr.f32.vlgmr.msra.gmra.mrb[38].mxu0 %v11568_v16  ;;  %v1740_v16 = vld [vmem:[%s10055_s25 + $0x2828] sm:$0xff] }
 0x2c4   : > { %9360 = vmatpush3.bf16.msra.mxu0 %v9359_v13  ;;  %5314 = vmatmul.mubr.f32.vlgmr.msra.gmra.mrb[38].mxu1 %v11573_v38  ;;  %v1789_v38 = vld [vmem:[%s10055_s25 + $0x29b0] sm:$0xff]  ;;  %v9367_v26 = vpack.c.bf16 %v1740_v16, %v1739_v31  ;;  %v1795_v13 = vld [vmem:[%s10055_s25 + $0x29e0] sm:$0xff] }
 0x2c5   : > { %9392 = vmatpush3.bf16.msra.mxu1 %v9391_v10  ;;  %9362 = vmatprep.subr.bf16.mxu0 %v9361_v11  ;;  %v9401_v45 = vpack.c.bf16 %v1790_v43, %v1789_v38  ;;  %v1796_v10 = vld [vmem:[%s10055_s25 + $0x29e8] sm:$0xff]  ;;  %v9379_v11 = vpack.c.bf16 %v1746_v2, %v1745_v1  ;;  %v1749_v38 = vld [vmem:[%s10055_s25 + $0x2870] sm:$0xff]  ;;  %v1750_v43 = vld [vmem:[%s10055_s25 + $0x2878] sm:$0xff] }
 0x2c6   : > { %9394 = vmatprep.subr.bf16.mxu1 %v9393_v18  ;;  %5383 = vmatprep.mubr.f32.mxu0 %v2370_v21  ;;  %v1748_v18 = vld [vmem:[%s10055_s25 + $0x2868] sm:$0xff]  ;;  %v9413_v8 = vpack.c.bf16 %v1796_v10, %v1795_v13  ;;  %v1802_v1 = vld [vmem:[%s10055_s25 + $0x2a18] sm:$0xff]  ;;  %v1833_v2 = vld [vmem:[%s10055_s25 + $0x2b10] sm:$0xff] }
 0x2c7   : > { %5453 = vmatprep.mubr.f32.mxu1 %v2371_v22  ;;  %v1780_v21 = vld [vmem:[%s10055_s25 + $0x2968] sm:$0xff]  ;;  %v9383_v32 = vpack.c.bf16 %v1748_v18, %v1747_v12  ;;  %v1851_v13 = vld [vmem:[%s10055_s25 + $0x2ba0] sm:$0xff]  ;;  %v9429_v12 = vpack.c.bf16 %v1820_v58, %v1819_v61 }
 0x2c8   : > { %9364 = vmatpush3.bf16.msra.mxu0 %v9363_v28  ;;  %v9415_v36 = vpack.c.bf16 %v1780_v21, %v1779_v19  ;;  %v1852_v10 = vld [vmem:[%s10055_s25 + $0x2ba8] sm:$0xff]  ;;  %v1803_v18 = vld [vmem:[%s10055_s25 + $0x2a20] sm:$0xff]  ;;  %v1821_v21 = vld [vmem:[%s10055_s25 + $0x2ab0] sm:$0xff] }
 0x2c9   : > { %9396 = vmatpush3.bf16.msra.mxu1 %v9395_v29  ;;  %9366 = vmatprep.subr.bf16.mxu0 %v9365_v30  ;;  %v1797_v29 = vld [vmem:[%s10055_s25 + $0x29f0] sm:$0xff]  ;;  %v1798_v30 = vld [vmem:[%s10055_s25 + $0x29f8] sm:$0xff]  ;;  %v1835_v19 = vld [vmem:[%s10055_s25 + $0x2b20] sm:$0xff] }
 0x2ca   : > { %9398 = vmatprep.subr.bf16.mxu1 %v9397_v20  ;;  %v452_v20 = vld [vmem:[%s10065_s21 + $0xa8] sm:$0xff] }
 0x2cb   : > { %v2372_v37 = vcombine.high %v452_v20, %v452_v20  ;;  %v11728_v60 = vrot.slane %v452_v20, %v10118_v14  ;;  %v1838_v20 = vld [vmem:[%s10055_s25 + $0x2b38] sm:$0xff] }
 0x2cc   : > { %9368 = vmatpush3.bf16.msra.mxu0 %v9367_v26  ;;  %v1781_v26 = vld [vmem:[%s10055_s25 + $0x2970] sm:$0xff] }
 0x2cd   : > { %9400 = vmatpush3.bf16.msra.mxu1 %v9399_v53  ;;  %9370 = vmatprep.subr.bf16.mxu0 %v9369_v41  ;;  %v9417_v41 = vpack.c.bf16 %v1798_v30, %v1797_v29  ;;  %v9419_v54 = vpack.c.bf16 %v1782_v42, %v1781_v26  ;;  %v11733_v9 = vrot.slane %v2372_v37, %v10118_v14  ;;  %v1805_v30 = vld [vmem:[%s10055_s25 + $0x2a30] sm:$0xff]  ;;  %v1808_v42 = vld [vmem:[%s10055_s25 + $0x2a48] sm:$0xff]  ;;  %v1826_v37 = vld [vmem:[%s10055_s25 + $0x2ad8] sm:$0xff] }
 0x2ce   : > { %9402 = vmatprep.subr.bf16.mxu1 %v9401_v45  ;;  %v1847_v45 = vld [vmem:[%s10055_s25 + $0x2b80] sm:$0xff]  ;;  %v2387_v7 = vcombine.high %v11728_v60, %v11728_v60  ;;  %v9433_v29 = vpack.c.bf16 %v1822_v27, %v1821_v21 }
 0x2cf   : > { %v9453_v56 = vpack.c.bf16 %v1848_v35, %v1847_v45  ;;  %v1840_v45 = vld [vmem:[%s10055_s25 + $0x2b48] sm:$0xff]  ;;  %v1825_v35 = vld [vmem:[%s10055_s25 + $0x2ad0] sm:$0xff] }
 0x2d0   : > { %9372 = vmatpush3.bf16.msra.mxu0 %v9371_v51  ;;  %v1799_v51 = vld [vmem:[%s10055_s25 + $0x2a00] sm:$0xff] }
 0x2d1   : > { %9404 = vmatpush3.bf16.msra.mxu1 %v9403_v39  ;;  %9374 = vmatprep.subr.bf16.mxu0 %v9373_v34  ;;  %v1800_v39 = vld [vmem:[%s10055_s25 + $0x2a08] sm:$0xff]  ;;  %v1831_v34 = vld [vmem:[%s10055_s25 + $0x2b00] sm:$0xff] }
 0x2d2   : > { %9406 = vmatprep.subr.bf16.mxu1 %v9405_v47  ;;  %v1818_v47 = vld [vmem:[%s10055_s25 + $0x2a98] sm:$0xff]  ;;  %v9423_v0 = vpack.c.bf16 %v1800_v39, %v1799_v51  ;;  %v9471_v51 = vpack.c.bf16 %v1840_v45, %v1839_v44  ;;  %v9441_v39 = vpack.c.bf16 %v1826_v37, %v1825_v35  ;;  %v1881_v44 = vld [vmem:[%s10055_s25 + $0x2c90] sm:$0xff] }
 0x2d3   : > { %v1913_v35 = vld [vmem:[%s10055_s25 + $0x2d90] sm:$0xff]  ;;  %v1914_v37 = vld [vmem:[%s10055_s25 + $0x2d98] sm:$0xff] }
 0x2d4   : > { %9376 = vmatpush3.bf16.msra.mxu0 %v9375_v62  ;;  %v9455_v62 = vpack.c.bf16 %v1832_v57, %v1831_v34  ;;  %v1809_v34 = vld [vmem:[%s10055_s25 + $0x2a50] sm:$0xff] }
 0x2d5   : > { %9408 = vmatpush3.bf16.msra.mxu1 %v9407_v63  ;;  %9378 = vmatprep.subr.bf16.mxu0 %v9377_v55  ;;  %v9425_v63 = vpack.c.bf16 %v1818_v47, %v1817_v59  ;;  %v1801_v55 = vld [vmem:[%s10055_s25 + $0x2a10] sm:$0xff]  ;;  %v1842_v47 = vld [vmem:[%s10055_s25 + $0x2b58] sm:$0xff] }
 0x2d6   : > { %v7255_v6 = vpop.f32.mrb[26].mxu0  ;;  %9410 = vmatprep.subr.bf16.mxu1 %v9409_v4  ;;  %v1834_v4 = vld [vmem:[%s10055_s25 + $0x2b18] sm:$0xff]  ;;  %v1841_v57 = vld [vmem:[%s10055_s25 + $0x2b50] sm:$0xff] }
 0x2d7   : > { %v7256_v22 = vpop.f32.mrb[27].mxu0  ;;  %v7290_v28 = vpop.f32.mrb[26].mxu1 }
 0x2d8   : > { %v7257_v31 = vadd.f32 %v7256_v22, %v7255_v6  ;;  %9380 = vmatpush3.bf16.msra.mxu0 %v9379_v11  ;;  %v7291_v16 = vpop.f32.mrb[27].mxu1  ;;  %v2388_v11 = vcombine.high %v11733_v9, %v11733_v9  ;;  %v9461_v6 = vpack.c.bf16 %v1852_v10, %v1851_v13  ;;  %v1829_v13 = vld [vmem:[%s10055_s25 + $0x2af0] sm:$0xff]  ;;  %v1830_v10 = vld [vmem:[%s10055_s25 + $0x2af8] sm:$0xff] }
 0x2d9   : > { %v7292_v23 = vadd.f32 %v7291_v16, %v7290_v28  ;;  %9412 = vmatpush3.bf16.msra.mxu1 %v9411_v15  ;;  %9382 = vmatprep.subr.bf16.mxu0 %v9381_v17  ;;  %v9427_v15 = vpack.c.bf16 %v1802_v1, %v1801_v55  ;;  %v9459_v17 = vpack.c.bf16 %v1834_v4, %v1833_v2  ;;  %v1837_v16 = vld [vmem:[%s10055_s25 + $0x2b30] sm:$0xff]  ;;  %v1811_v2 = vld [vmem:[%s10055_s25 + $0x2a60] sm:$0xff] }
 0x2da   : > { %v4406_v53 = vadd.f32 %v7257_v31, %v11639_v46  ;;  %9414 = vmatprep.subr.bf16.mxu1 %v9413_v8  ;;  %v9387_v46 = vpack.c.bf16 %v1750_v43, %v1749_v38  ;;  %v1836_v8 = vld [vmem:[%s10055_s25 + $0x2b28] sm:$0xff]  ;;  %v1806_v31 = vld [vmem:[%s10055_s25 + $0x2a38] sm:$0xff]  ;;  %v9467_v26 = vpack.c.bf16 %v1838_v20, %v1837_v16  ;;  %v9475_v55 = vpack.c.bf16 %v1842_v47, %v1841_v57  ;;  %v1843_v4 = vld [vmem:[%s10055_s25 + $0x2b60] sm:$0xff] }
 0x2db   : > { %v9463_v28 = vpack.c.bf16 %v1836_v8, %v1835_v19  ;;  %v1856_v38 = vld [vmem:[%s10055_s25 + $0x2bc8] sm:$0xff]  ;;  %v9435_v43 = vpack.c.bf16 %v1806_v31, %v1805_v30  ;;  %v9445_v1 = vpack.c.bf16 %v1828_v52, %v1827_v48  ;;  %v9449_v27 = vpack.c.bf16 %v1830_v10, %v1829_v13  ;;  %v1846_v30 = vld [vmem:[%s10055_s25 + $0x2b78] sm:$0xff]  ;;  %v1879_v31 = vld [vmem:[%s10055_s25 + $0x2c80] sm:$0xff] }
 0x2dc   : > { %v11719_v49 = vadd.f32 %v7292_v23, %v4406_v53  ;;  %9384 = vmatpush3.bf16.msra.mxu0 %v9383_v32  ;;  %v1823_v23 = vld [vmem:[%s10055_s25 + $0x2ac0] sm:$0xff]  ;;  %v1880_v16 = vld [vmem:[%s10055_s25 + $0x2c88] sm:$0xff]  ;;  %v9521_v57 = vpack.c.bf16 %v1914_v37, %v1913_v35  ;;  %v1886_v13 = vld [vmem:[%s10055_s25 + $0x2cb8] sm:$0xff] }
 0x2dd   : > { %9416 = vmatpush3.bf16.msra.mxu1 %v9415_v36  ;;  %9386 = vmatprep.subr.bf16.mxu0 %v9385_v40  ;;  %v1824_v36 = vld [vmem:[%s10055_s25 + $0x2ac8] sm:$0xff]  ;;  %v1855_v40 = vld [vmem:[%s10055_s25 + $0x2bc0] sm:$0xff]  ;;  %v1918_v10 = vld [vmem:[%s10055_s25 + $0x2db8] sm:$0xff] }
 0x2de   : > { %9418 = vmatprep.subr.bf16.mxu1 %v9417_v41  ;;  %v9437_v53 = vpack.c.bf16 %v1824_v36, %v1823_v23  ;;  %v1807_v41 = vld [vmem:[%s10055_s25 + $0x2a40] sm:$0xff]  ;;  %v9469_v33 = vpack.c.bf16 %v1856_v38, %v1855_v40  ;;  %v1912_v20 = vld [vmem:[%s10055_s25 + $0x2d88] sm:$0xff]  ;;  %v9485_v38 = vpack.c.bf16 %v1880_v16, %v1879_v31 }
 0x2df   : > { %v1883_v47 = vld [vmem:[%s10055_s25 + $0x2ca0] sm:$0xff]  ;;  %v1884_v48 = vld [vmem:[%s10055_s25 + $0x2ca8] sm:$0xff] }
 0x2e0   : > { %9388 = vmatpush3.bf16.msra.mxu0 %v9387_v46  ;;  %v1857_v46 = vld [vmem:[%s10055_s25 + $0x2bd0] sm:$0xff]  ;;  %v1903_v31 = vld [vmem:[%s10055_s25 + $0x2d40] sm:$0xff]  ;;  %v1892_v37 = vld [vmem:[%s10055_s25 + $0x2ce8] sm:$0xff] }
 0x2e1   : > { %9420 = vmatpush3.bf16.msra.mxu1 %v9419_v54  ;;  %9422 = vmatprep.subr.bf16.mxu0 %v9421_v50  ;;  %v1858_v54 = vld [vmem:[%s10055_s25 + $0x2bd8] sm:$0xff]  ;;  %v9439_v50 = vpack.c.bf16 %v1808_v42, %v1807_v41  ;;  %v1896_v42 = vld [vmem:[%s10055_s25 + $0x2d08] sm:$0xff]  ;;  %v1891_v35 = vld [vmem:[%s10055_s25 + $0x2ce0] sm:$0xff] }
 0x2e2   : > { %9454 = vmatprep.subr.bf16.mxu1 %v9453_v56  ;;  %v1810_v56 = vld [vmem:[%s10055_s25 + $0x2a58] sm:$0xff]  ;;  %v9473_v59 = vpack.c.bf16 %v1858_v54, %v1857_v46 }
 0x2e3   : > { %5384 = vmatmul.mubr.f32.vlgmr.msra.gmra.mrb[40].mxu0 %v11648_v5  ;;  %v1804_v5 = vld [vmem:[%s10055_s25 + $0x2a28] sm:$0xff] }
 0x2e4   : > { %9424 = vmatpush3.bf16.msra.mxu0 %v9423_v0  ;;  %5454 = vmatmul.mubr.f32.vlgmr.msra.gmra.mrb[40].mxu1 %v11653_v24  ;;  %v1853_v24 = vld [vmem:[%s10055_s25 + $0x2bb0] sm:$0xff]  ;;  %v9431_v22 = vpack.c.bf16 %v1804_v5, %v1803_v18  ;;  %v1859_v0 = vld [vmem:[%s10055_s25 + $0x2be0] sm:$0xff] }
 0x2e5   : > { %9456 = vmatpush3.bf16.msra.mxu1 %v9455_v62  ;;  %9426 = vmatprep.subr.bf16.mxu0 %v9425_v63  ;;  %v9465_v32 = vpack.c.bf16 %v1854_v25, %v1853_v24  ;;  %v1860_v62 = vld [vmem:[%s10055_s25 + $0x2be8] sm:$0xff]  ;;  %v9443_v63 = vpack.c.bf16 %v1810_v56, %v1809_v34  ;;  %v1813_v24 = vld [vmem:[%s10055_s25 + $0x2a70] sm:$0xff]  ;;  %v1814_v25 = vld [vmem:[%s10055_s25 + $0x2a78] sm:$0xff] }
 0x2e6   : > { %9458 = vmatprep.subr.bf16.mxu1 %v9457_v3  ;;  %5523 = vmatprep.mubr.f32.mxu0 %v2387_v7  ;;  %v1812_v3 = vld [vmem:[%s10055_s25 + $0x2a68] sm:$0xff]  ;;  %v9477_v58 = vpack.c.bf16 %v1860_v62, %v1859_v0  ;;  %v1866_v34 = vld [vmem:[%s10055_s25 + $0x2c18] sm:$0xff]  ;;  %v1897_v56 = vld [vmem:[%s10055_s25 + $0x2d10] sm:$0xff] }
 0x2e7   : > { %5593 = vmatprep.mubr.f32.mxu1 %v2388_v11  ;;  %v1844_v7 = vld [vmem:[%s10055_s25 + $0x2b68] sm:$0xff]  ;;  %v9447_v19 = vpack.c.bf16 %v1812_v3, %v1811_v2  ;;  %v1915_v0 = vld [vmem:[%s10055_s25 + $0x2da0] sm:$0xff]  ;;  %v9493_v2 = vpack.c.bf16 %v1884_v48, %v1883_v47 }
 0x2e8   : > { %9428 = vmatpush3.bf16.msra.mxu0 %v9427_v15  ;;  %v9479_v21 = vpack.c.bf16 %v1844_v7, %v1843_v4  ;;  %v1916_v62 = vld [vmem:[%s10055_s25 + $0x2da8] sm:$0xff]  ;;  %v1867_v3 = vld [vmem:[%s10055_s25 + $0x2c20] sm:$0xff]  ;;  %v1885_v7 = vld [vmem:[%s10055_s25 + $0x2cb0] sm:$0xff] }
 0x2e9   : > { %9460 = vmatpush3.bf16.msra.mxu1 %v9459_v17  ;;  %9430 = vmatprep.subr.bf16.mxu0 %v9429_v12  ;;  %v1861_v17 = vld [vmem:[%s10055_s25 + $0x2bf0] sm:$0xff]  ;;  %v1862_v12 = vld [vmem:[%s10055_s25 + $0x2bf8] sm:$0xff]  ;;  %v1899_v4 = vld [vmem:[%s10055_s25 + $0x2d20] sm:$0xff] }
 0x2ea   : > { %9462 = vmatprep.subr.bf16.mxu1 %v9461_v6  ;;  %v453_v6 = vld [vmem:[%s10065_s21 + $0xb0] sm:$0xff] }
 0x2eb   : > { %v2389_v23 = vcombine.high %v453_v6, %v453_v6  ;;  %v11808_v45 = vrot.slane %v453_v6, %v10118_v14  ;;  %v1902_v6 = vld [vmem:[%s10055_s25 + $0x2d38] sm:$0xff] }
 0x2ec   : > { %9432 = vmatpush3.bf16.msra.mxu0 %v9431_v22  ;;  %v1845_v22 = vld [vmem:[%s10055_s25 + $0x2b70] sm:$0xff] }
 0x2ed   : > { %9464 = vmatpush3.bf16.msra.mxu1 %v9463_v28  ;;  %9434 = vmatprep.subr.bf16.mxu0 %v9433_v29  ;;  %v9481_v29 = vpack.c.bf16 %v1862_v12, %v1861_v17  ;;  %v9483_v40 = vpack.c.bf16 %v1846_v30, %v1845_v22  ;;  %v11813_v46 = vrot.slane %v2389_v23, %v10118_v14  ;;  %v1869_v12 = vld [vmem:[%s10055_s25 + $0x2c30] sm:$0xff]  ;;  %v1872_v30 = vld [vmem:[%s10055_s25 + $0x2c48] sm:$0xff]  ;;  %v1890_v23 = vld [vmem:[%s10055_s25 + $0x2cd8] sm:$0xff] }
 0x2ee   : > { %9466 = vmatprep.subr.bf16.mxu1 %v9465_v32  ;;  %v1911_v32 = vld [vmem:[%s10055_s25 + $0x2d80] sm:$0xff]  ;;  %v2404_v52 = vcombine.high %v11808_v45, %v11808_v45  ;;  %v9497_v17 = vpack.c.bf16 %v1886_v13, %v1885_v7 }
 0x2ef   : > { %v9517_v41 = vpack.c.bf16 %v1912_v20, %v1911_v32  ;;  %v1904_v32 = vld [vmem:[%s10055_s25 + $0x2d48] sm:$0xff]  ;;  %v1889_v20 = vld [vmem:[%s10055_s25 + $0x2cd0] sm:$0xff] }
 0x2f0   : > { %9436 = vmatpush3.bf16.msra.mxu0 %v9435_v43  ;;  %v1863_v43 = vld [vmem:[%s10055_s25 + $0x2c00] sm:$0xff] }
 0x2f1   : > { %9468 = vmatpush3.bf16.msra.mxu1 %v9467_v26  ;;  %9438 = vmatprep.subr.bf16.mxu0 %v9437_v53  ;;  %v1864_v26 = vld [vmem:[%s10055_s25 + $0x2c08] sm:$0xff]  ;;  %v1895_v53 = vld [vmem:[%s10055_s25 + $0x2d00] sm:$0xff] }
 0x2f2   : > { %9470 = vmatprep.subr.bf16.mxu1 %v9469_v33  ;;  %v1882_v33 = vld [vmem:[%s10055_s25 + $0x2c98] sm:$0xff]  ;;  %v9487_v54 = vpack.c.bf16 %v1864_v26, %v1863_v43  ;;  %v9535_v43 = vpack.c.bf16 %v1904_v32, %v1903_v31  ;;  %v9505_v26 = vpack.c.bf16 %v1890_v23, %v1889_v20  ;;  %v1945_v31 = vld [vmem:[%s10055_s25 + $0x2e90] sm:$0xff] }
 0x2f3   : > { %v1977_v20 = vld [vmem:[%s10055_s25 + $0x2f90] sm:$0xff]  ;;  %v1978_v23 = vld [vmem:[%s10055_s25 + $0x2f98] sm:$0xff] }
 0x2f4   : > { %9440 = vmatpush3.bf16.msra.mxu0 %v9439_v50  ;;  %v9519_v50 = vpack.c.bf16 %v1896_v42, %v1895_v53  ;;  %v1873_v53 = vld [vmem:[%s10055_s25 + $0x2c50] sm:$0xff] }
 0x2f5   : > { %9472 = vmatpush3.bf16.msra.mxu1 %v9471_v51  ;;  %9442 = vmatprep.subr.bf16.mxu0 %v9441_v39  ;;  %v9489_v51 = vpack.c.bf16 %v1882_v33, %v1881_v44  ;;  %v1865_v39 = vld [vmem:[%s10055_s25 + $0x2c10] sm:$0xff]  ;;  %v1906_v33 = vld [vmem:[%s10055_s25 + $0x2d58] sm:$0xff] }
 0x2f6   : > { %v7325_v61 = vpop.f32.mrb[28].mxu0  ;;  %9474 = vmatprep.subr.bf16.mxu1 %v9473_v59  ;;  %v1898_v59 = vld [vmem:[%s10055_s25 + $0x2d18] sm:$0xff]  ;;  %v1905_v42 = vld [vmem:[%s10055_s25 + $0x2d50] sm:$0xff] }
 0x2f7   : > { %v7326_v11 = vpop.f32.mrb[29].mxu0  ;;  %v7360_v15 = vpop.f32.mrb[28].mxu1 }
 0x2f8   : > { %v7327_v18 = vadd.f32 %v7326_v11, %v7325_v61  ;;  %9444 = vmatpush3.bf16.msra.mxu0 %v9443_v63  ;;  %v7361_v5 = vpop.f32.mrb[29].mxu1  ;;  %v2405_v63 = vcombine.high %v11813_v46, %v11813_v46  ;;  %v9525_v61 = vpack.c.bf16 %v1916_v62, %v1915_v0  ;;  %v1893_v0 = vld [vmem:[%s10055_s25 + $0x2cf0] sm:$0xff]  ;;  %v1894_v62 = vld [vmem:[%s10055_s25 + $0x2cf8] sm:$0xff] }
 0x2f9   : > { %v7362_v8 = vadd.f32 %v7361_v5, %v7360_v15  ;;  %9476 = vmatpush3.bf16.msra.mxu1 %v9475_v55  ;;  %9446 = vmatprep.subr.bf16.mxu0 %v9445_v1  ;;  %v9491_v55 = vpack.c.bf16 %v1866_v34, %v1865_v39  ;;  %v9523_v1 = vpack.c.bf16 %v1898_v59, %v1897_v56  ;;  %v1901_v5 = vld [vmem:[%s10055_s25 + $0x2d30] sm:$0xff]  ;;  %v1875_v56 = vld [vmem:[%s10055_s25 + $0x2c60] sm:$0xff] }
 0x2fa   : > { %v4546_v28 = vadd.f32 %v7327_v18, %v11719_v49  ;;  %9478 = vmatprep.subr.bf16.mxu1 %v9477_v58  ;;  %v9451_v49 = vpack.c.bf16 %v1814_v25, %v1813_v24  ;;  %v1900_v58 = vld [vmem:[%s10055_s25 + $0x2d28] sm:$0xff]  ;;  %v1870_v18 = vld [vmem:[%s10055_s25 + $0x2c38] sm:$0xff]  ;;  %v9531_v22 = vpack.c.bf16 %v1902_v6, %v1901_v5  ;;  %v9539_v39 = vpack.c.bf16 %v1906_v33, %v1905_v42  ;;  %v1907_v59 = vld [vmem:[%s10055_s25 + $0x2d60] sm:$0xff] }
 0x2fb   : > { %v9527_v15 = vpack.c.bf16 %v1900_v58, %v1899_v4  ;;  %v1920_v24 = vld [vmem:[%s10055_s25 + $0x2dc8] sm:$0xff]  ;;  %v9499_v25 = vpack.c.bf16 %v1870_v18, %v1869_v12  ;;  %v9509_v34 = vpack.c.bf16 %v1892_v37, %v1891_v35  ;;  %v9513_v13 = vpack.c.bf16 %v1894_v62, %v1893_v0  ;;  %v1910_v12 = vld [vmem:[%s10055_s25 + $0x2d78] sm:$0xff]  ;;  %v1943_v18 = vld [vmem:[%s10055_s25 + $0x2e80] sm:$0xff] }
 0x2fc   : > { %v11799_v36 = vadd.f32 %v7362_v8, %v4546_v28  ;;  %9448 = vmatpush3.bf16.msra.mxu0 %v9447_v19  ;;  %v1887_v8 = vld [vmem:[%s10055_s25 + $0x2cc0] sm:$0xff]  ;;  %v1944_v5 = vld [vmem:[%s10055_s25 + $0x2e88] sm:$0xff]  ;;  %v9585_v42 = vpack.c.bf16 %v1978_v23, %v1977_v20  ;;  %v1982_v0 = vld [vmem:[%s10055_s25 + $0x2fb8] sm:$0xff] }
 0x2fd   : > { %9480 = vmatpush3.bf16.msra.mxu1 %v9479_v21  ;;  %9450 = vmatprep.subr.bf16.mxu0 %v9449_v27  ;;  %v1888_v21 = vld [vmem:[%s10055_s25 + $0x2cc8] sm:$0xff]  ;;  %v1919_v27 = vld [vmem:[%s10055_s25 + $0x2dc0] sm:$0xff] }
 0x2fe   : > { %9482 = vmatprep.subr.bf16.mxu1 %v9481_v29  ;;  %v9501_v28 = vpack.c.bf16 %v1888_v21, %v1887_v8  ;;  %v1871_v29 = vld [vmem:[%s10055_s25 + $0x2c40] sm:$0xff]  ;;  %v9533_v16 = vpack.c.bf16 %v1920_v24, %v1919_v27  ;;  %v1976_v6 = vld [vmem:[%s10055_s25 + $0x2f88] sm:$0xff]  ;;  %v9549_v24 = vpack.c.bf16 %v1944_v5, %v1943_v18 }
 0x2ff   : > { %v1947_v33 = vld [vmem:[%s10055_s25 + $0x2ea0] sm:$0xff]  ;;  %v1968_v5 = vld [vmem:[%s10055_s25 + $0x2f48] sm:$0xff] }
 0x300   : > { %9452 = vmatpush3.bf16.msra.mxu0 %v9451_v49  ;;  %v1921_v49 = vld [vmem:[%s10055_s25 + $0x2dd0] sm:$0xff]  ;;  %v1979_v37 = vld [vmem:[%s10055_s25 + $0x2fa0] sm:$0xff]  ;;  %v1956_v20 = vld [vmem:[%s10055_s25 + $0x2ee8] sm:$0xff] }
 0x301   : > { %9484 = vmatpush3.bf16.msra.mxu1 %v9483_v40  ;;  %9486 = vmatprep.subr.bf16.mxu0 %v9485_v38  ;;  %v1922_v40 = vld [vmem:[%s10055_s25 + $0x2dd8] sm:$0xff]  ;;  %v9503_v38 = vpack.c.bf16 %v1872_v30, %v1871_v29  ;;  %v1960_v30 = vld [vmem:[%s10055_s25 + $0x2f08] sm:$0xff]  ;;  %v1987_v23 = vld [vmem:[%s10055_s25 + $0x2fe0] sm:$0xff] }
 0x302   : > { %9518 = vmatprep.subr.bf16.mxu1 %v9517_v41  ;;  %v1874_v41 = vld [vmem:[%s10055_s25 + $0x2c58] sm:$0xff]  ;;  %v9537_v44 = vpack.c.bf16 %v1922_v40, %v1921_v49 }
 0x303   : > { %5524 = vmatmul.mubr.f32.vlgmr.msra.gmra.mrb[42].mxu0 %v11728_v60  ;;  %v1868_v60 = vld [vmem:[%s10055_s25 + $0x2c28] sm:$0xff] }
 0x304   : > { %9488 = vmatpush3.bf16.msra.mxu0 %v9487_v54  ;;  %5594 = vmatmul.mubr.f32.vlgmr.msra.gmra.mrb[42].mxu1 %v11733_v9  ;;  %v1917_v9 = vld [vmem:[%s10055_s25 + $0x2db0] sm:$0xff]  ;;  %v9495_v11 = vpack.c.bf16 %v1868_v60, %v1867_v3  ;;  %v1923_v54 = vld [vmem:[%s10055_s25 + $0x2de0] sm:$0xff] }
 0x305   : > { %9520 = vmatpush3.bf16.msra.mxu1 %v9519_v50  ;;  %9490 = vmatprep.subr.bf16.mxu0 %v9489_v51  ;;  %v9529_v19 = vpack.c.bf16 %v1918_v10, %v1917_v9  ;;  %v1924_v50 = vld [vmem:[%s10055_s25 + $0x2de8] sm:$0xff]  ;;  %v9507_v51 = vpack.c.bf16 %v1874_v41, %v1873_v53  ;;  %v1877_v9 = vld [vmem:[%s10055_s25 + $0x2c70] sm:$0xff]  ;;  %v1878_v10 = vld [vmem:[%s10055_s25 + $0x2c78] sm:$0xff] }
 0x306   : > { %9522 = vmatprep.subr.bf16.mxu1 %v9521_v57  ;;  %5663 = vmatprep.mubr.f32.mxu0 %v2404_v52  ;;  %v1876_v57 = vld [vmem:[%s10055_s25 + $0x2c68] sm:$0xff]  ;;  %v9541_v48 = vpack.c.bf16 %v1924_v50, %v1923_v54  ;;  %v1930_v53 = vld [vmem:[%s10055_s25 + $0x2e18] sm:$0xff]  ;;  %v1961_v41 = vld [vmem:[%s10055_s25 + $0x2f10] sm:$0xff] }
 0x307   : > { %5733 = vmatprep.mubr.f32.mxu1 %v2405_v63  ;;  %v1908_v52 = vld [vmem:[%s10055_s25 + $0x2d68] sm:$0xff]  ;;  %v9511_v4 = vpack.c.bf16 %v1876_v57, %v1875_v56  ;;  %v1931_v56 = vld [vmem:[%s10055_s25 + $0x2e20] sm:$0xff] }
 0x308   : > { %9492 = vmatpush3.bf16.msra.mxu0 %v9491_v55  ;;  %v9543_v7 = vpack.c.bf16 %v1908_v52, %v1907_v59  ;;  %v1980_v54 = vld [vmem:[%s10055_s25 + $0x2fa8] sm:$0xff]  ;;  %v1963_v57 = vld [vmem:[%s10055_s25 + $0x2f20] sm:$0xff]  ;;  %v1950_v52 = vld [vmem:[%s10055_s25 + $0x2eb8] sm:$0xff] }
 0x309   : > { %9524 = vmatpush3.bf16.msra.mxu1 %v9523_v1  ;;  %9494 = vmatprep.subr.bf16.mxu0 %v9493_v2  ;;  %v1925_v1 = vld [vmem:[%s10055_s25 + $0x2df0] sm:$0xff]  ;;  %v1926_v2 = vld [vmem:[%s10055_s25 + $0x2df8] sm:$0xff]  ;;  %v9589_v59 = vpack.c.bf16 %v1980_v54, %v1979_v37 }
 0x30a   : > { %9526 = vmatprep.subr.bf16.mxu1 %v9525_v61  ;;  %v454_v61 = vld [vmem:[%s10065_s21 + $0xb8] sm:$0xff] }
 0x30b   : > { %v2406_v8 = vcombine.high %v454_v61, %v454_v61  ;;  %v11888_v32 = vrot.slane %v454_v61, %v10118_v14  ;;  %v1951_v61 = vld [vmem:[%s10055_s25 + $0x2ec0] sm:$0xff]  ;;  %v1958_v37 = vld [vmem:[%s10055_s25 + $0x2ef8] sm:$0xff] }
 0x30c   : > { %9496 = vmatpush3.bf16.msra.mxu0 %v9495_v11  ;;  %v1909_v11 = vld [vmem:[%s10055_s25 + $0x2d70] sm:$0xff] }
 0x30d   : > { %9528 = vmatpush3.bf16.msra.mxu1 %v9527_v15  ;;  %9498 = vmatprep.subr.bf16.mxu0 %v9497_v17  ;;  %v9545_v17 = vpack.c.bf16 %v1926_v2, %v1925_v1  ;;  %v9547_v27 = vpack.c.bf16 %v1910_v12, %v1909_v11  ;;  %v11893_v49 = vrot.slane %v2406_v8, %v10118_v14  ;;  %v1948_v14 = vld [vmem:[%s10055_s25 + $0x2ea8] sm:$0xff]  ;;  %v1933_v1 = vld [vmem:[%s10055_s25 + $0x2e30] sm:$0xff]  ;;  %v1934_v2 = vld [vmem:[%s10055_s25 + $0x2e38] sm:$0xff] }
 0x30e   : > { %9530 = vmatprep.subr.bf16.mxu1 %v9529_v19  ;;  %v1975_v19 = vld [vmem:[%s10055_s25 + $0x2f80] sm:$0xff]  ;;  %v2421_v35 = vcombine.high %v11888_v32, %v11888_v32  ;;  %v1985_v8 = vld [vmem:[%s10055_s25 + $0x2fd0] sm:$0xff] }
 0x30f   : > { %v9581_v29 = vpack.c.bf16 %v1976_v6, %v1975_v19  ;;  %v2422_v50 = vcombine.high %v11893_v49, %v11893_v49  ;;  %v1967_v12 = vld [vmem:[%s10055_s25 + $0x2f40] sm:$0xff]  ;;  %v1953_v19 = vld [vmem:[%s10055_s25 + $0x2ed0] sm:$0xff]  ;;  %v1954_v6 = vld [vmem:[%s10055_s25 + $0x2ed8] sm:$0xff] }
 0x310   : > { %9500 = vmatpush3.bf16.msra.mxu0 %v9499_v25  ;;  %v1927_v25 = vld [vmem:[%s10055_s25 + $0x2e00] sm:$0xff] }
 0x311   : > { %9532 = vmatpush3.bf16.msra.mxu1 %v9531_v22  ;;  %9502 = vmatprep.subr.bf16.mxu0 %v9501_v28  ;;  %v1928_v22 = vld [vmem:[%s10055_s25 + $0x2e08] sm:$0xff]  ;;  %v1959_v28 = vld [vmem:[%s10055_s25 + $0x2f00] sm:$0xff] }
 0x312   : > { %9534 = vmatprep.subr.bf16.mxu1 %v9533_v16  ;;  %v1946_v16 = vld [vmem:[%s10055_s25 + $0x2e98] sm:$0xff]  ;;  %v9551_v40 = vpack.c.bf16 %v1928_v22, %v1927_v25  ;;  %v9569_v25 = vpack.c.bf16 %v1954_v6, %v1953_v19  ;;  %v1937_v22 = vld [vmem:[%s10055_s25 + $0x2e50] sm:$0xff] }
 0x314   : > { %9504 = vmatpush3.bf16.msra.mxu0 %v9503_v38  ;;  %v9583_v38 = vpack.c.bf16 %v1960_v30, %v1959_v28  ;;  %v1938_v28 = vld [vmem:[%s10055_s25 + $0x2e58] sm:$0xff] }
 0x315   : > { %9536 = vmatpush3.bf16.msra.mxu1 %v9535_v43  ;;  %9506 = vmatprep.subr.bf16.mxu0 %v9505_v26  ;;  %v9553_v43 = vpack.c.bf16 %v1946_v16, %v1945_v31  ;;  %v1929_v26 = vld [vmem:[%s10055_s25 + $0x2e10] sm:$0xff]  ;;  %v1970_v31 = vld [vmem:[%s10055_s25 + $0x2f58] sm:$0xff]  ;;  %v1955_v16 = vld [vmem:[%s10055_s25 + $0x2ee0] sm:$0xff] }
 0x316   : > { %v7395_v47 = vpop.f32.mrb[30].mxu0  ;;  %9538 = vmatprep.subr.bf16.mxu1 %v9537_v44  ;;  %v1962_v44 = vld [vmem:[%s10055_s25 + $0x2f18] sm:$0xff] }
 0x317   : > { %v7396_v63 = vpop.f32.mrb[31].mxu0  ;;  %v7430_v55 = vpop.f32.mrb[30].mxu1 }
 0x318   : > { %v7397_v3 = vadd.f32 %v7396_v63, %v7395_v47  ;;  %9508 = vmatpush3.bf16.msra.mxu0 %v9507_v51  ;;  %v7431_v60 = vpop.f32.mrb[31].mxu1  ;;  %v9555_v51 = vpack.c.bf16 %v1930_v53, %v1929_v26  ;;  %v1964_v47 = vld [vmem:[%s10055_s25 + $0x2f28] sm:$0xff]  ;;  %v9573_v26 = vpack.c.bf16 %v1956_v20, %v1955_v16  ;;  %v1939_v53 = vld [vmem:[%s10055_s25 + $0x2e60] sm:$0xff] }
 0x319   : > { %v7432_v58 = vadd.f32 %v7431_v60, %v7430_v55  ;;  %9540 = vmatpush3.bf16.msra.mxu1 %v9539_v39  ;;  %9510 = vmatprep.subr.bf16.mxu0 %v9509_v34  ;;  %v9587_v39 = vpack.c.bf16 %v1962_v44, %v1961_v41  ;;  %v9557_v34 = vpack.c.bf16 %v1948_v14, %v1947_v33  ;;  %v1940_v41 = vld [vmem:[%s10055_s25 + $0x2e68] sm:$0xff] }
 0x31a   : > { %v4686_v15 = vadd.f32 %v7397_v3, %v11799_v36  ;;  %9542 = vmatprep.subr.bf16.mxu1 %v9541_v48  ;;  %v9515_v36 = vpack.c.bf16 %v1878_v10, %v1877_v9  ;;  %v1949_v48 = vld [vmem:[%s10055_s25 + $0x2eb0] sm:$0xff]  ;;  %v9591_v63 = vpack.c.bf16 %v1964_v47, %v1963_v57  ;;  %v9563_v9 = vpack.c.bf16 %v1934_v2, %v1933_v1  ;;  %v1972_v14 = vld [vmem:[%s10055_s25 + $0x2f68] sm:$0xff] }
 0x31b   : > { %v9561_v55 = vpack.c.bf16 %v1950_v52, %v1949_v48  ;;  %v1965_v3 = vld [vmem:[%s10055_s25 + $0x2f30] sm:$0xff]  ;;  %v1942_v52 = vld [vmem:[%s10055_s25 + $0x2e78] sm:$0xff] }
 0x31c   : > { %v11879_v21 = vadd.f32 %v7432_v58, %v4686_v15  ;;  %9512 = vmatpush3.bf16.msra.mxu0 %v9511_v4  ;;  %v1966_v4 = vld [vmem:[%s10055_s25 + $0x2f38] sm:$0xff]  ;;  %v1952_v58 = vld [vmem:[%s10055_s25 + $0x2ec8] sm:$0xff]  ;;  %v1935_v15 = vld [vmem:[%s10055_s25 + $0x2e40] sm:$0xff] }
 0x31d   : > { %9544 = vmatpush3.bf16.msra.mxu1 %v9543_v7  ;;  %9514 = vmatprep.subr.bf16.mxu0 %v9513_v13  ;;  %v1983_v7 = vld [vmem:[%s10055_s25 + $0x2fc0] sm:$0xff]  ;;  %v1984_v13 = vld [vmem:[%s10055_s25 + $0x2fc8] sm:$0xff]  ;;  %v9595_v10 = vpack.c.bf16 %v1966_v4, %v1965_v3  ;;  %v9565_v11 = vpack.c.bf16 %v1952_v58, %v1951_v61  ;;  %v1941_v48 = vld [vmem:[%s10055_s25 + $0x2e70] sm:$0xff] }
 0x31e   : > { %9546 = vmatprep.subr.bf16.mxu1 %v9545_v17  ;;  %v1936_v17 = vld [vmem:[%s10055_s25 + $0x2e48] sm:$0xff]  ;;  %v9597_v18 = vpack.c.bf16 %v1984_v13, %v1983_v7  ;;  %v9579_v1 = vpack.c.bf16 %v1942_v52, %v1941_v48  ;;  %v430_v48 = vld [vmem:[#allocation2] sm:$0x3] }
 0x320   : > { %9516 = vmatpush3.bf16.msra.mxu0 %v9515_v36  ;;  %v1986_v36 = vld [vmem:[%s10055_s25 + $0x2fd8] sm:$0xff] }
 0x321   : > { %9548 = vmatpush3.bf16.msra.mxu1 %v9547_v27  ;;  %9550 = vmatprep.subr.bf16.mxu0 %v9549_v24  ;;  %v9567_v27 = vpack.c.bf16 %v1936_v17, %v1935_v15  ;;  %v9599_v24 = vpack.c.bf16 %v1968_v5, %v1967_v12  ;;  %v9601_v30 = vpack.c.bf16 %v1986_v36, %v1985_v8 }
 0x322   : > { %9582 = vmatprep.subr.bf16.mxu1 %v9581_v29  ;;  %v1969_v29 = vld [vmem:[%s10055_s25 + $0x2f50] sm:$0xff] }
 0x323   : > { %5664 = vmatmul.mubr.f32.vlgmr.msra.gmra.mrb[44].mxu0 %v11808_v45  ;;  %v1932_v45 = vld [vmem:[%s10055_s25 + $0x2e28] sm:$0xff] }
 0x324   : > { %9552 = vmatpush3.bf16.msra.mxu0 %v9551_v40  ;;  %5734 = vmatmul.mubr.f32.vlgmr.msra.gmra.mrb[44].mxu1 %v11813_v46  ;;  %v1981_v46 = vld [vmem:[%s10055_s25 + $0x2fb0] sm:$0xff]  ;;  %v9559_v62 = vpack.c.bf16 %v1932_v45, %v1931_v56  ;;  %v1988_v40 = vld [vmem:[%s10055_s25 + $0x2fe8] sm:$0xff]  ;;  %v9575_v45 = vpack.c.bf16 %v1940_v41, %v1939_v53 }
 0x325   : > { %9584 = vmatpush3.bf16.msra.mxu1 %v9583_v38  ;;  %9554 = vmatprep.subr.bf16.mxu0 %v9553_v43  ;;  %v9593_v60 = vpack.c.bf16 %v1982_v0, %v1981_v46  ;;  %v9571_v38 = vpack.c.bf16 %v1938_v28, %v1937_v22  ;;  %v9603_v43 = vpack.c.bf16 %v1970_v31, %v1969_v29 }
 0x326   : > { %9586 = vmatprep.subr.bf16.mxu1 %v9585_v42  ;;  %5803 = vmatprep.mubr.f32.mxu0 %v2421_v35  ;;  %v1971_v42 = vld [vmem:[%s10055_s25 + $0x2f60] sm:$0xff]  ;;  %v9605_v33 = vpack.c.bf16 %v1988_v40, %v1987_v23  ;;  %v1957_v35 = vld [vmem:[%s10055_s25 + $0x2ef0] sm:$0xff] }
 0x327   : > { %5873 = vmatprep.mubr.f32.mxu1 %v2422_v50  ;;  %v9577_v47 = vpack.c.bf16 %v1958_v37, %v1957_v35 }
 0x328   : > { %9556 = vmatpush3.bf16.msra.mxu0 %v9555_v51  ;;  %v1989_v51 = vld [vmem:[%s10055_s25 + $0x2ff0] sm:$0xff] }
 0x329   : > { %9588 = vmatpush3.bf16.msra.mxu1 %v9587_v39  ;;  %9558 = vmatprep.subr.bf16.mxu0 %v9557_v34  ;;  %v1990_v39 = vld [vmem:[%s10055_s25 + $0x2ff8] sm:$0xff] }
 0x32a   : > { %9590 = vmatprep.subr.bf16.mxu1 %v9589_v59  ;;  %v9607_v59 = vpack.c.bf16 %v1972_v14, %v1971_v42  ;;  %v9609_v0 = vpack.c.bf16 %v1990_v39, %v1989_v51 }
 0x32c   : > { %9560 = vmatpush3.bf16.msra.mxu0 %v9559_v62  ;;  %v1973_v62 = vld [vmem:[%s10055_s25 + $0x2f70] sm:$0xff] }
 0x32d   : > { %9592 = vmatpush3.bf16.msra.mxu1 %v9591_v63  ;;  %9562 = vmatprep.subr.bf16.mxu0 %v9561_v55  ;;  %v1974_v63 = vld [vmem:[%s10055_s25 + $0x2f78] sm:$0xff] }
 0x32e   : > { %9594 = vmatprep.subr.bf16.mxu1 %v9593_v60  ;;  %v9611_v2 = vpack.c.bf16 %v1974_v63, %v1973_v62  ;;  %v5897_v62 = vld [vmem:[%s12141_s3 + $0x8] sm:$0xff] (!%p6298_p7)  ;;  %v5898_v63 = vld [vmem:[%s12141_s3 + $0x10] sm:$0xff] (!%p6298_p7) }
 0x330   : > { %9564 = vmatpush3.bf16.msra.mxu0 %v9563_v9 }
 0x331   : > { %9596 = vmatpush3.bf16.msra.mxu1 %v9595_v10  ;;  %9566 = vmatprep.subr.bf16.mxu0 %v9565_v11 }
 0x332   : > { %9598 = vmatprep.subr.bf16.mxu1 %v9597_v18 }
 0x334   : > { %9568 = vmatpush3.bf16.msra.mxu0 %v9567_v27 }
 0x335   : > { %9600 = vmatpush3.bf16.msra.mxu1 %v9599_v24  ;;  %9570 = vmatprep.subr.bf16.mxu0 %v9569_v25 }
 0x336   : > { %v7465_v44 = vpop.f32.mrb[32].mxu0  ;;  %9602 = vmatprep.subr.bf16.mxu1 %v9601_v30 }
 0x337   : > { %v7466_v54 = vpop.f32.mrb[33].mxu0  ;;  %v7500_v50 = vpop.f32.mrb[32].mxu1 }
 0x338   : > { %v7467_v34 = vadd.f32 %v7466_v54, %v7465_v44  ;;  %9572 = vmatpush3.bf16.msra.mxu0 %v9571_v38  ;;  %v7501_v56 = vpop.f32.mrb[33].mxu1 }
 0x339   : > { %v7502_v57 = vadd.f32 %v7501_v56, %v7500_v50  ;;  %9604 = vmatpush3.bf16.msra.mxu1 %v9603_v43  ;;  %9574 = vmatprep.subr.bf16.mxu0 %v9573_v26 }
 0x33a   : > { %v4826_v46 = vadd.f32 %v7467_v34, %v11879_v21  ;;  %9606 = vmatprep.subr.bf16.mxu1 %v9605_v33 }
 0x33c   : > { %v4896_v55 = vadd.f32 %v7502_v57, %v4826_v46  ;;  %9576 = vmatpush3.bf16.msra.mxu0 %v9575_v45 }
 0x33d   : > { %9608 = vmatpush3.bf16.msra.mxu1 %v9607_v59  ;;  %9578 = vmatprep.subr.bf16.mxu0 %v9577_v47 }
 0x33e   : > { %9610 = vmatprep.subr.bf16.mxu1 %v9609_v0  ;;  %v5896_v0 = vld [vmem:[%s12141_s3] sm:$0xff] (!%p6298_p7) }
 0x340   : > { %9580 = vmatpush3.bf16.msra.mxu0 %v9579_v1  ;;  %v9614_v1 = vpack.c.bf16 (!%p6298_p7), %v5897_v62, %v5896_v0 }
 0x341   : > { %9612 = vmatpush3.bf16.msra.mxu1 %v9611_v2  ;;  %v5899_v2 = vld [vmem:[%s12141_s3 + $0x18] sm:$0xff] (!%p6298_p7) }
 0x343   : > { %5804 = vmatmul.mubr.f32.vlgmr.msra.gmra.mrb[46].mxu0 %v11888_v32 }
 0x344   : > { %5874 = vmatmul.mubr.f32.vlgmr.msra.gmra.mrb[46].mxu1 %v11893_v49 }
 0x356   : > { %v7535_v3 = vpop.f32.mrb[34].mxu0 }
 0x357   : > { %v7536_v60 = vpop.f32.mrb[35].mxu0  ;;  %v7570_v21 = vpop.f32.mrb[34].mxu1 }
 0x358   : > { %v7537_v4 = vadd.f32 %v7536_v60, %v7535_v3  ;;  %v7571_v61 = vpop.f32.mrb[35].mxu1  ;;  %v9904_v3 = vmov (!%p6298_p7), 0.0   ;;  %v9617_v60 = vpack.c.bf16 (!%p6298_p7), %v5899_v2, %v5898_v63 }
 0x359   : > { %v7572_v58 = vadd.f32 %v7571_v61, %v7570_v21  ;;  %8036 = vmatprep.mubr.msk.f32.mxu0 (!%p6298_p7), %vm9903_vm2, %v9904_v3  ;;  %8055 = vmatprep.mubr.msk.f32.mxu1 (!%p6298_p7), %vm9903_vm2, %v9904_v3  ;;  %v5900_v21 = vld [vmem:[%s12141_s3 + $0x20] sm:$0xff] (!%p6298_p7)  ;;  %v5987_v61 = vld [vmem:[%s12143_s5 + $0x8] sm:$0xff] (!%p6298_p7) }
 0x35a   : > { %v4966_v7 = vadd.f32 %v7537_v4, %v4896_v55  ;;  %v9902_v55 = vmov (!%p6298_p7), 0.0|0.0   ;;  %v5986_v4 = vld [vmem:[%s12143_s5] sm:$0xff] (!%p6298_p7) }
 0x35b   : > { %9613 = vmatprep.subr.bf16.mxu0 (!%p6298_p7), %v9902_v55  ;;  %9625 = vmatprep.subr.bf16.mxu1 (!%p6298_p7), %v9902_v55 }
 0x35c   : > { %v5036_v13 = vadd.f32 %v7572_v58, %v4966_v7  ;;  %9615 = vmatpush3.bf16.msra.mxu0 (!%p6298_p7), %v9614_v1  ;;  %v5901_v58 = vld [vmem:[%s12141_s3 + $0x28] sm:$0xff] (!%p6298_p7)  ;;  %v9626_v7 = vpack.c.bf16 (!%p6298_p7), %v5987_v61, %v5986_v4 }
 0x35d   : > { %9616 = vmatprep.subr.bf16.mxu0 (!%p6298_p7), %v9902_v55 }
 0x35e   : > { %9627 = vmatpush3.bf16.msra.mxu1 (!%p6298_p7), %v9626_v7 }
 0x35f   : > { %9628 = vmatprep.subr.bf16.mxu1 (!%p6298_p7), %v9902_v55 }
 0x360   : > { %9618 = vmatpush3.bf16.msra.mxu0 (!%p6298_p7), %v9617_v60 }
 0x361   : > { %9619 = vmatprep.subr.bf16.mxu0 (!%p6298_p7), %v9902_v55 }
 0x376   : > { %v7605_v9 = vpop.f32.mrb[36].mxu0 }
 0x377   : > { %v7606_v10 = vpop.f32.mrb[37].mxu0  ;;  %v7640_v11 = vpop.f32.mrb[36].mxu1 }
 0x378   : > { %v7607_v15 = vadd.f32 %v7606_v10, %v7605_v9  ;;  %v7641_v17 = vpop.f32.mrb[37].mxu1  ;;  %v5989_v9 = vld [vmem:[%s12143_s5 + $0x18] sm:$0xff] (!%p6298_p7) }
 0x379   : > { %v7642_v12 = vadd.f32 %v7641_v17, %v7640_v11  ;;  %v6299_v17 = vld [vmem:[%s12140_s2] ss:$0 sm:$0xff] (!%p6298_p7) }
 0x37a   : > { %v5106_v18 = vadd.f32 %v7607_v15, %v5036_v13  ;;  %v5988_v13 = vld [vmem:[%s12143_s5 + $0x10] sm:$0xff] (!%p6298_p7)  ;;  %v9620_v15 = vpack.c.bf16 (!%p6298_p7), %v5901_v58, %v5900_v21 }
 0x37b   : > { %v9629_v11 = vpack.c.bf16 (!%p6298_p7), %v5989_v9, %v5988_v13 }
 0x37c   : > { %v5176_v5 = vadd.f32 %v7642_v12, %v5106_v18  ;;  %v5990_v12 = vld [vmem:[%s12143_s5 + $0x20] sm:$0xff] (!%p6298_p7)  ;;  %v5991_v18 = vld [vmem:[%s12143_s5 + $0x28] sm:$0xff] (!%p6298_p7)  ;;  %9621 = vmatpush3.bf16.msra.mxu0 (!%p6298_p7), %v9620_v15 }
 0x37d   : > { %9630 = vmatpush3.bf16.msra.mxu1 (!%p6298_p7), %v9629_v11  ;;  %9622 = vmatprep.subr.bf16.mxu0 (!%p6298_p7), %v9902_v55 }
 0x37e   : > { %9631 = vmatprep.subr.bf16.mxu1 (!%p6298_p7), %v9902_v55 }
 0x396   : > { %v7675_v19 = vpop.f32.mrb[38].mxu0 }
 0x397   : > { %v7676_v32 = vpop.f32.mrb[39].mxu0  ;;  %v7710_v6 = vpop.f32.mrb[38].mxu1 }
 0x398   : > { %v7677_v49 = vadd.f32 %v7676_v32, %v7675_v19  ;;  %v7711_v8 = vpop.f32.mrb[39].mxu1  ;;  %v5903_v19 = vld [vmem:[%s12141_s3 + $0x38] sm:$0xff] (!%p6298_p7) }
 0x399   : > { %v7712_v36 = vadd.f32 %v7711_v8, %v7710_v6  ;;  %v9632_v6 = vpack.c.bf16 (!%p6298_p7), %v5991_v18, %v5990_v12 }
 0x39a   : > { %v5246_v27 = vadd.f32 %v7677_v49, %v5176_v5  ;;  %v5902_v5 = vld [vmem:[%s12141_s3 + $0x30] sm:$0xff] (!%p6298_p7) }
 0x39b   : > { %v9623_v49 = vpack.c.bf16 (!%p6298_p7), %v5903_v19, %v5902_v5  ;;  %9633 = vmatpush3.bf16.msra.mxu1 (!%p6298_p7), %v9632_v6 }
 0x39c   : > { %v5316_v24 = vadd.f32 %v7712_v36, %v5246_v27  ;;  %9634 = vmatprep.subr.bf16.mxu1 (!%p6298_p7), %v9902_v55  ;;  %v5992_v36 = vld [vmem:[%s12143_s5 + $0x30] sm:$0xff] (!%p6298_p7)  ;;  %v5993_v27 = vld [vmem:[%s12143_s5 + $0x38] sm:$0xff] (!%p6298_p7) }
 0x39d   : > { %9624 = vmatpush3.bf16.msra.mxu0 (!%p6298_p7), %v9623_v49 }
 0x39e   : > { %9637 = vmatprep.subr.bf16.mxu0 (!%p6298_p7), %v9902_v55 }
 0x3b6   : > { %v7745_v25 = vpop.f32.mrb[40].mxu0 }
 0x3b7   : > { %v7746_v22 = vpop.f32.mrb[41].mxu0  ;;  %v7780_v28 = vpop.f32.mrb[40].mxu1 }
 0x3b8   : > { %v7747_v29 = vadd.f32 %v7746_v22, %v7745_v25  ;;  %v7781_v30 = vpop.f32.mrb[41].mxu1  ;;  %v6075_v25 = vld [vmem:[%s12145_s7] sm:$0xff] (!%p6298_p7)  ;;  %v6076_v22 = vld [vmem:[%s12145_s7 + $0x8] sm:$0xff] (!%p6298_p7) }
 0x3b9   : > { %v7782_v31 = vadd.f32 %v7781_v30, %v7780_v28  ;;  %v6077_v28 = vld [vmem:[%s12145_s7 + $0x10] sm:$0xff] (!%p6298_p7)  ;;  %v6078_v30 = vld [vmem:[%s12145_s7 + $0x18] sm:$0xff] (!%p6298_p7) }
 0x3ba   : > { %v5386_v16 = vadd.f32 %v7747_v29, %v5316_v24  ;;  %v9635_v24 = vpack.c.bf16 (!%p6298_p7), %v5993_v27, %v5992_v36  ;;  %v9638_v29 = vpack.c.bf16 (!%p6298_p7), %v6076_v22, %v6075_v25 }
 0x3bc   : > { %v5456_v20 = vadd.f32 %v7782_v31, %v5386_v16  ;;  %9636 = vmatpush3.bf16.msra.mxu1 (!%p6298_p7), %v9635_v24  ;;  %v9641_v31 = vpack.c.bf16 (!%p6298_p7), %v6078_v30, %v6077_v28  ;;  %v6079_v16 = vld [vmem:[%s12145_s7 + $0x20] sm:$0xff] (!%p6298_p7) }
 0x3d6   : > { %v7815_v23 = vpop.f32.mrb[42].mxu0 }
 0x3d7   : > { %v7816_v40 = vpop.f32.mrb[43].mxu0  ;;  %v7850_v38 = vpop.f32.mrb[42].mxu1 }
 0x3d8   : > { %v7817_v43 = vadd.f32 %v7816_v40, %v7815_v23  ;;  %v7851_v26 = vpop.f32.mrb[43].mxu1  ;;  %v6300_v40 = vld [vmem:[%s12142_s4] ss:$0 sm:$0xff] (!%p6298_p7) }
 0x3d9   : > { %v7852_v53 = vadd.f32 %v7851_v26, %v7850_v38 }
 0x3da   : > { %v5526_v41 = vadd.f32 %v7817_v43, %v5456_v20  ;;  %v6080_v20 = vld [vmem:[%s12145_s7 + $0x28] sm:$0xff] (!%p6298_p7) }
 0x3db   : > { %v9644_v23 = vpack.c.bf16 (!%p6298_p7), %v6080_v20, %v6079_v16 }
 0x3dc   : > { %v5596_v42 = vadd.f32 %v7852_v53, %v5526_v41  ;;  %v6081_v41 = vld [vmem:[%s12145_s7 + $0x30] sm:$0xff] (!%p6298_p7) }
 0x3f6   : > { %v7885_v44 = vpop.f32.mrb[44].mxu0 }
 0x3f7   : > { %v7886_v33 = vpop.f32.mrb[45].mxu0  ;;  %v7920_v14 = vpop.f32.mrb[44].mxu1 }
 0x3f8   : > { %v7887_v35 = vadd.f32 %v7886_v33, %v7885_v44  ;;  %v7921_v37 = vpop.f32.mrb[45].mxu1  ;;  %v6302_v33 = vld [vmem:[%s12144_s6] ss:$0 sm:$0xff] (!%p6298_p7) }
 0x3f9   : > { %v7922_v54 = vadd.f32 %v7921_v37, %v7920_v14 }
 0x3fa   : > { %v5666_v50 = vadd.f32 %v7887_v35, %v5596_v42  ;;  %v6082_v42 = vld [vmem:[%s12145_s7 + $0x38] sm:$0xff] (!%p6298_p7) }
 0x3fb   : > { %v9647_v44 = vpack.c.bf16 (!%p6298_p7), %v6082_v42, %v6081_v41 }
 0x3fc   : > { %v5736_v51 = vadd.f32 %v7922_v54, %v5666_v50  ;;  %v6304_v50 = vld [vmem:[%s12146_s8] ss:$0 sm:$0xff] (!%p6298_p7) }
 0x416   : > { %v7955_v39 = vpop.f32.mrb[46].mxu0 }
 0x417   : > { %v7956_v34 = vpop.f32.mrb[47].mxu0  ;;  %v7990_v56 = vpop.f32.mrb[46].mxu1 }
 0x418   : > { %v7957_v45 = vadd.f32 %v7956_v34, %v7955_v39  ;;  %v7991_v57 = vpop.f32.mrb[47].mxu1 }
 0x419   : > { %v7992_v59 = vadd.f32 %v7991_v57, %v7990_v56 }
 0x41a   : > { %v5806_v47 = vadd.f32 %v7957_v45, %v5736_v51  ;;  %5885 = sbr.rel (%p6298_p7) target bundleno = 2029 (0x7ed), region = 68 }
 0x41c   : > { %v5876_v52 = vadd.f32 %v7992_v59, %v5806_v47 }
 0x41e   : > { %v5879_v46 = vadd.f32 %v5876_v52, %v430_v48 }
 0x420   : > { %5881 = vst.msk [vmem:[#allocation2] sm:$0x3] %vm5880_vm1, %v5879_v46 }
 0x427   : > { %v5886_v10 = vld [vmem:[#allocation2] sm:$0x3] }
 0x428   : > { %v5894_v32 = vadd.f32 %v6299_v17, %v5886_v10 }
 0x42a   : > { %v5895_v8 = vmax.f32 %v5894_v32, 0.0 }
 0x42c   : > { %8037 = vmatmul.mubr.msk.f32.vlgmr.msra.gmra.mrb[0].mxu0 %vm5911_vm3, %v5895_v8 }
 0x42d   : > { %8074 = vmatprep.mubr.msk.f32.mxu0 %vm9903_vm2, %v9904_v3  ;;  %9639 = vmatpush3.bf16.msra.mxu0 %v9638_v29 }
 0x42e   : > { %9640 = vmatprep.subr.bf16.mxu0 %v9902_v55 }
 0x431   : > { %9642 = vmatpush3.bf16.msra.mxu0 %v9641_v31 }
 0x432   : > { %9643 = vmatprep.subr.bf16.mxu0 %v9902_v55 }
 0x435   : > { %9645 = vmatpush3.bf16.msra.mxu0 %v9644_v23 }
 0x436   : > { %9646 = vmatprep.subr.bf16.mxu0 %v9902_v55 }
 0x439   : > { %9648 = vmatpush3.bf16.msra.mxu0 %v9647_v44 }
 0x4ff   : > { %v5981_v38 = vpop.f32.mrb[0].mxu0 }
 0x500   : > { %v5982_v43 = vadd.f32 %v6300_v40, %v5981_v38  ;;  %v8038_v26 = vpop.f32.mrb[1].mxu0 }
 0x502   : > { %v5985_v53 = vmax.f32 %v5982_v43, 0.0 }
 0x504   : > { %8056 = vmatmul.mubr.msk.f32.vlgmr.msra.gmra.mrb[0].mxu1 %vm5911_vm3, %v5985_v53 }
 0x5d7   : > { %v6070_v14 = vpop.f32.mrb[0].mxu1 }
 0x5d8   : > { %v6071_v35 = vadd.f32 %v6302_v33, %v6070_v14  ;;  %v8057_v37 = vpop.f32.mrb[1].mxu1 }
 0x5da   : > { %v6074_v54 = vmax.f32 %v6071_v35, 0.0 }
 0x5dc   : > { %8075 = vmatmul.mubr.msk.f32.vlgmr.msra.gmra.mrb[2].mxu0 %vm5911_vm3, %v6074_v54 }
 0x6af   : > { %v6159_v51 = vpop.f32.mrb[2].mxu0 }
 0x6b0   : > { %v6160_v39 = vadd.f32 %v6304_v50, %v6159_v51  ;;  %v8076_v34 = vpop.f32.mrb[3].mxu0 }
 0x6b2   : > { %v6165_v56 = vsel %vm6163_vm4, %v6160_v39, -inf  ;;  %6164 = vst.msk [vmem:[#allocation6] sm:$0x3] %vm6163_vm4, %v6160_v39 }
 0x6b3   : > { %6166 = vmax.xlane.f32.xlu0 %v6165_v56 }
 0x740   : > { %v6167_v45 = vpop.xlane.xlu0 %6166 }
 0x741   : > { %v6168_v57 = vsub.f32 %v6160_v39, %v6167_v45 }
 0x743   : > { %v6169_v59 = vmul.f32 1.442695, %v6168_v57 }
 0x745   : > { %9751 = vpow2.f32 %v6169_v59 }
 0x74f   : > { %v9752_v47 = vpop.eup %9751 }
 0x750   : > { %v6171_v48 = vsel %vm6163_vm4, %v9752_v47, 0.0 }
 0x751   : > { %6172 = vadd.xlane.f32.xlu0 %v6171_v48 }
 0x7de   : > { %v6173_v52 = vpop.xlane.xlu0 %6172 }
 0x7df   : > { %9753 = vrcp.f32 %v6173_v52 }
 0x7e9   : > { %v9754_v46 = vpop.eup %9753 }
 0x7ea   : > { %v6175_v0 = vmul.f32 %v9754_v46, %v9752_v47 }
 0x7ec   : > { %6176 = vst.msk [vmem:[#allocation7] sm:$0x3] %vm6163_vm4, %v6175_v0 }
 0x7ed PF: > { %s12154_s30 = sadd.s32 4294967295, %s9895_s18   ;;  %s9905_s13 = smov [#allocation6]  }
 0x7ee   : > { %p12065_p5 = scmp.eq.s32.totalorder %s12154_s30, 3  ;;  %s6186_s21 = sshll.u32 %s9905_s13, 4  ;;  %s6187_s21 = int_to_ptr.vmem [resolvable:$true] %s6186_s21 }
 0x7ef   : > { %s9906_s23 = smov [#allocation7]   ;;  %s9785_s19 = scalar_lea.vmem %s6187_s21, 32 }
 0x7f0   : > { %s6199_s12 = sshll.u32 %s9906_s23, 4  ;;  %p9786_p6 = scmp.ne.s32.totalorder %s6187_s21, %s9785_s19  ;;  %s12069_s12 = int_to_ptr.vmem [resolvable:$true] %s6199_s12 }
 0x7f1   : > { %p9792_p12 = scmp.lt.s32.totalorder %s6187_s21, %s6187_s21  ;;  %p9793_p0 = scmp.lt.s32.totalorder %s9785_s19, %s9785_s19 }
 0x7f2   : > { %p9787_p8 = pnand %p9786_p6, %p12065_p5 }
 0x7f3   : > { %p9794_p1 = por %p9793_p0, %p9792_p12 }
 0x7f4   : > { %p9788_p10 = pneg %p9787_p8 }
 0x7f6   : > { %p9795_p2 = pnand %p9794_p1, %p9788_p10 }
 0x7f8   : > { %9798 = shalt.err (!%p9795_p2)
}
 0x7f9   : > { %s9799_s26 = scalar_lea.hbm %s12147_s9, 32 }
 0x7fa   : > { %p9800_p11 = scmp.ne.s32.totalorder %s12147_s9, %s9799_s26  ;;  %p9805_p4 = scmp.lt.u32.totalorder %s9799_s26, %s12147_s9 }
 0x7fc   : > { %p9801_p13 = pnand %p9800_p11, %p12065_p5 }
 0x7fe   : > { %p9802_p3 = pneg %p9801_p13 }
 0x800   : > { %p9807_p9 = pnand %p9805_p4, %p9802_p3 }
 0x802   : > { %9810 = shalt.err (!%p9807_p9)
}
 0x803   : > { %9654 = dma.vmem_to_hbm [thread:$0]  (%p12065_p5), %s6187_s21, 32, %s12147_s9, [#allocation5]  }
 0x804   : > { %s9811_s13 = scalar_lea.vmem %s12069_s12, 32  ;;  %p9818_p10 = scmp.lt.s32.totalorder %s12069_s12, %s12069_s12 }
 0x805   : > { %p9812_p7 = scmp.ne.s32.totalorder %s12069_s12, %s9811_s13  ;;  %p9819_p12 = scmp.lt.s32.totalorder %s9811_s13, %s9811_s13 }
 0x807   : > { %p9813_p6 = pnand %p9812_p7, %p12065_p5  ;;  %p9820_p0 = por %p9819_p12, %p9818_p10 }
 0x809   : > { %p9814_p8 = pneg %p9813_p6 }
 0x80b   : > { %p9821_p1 = pnand %p9820_p0, %p9814_p8 }
 0x80d   : > { %9824 = shalt.err (!%p9821_p1)
}
 0x80e   : > { %s9825_s20 = scalar_lea.hbm %s12148_s10, 32 }
 0x80f   : > { %p9826_p2 = scmp.ne.s32.totalorder %s12148_s10, %s9825_s20  ;;  %p9831_p3 = scmp.lt.u32.totalorder %s9825_s20, %s12148_s10 }
 0x811   : > { %p9827_p11 = pnand %p9826_p2, %p12065_p5 }
 0x813   : > { %p9828_p13 = pneg %p9827_p11 }
 0x815   : > { %p9833_p4 = pnand %p9831_p3, %p9828_p13 }
 0x817   : > { %9836 = shalt.err (!%p9833_p4)
}
 0x818   : > { %9656 = dma.vmem_to_hbm [thread:$0]  (%p12065_p5), %s12069_s12, 32, %s12148_s10, [#allocation8]  }
 0x819   : > { %9866 = dma.done.wait (%p12065_p5), [#allocation5], 32  }
 0x81a   : > { %9868 = vsyncadd (%p12065_p5), [#allocation5], 4294967264 }
 0x81b   : > { %9870 = dma.done.wait (%p12065_p5), [#allocation8], 32  }
 0x81c   : > { %9872 = vsyncadd (%p12065_p5), [#allocation8], 4294967264 }
 0x81d PF: > { %s26_s18 = sadd.s32 1, %s9895_s18   ;;  %s12156_s12 = sld [smem:[#allocation12_spill]] }
 0x81e   : > { %p23_p9 = scmp.ge.s32.totalorder %s26_s18, 6   ;;  %s12157_s13 = smov %s9879_s14 }
 0x81f   : > { %s12158_s14 = smov %s9883_s15  ;;  %s12159_s15 = smov %s10009_s24 }
 0x820   : > { %s12160_s16 = smov %s9891_s17  ;;  %25 = sbr.rel (!%p23_p9) target bundleno = 6 (0x6), region = 114 }
 0x823   : > { %s12161_s17 = smov %s12156_s12 }
 0x827   :  { %6216 = vsyncpa [#allocation4], 1 }
 0x828   :  { %6218 = vsyncpa [#allocation4 + $0x1], 1 }
 0x829   :  { %6219 = vsyncpa [#allocation5], 1 }
 0x82a   :  { %6221 = vsyncpa [#allocation5 + $0x1], 1 }
 0x82b   :  { %6222 = vsyncpa [#allocation8], 1 }

</bundles_post_ra>
